<compile_context>
chip_gen: v6e
topology: v6e:2x2x1
jax: 0.10.0
libtpu: 0.0.40
codegen_flags: <defaults>
</compile_context>

<pallas_src>
import functools
import math

import jax
import jax.numpy as jnp
from jax.experimental import pallas as pl
from jax.experimental.pallas import tpu as pltpu


def _round_up(x, m):
    return (x + m - 1) // m * m


def _cdiv(a, b):
    return -(-a // b)


# ---------------------------------------------------------------------------
# Fused MLP kernel: o = GELU(x @ W1 + b1) @ W2 + b2 on a [tm, *] row tile and
# a [*, tn] output-column tile (hidden activation never leaves VMEM/vregs).
# ---------------------------------------------------------------------------
def _mlp_kernel(x_ref, w1_ref, b1_ref, w2_ref, b2_ref, o_ref, *,
                precision, exact_gelu):
    # x_ref:  (tm, Din)        row tile of flattened tokens (compute dtype)
    # w1_ref: (Din, Dh_pad)    fc1 weight (pre-transposed, lane-padded)
    # b1_ref: (1, Dh_pad)      fc1 bias
    # w2_ref: (Dh_pad, tn)     fc2 weight column tile
    # b2_ref: (1, tn)          fc2 bias column tile
    h = jnp.dot(x_ref[...], w1_ref[...],
                preferred_element_type=jnp.float32, precision=precision)
    h = h + b1_ref[...].astype(jnp.float32)
    if exact_gelu:
        # exact GELU (torch.nn.GELU default); padded hidden units: gelu(0)==0
        h = 0.5 * h * (1.0 + jax.lax.erf(h * (1.0 / math.sqrt(2.0))))
    else:
        h = jax.nn.gelu(h, approximate=True)   # tanh form -> EUP slot
    o = jnp.dot(h.astype(w2_ref.dtype), w2_ref[...],
                preferred_element_type=jnp.float32, precision=precision)
    o = o + b2_ref[...].astype(jnp.float32)
    o_ref[...] = o.astype(o_ref.dtype)


# ---------------------------------------------------------------------------
# One-time parameter packing (hoisted out of the forward path)
# ---------------------------------------------------------------------------
def pack_mlp_params(params, *, compute_dtype=jnp.float32, lane=256):
    """Transpose torch-layout (out,in) weights, zero-pad hidden/out feature
    dims to `lane` multiples and cast to the MXU compute dtype. Call once."""
    w1_t, b1 = params['w1'], params['b1']     # (Dh, Din), (Dh,)
    w2_t, b2 = params['w2'], params['b2']     # (Do, Dh),  (Do,)
    dh, din = w1_t.shape
    dout, dh2 = w2_t.shape
    assert dh2 == dh
    dh_p, do_p = _round_up(dh, lane), _round_up(dout, lane)
    dt = compute_dtype
    # Padded hidden units get bias 0 -> gelu(0)=0 -> contribute 0 through the
    # zero rows of W2; padded output columns are sliced off in the wrapper.
    w1 = jnp.zeros((din, dh_p), dt).at[:, :dh].set(w1_t.T.astype(dt))
    b1p = jnp.zeros((1, dh_p), dt).at[:, :dh].set(b1.astype(dt))
    w2 = jnp.zeros((dh_p, do_p), dt).at[:dh, :dout].set(w2_t.T.astype(dt))
    b2p = jnp.zeros((1, do_p), dt).at[:, :dout].set(b2.astype(dt))
    return dict(w1=w1, b1=b1p, w2=w2, b2=b2p, din=din, dh=dh, dout=dout,
                dh_p=dh_p, do_p=do_p, dtype=jnp.dtype(dt))


def _vmem_footprint(tm, din, dh_p, tn, n_j, itemsize):
    w_bufs = 1 if n_j == 1 else 2            # column-tiled w2 double-buffers
    b = 2 * tm * din * itemsize              # x tile (double buffered)
    b += din * dh_p * itemsize               # w1 (single buffered, invariant)
    b += dh_p * itemsize                     # b1
    b += w_bufs * dh_p * tn * itemsize       # w2 column tile(s)
    b += w_bufs * tn * itemsize              # b2
    b += 2 * tm * tn * itemsize              # out tile (double buffered)
    b += tm * dh_p * 4 + tm * tn * 4         # f32 intermediates (h, o)
    return b


# ---------------------------------------------------------------------------
# Wrapper: nn.Linear semantics (channels_first=False), arbitrary leading dims
# ---------------------------------------------------------------------------
def mlp_forward(x, packed, *, tm_max=512, exact_gelu=True,
                vmem_budget_bytes=40 * 1024 * 1024):
    """x: (..., in_features). `packed` from pack_mlp_params()."""
    din, dout = packed['din'], packed['dout']
    dh_p, do_p = packed['dh_p'], packed['do_p']
    cdt = packed['dtype']
    out_dt = x.dtype
    assert x.shape[-1] == din

    lead = x.shape[:-1]
    M = int(math.prod(lead)) if lead else 1
    x2 = x.reshape(M, din).astype(cdt)

    itemsize = cdt.itemsize
    sub = {4: 8, 2: 16, 1: 32}.get(itemsize, 8)   # f32 / bf16 / int8 sublanes

    # Row tiling: big tiles, padded M (no divisibility assert), and at least
    # two row steps when possible so v7x's two TCs both get work.
    tm = min(tm_max, _round_up(M, sub))
    if _round_up(M, tm) // tm < 2 and M > sub:
        tm = _round_up(_cdiv(M, 2), sub)
    M_p = _round_up(M, tm)
    if M_p != M:
        x2 = jnp.pad(x2, ((0, M_p - M), (0, 0)))

    # Output-column tiling only if the resident footprint exceeds the budget
    # (keeps transformer-sized MLPs inside v7x's 64 MiB VMEM per TC).
    cands = [do_p // k for k in range(1, do_p // 256 + 1)
             if do_p % k == 0 and (do_p // k) % 256 == 0] or [do_p]
    tn = cands[-1]
    for c in cands:                      # decreasing: prefer the largest fit
        if _vmem_footprint(tm, din, dh_p, c, do_p // c, itemsize) <= vmem_budget_bytes:
            tn = c
            break
    n_i, n_j = M_p // tm, do_p // tn

    fp = _vmem_footprint(tm, din, dh_p, tn, n_j, itemsize)
    vmem_limit = int(min(max(2 * fp, 32 * 1024 * 1024), 64 * 1024 * 1024))

    precision = (jax.lax.Precision.HIGHEST
                 if cdt == jnp.dtype(jnp.float32) else None)
    kernel = functools.partial(_mlp_kernel, precision=precision,
                               exact_gelu=exact_gelu)

    cost = pl.CostEstimate(
        flops=2 * M_p * (din * dh_p + dh_p * do_p),
        transcendentals=M_p * dh_p,
        bytes_accessed=(M_p * din + din * dh_p + dh_p + dh_p * do_p + do_p)
        * itemsize + M_p * do_p * jnp.dtype(out_dt).itemsize,
    )

    def run(single_buffer_invariants):
        def spec(shape, imap, invariant):
            if invariant and single_buffer_invariants:
                return pl.BlockSpec(shape, imap, pipeline_mode=pl.Buffered(1))
            return pl.BlockSpec(shape, imap)

        return pl.pallas_call(
            kernel,
            out_shape=jax.ShapeDtypeStruct((M_p, do_p), out_dt),
            grid=(n_i, n_j),
            in_specs=[
                pl.BlockSpec((tm, din), lambda i, j: (i, 0)),
                spec((din, dh_p), lambda i, j: (0, 0), True),
                spec((1, dh_p), lambda i, j: (0, 0), True),
                spec((dh_p, tn), lambda i, j: (0, j), n_j == 1),
                spec((1, tn), lambda i, j: (0, j), n_j == 1),
            ],
            out_specs=pl.BlockSpec((tm, tn), lambda i, j: (i, j)),
            compiler_params=pltpu.CompilerParams(
                dimension_semantics=("parallel", "parallel"),
                vmem_limit_bytes=vmem_limit),
            cost_estimate=cost,
        )(x2, packed['w1'], packed['b1'], packed['w2'], packed['b2'])

    try:
        out = run(True)
    except Exception:          # conservative fallback: default double-buffering
        out = run(False)

    return out[:M, :dout].reshape(*lead, dout)


# ---------------------------------------------------------------------------
# Pure-JAX reference (matches PyTorch Mlp forward, drop=0.0 / eval)
# ---------------------------------------------------------------------------
def mlp_ref(x, params):
    hi = jax.lax.Precision.HIGHEST
    h = jnp.dot(x, params['w1'].T, precision=hi) + params['b1']
    h = 0.5 * h * (1.0 + jax.lax.erf(h / jnp.sqrt(2.0)))   # exact GELU
    return jnp.dot(h, params['w2'].T, precision=hi) + params['b2']


def init_params(key, in_features, hidden_features, out_features):
    k1, k2, k3, k4 = jax.random.split(key, 4)
    f = jnp.float32
    s1 = 1.0 / math.sqrt(in_features)
    s2 = 1.0 / math.sqrt(hidden_features)
    return {
        'w1': jax.random.uniform(k1, (hidden_features, in_features), f, -s1, s1),
        'b1': jax.random.uniform(k2, (hidden_features,), f, -s1, s1),
        'w2': jax.random.uniform(k3, (out_features, hidden_features), f, -s2, s2),
        'b2': jax.random.uniform(k4, (out_features,), f, -s2, s2),
    }


if __name__ == "__main__":
    key = jax.random.PRNGKey(0)
    k_x, k_p = jax.random.split(key)

    # small shapes: batch=2, seq=8, in_features=16, hidden=32, out=16
    B, L, Din, Dh, Dout = 2, 8, 16, 32, 16
    x = jax.random.normal(k_x, (B, L, Din), jnp.float32)
    params = init_params(k_p, Din, Dh, Dout)
    ref = mlp_ref(x, params)

    # f32 path (exact erf GELU, explicit HIGHEST-precision matmuls)
    packed_f32 = pack_mlp_params(params, compute_dtype=jnp.float32)
    out = jax.block_until_ready(mlp_forward(x, packed_f32))
    assert out.shape == (B, L, Dout), out.shape
    assert jnp.allclose(out, ref, atol=1e-4, rtol=1e-4), \
        float(jnp.max(jnp.abs(out - ref)))

    # bf16 MXU path (bf16 operands, f32 accumulation) — looser tolerance
    packed_bf16 = pack_mlp_params(params, compute_dtype=jnp.bfloat16)
    out_bf = jax.block_until_ready(mlp_forward(x, packed_bf16))
    assert out_bf.shape == (B, L, Dout), out_bf.shape
    assert jnp.allclose(out_bf.astype(jnp.float32), ref, atol=6e-2, rtol=6e-2), \
        float(jnp.max(jnp.abs(out_bf.astype(jnp.float32) - ref)))

    print("KERNEL_OK")
</pallas_src>

<mosaic_0001>
module attributes {stable_mosaic.version = 11 : i64} {
  func.func @_mlp_kernel(%arg0: i32, %arg1: i32, %arg2: memref<8x16xf32, #tpu.memory_space<vmem>>, %arg3: memref<16x256xf32, #tpu.memory_space<vmem>>, %arg4: memref<1x256xf32, #tpu.memory_space<vmem>>, %arg5: memref<256x256xf32, #tpu.memory_space<vmem>>, %arg6: memref<1x256xf32, #tpu.memory_space<vmem>>, %arg7: memref<8x256xf32, #tpu.memory_space<vmem>>) attributes {dimension_semantics = [#tpu.dimension_semantics<parallel>, #tpu.dimension_semantics<parallel>], iteration_bounds = array<i64: 2, 1>, scalar_prefetch = 0 : i64, scratch_operands = 0 : i64, tpu.core_type = #tpu.core_type<tc>, window_params = [{transform_indices = @transform_0, window_bounds = array<i64: 8, 16>}, {pipeline_mode = #tpu.pipeline_mode<synchronous>, transform_indices = @transform_1, window_bounds = array<i64: 16, 256>}, {pipeline_mode = #tpu.pipeline_mode<synchronous>, transform_indices = @transform_2, window_bounds = array<i64: 1, 256>}, {pipeline_mode = #tpu.pipeline_mode<synchronous>, transform_indices = @transform_3, window_bounds = array<i64: 256, 256>}, {pipeline_mode = #tpu.pipeline_mode<synchronous>, transform_indices = @transform_4, window_bounds = array<i64: 1, 256>}, {transform_indices = @transform_5, window_bounds = array<i64: 8, 256>}]} {
    %c0 = arith.constant 0 : index
    %c0_0 = arith.constant 0 : index
    %0 = vector.load %arg2[%c0, %c0_0] : memref<8x16xf32, #tpu.memory_space<vmem>>, vector<8x16xf32>
    %c0_1 = arith.constant 0 : index
    %c0_2 = arith.constant 0 : index
    %1 = vector.load %arg3[%c0_1, %c0_2] : memref<16x256xf32, #tpu.memory_space<vmem>>, vector<16x256xf32>
    %cst = arith.constant dense<0.000000e+00> : vector<8x256xf32>
    %2 = tpu.matmul %0, %1, %cst {dimension_numbers = #tpu.dot_dimension_numbers<[1], [0], [0], [1], [0, 0, 1, 1], [], []>, precision = #tpu.contract_precision<fp32>} : vector<8x16xf32>, vector<16x256xf32>, vector<8x256xf32> -> vector<8x256xf32>
    %c0_3 = arith.constant 0 : index
    %c0_4 = arith.constant 0 : index
    %3 = vector.load %arg4[%c0_3, %c0_4] : memref<1x256xf32, #tpu.memory_space<vmem>>, vector<1x256xf32>
    %4 = vector.broadcast %3 : vector<1x256xf32> to vector<8x256xf32>
    %5 = arith.addf %2, %4 : vector<8x256xf32>
    %cst_5 = arith.constant 5.000000e-01 : f32
    %6 = vector.broadcast %cst_5 : f32 to vector<8x256xf32>
    %7 = arith.mulf %6, %5 : vector<8x256xf32>
    %cst_6 = arith.constant 0.707106769 : f32
    %8 = vector.broadcast %cst_6 : f32 to vector<8x256xf32>
    %9 = arith.mulf %5, %8 : vector<8x256xf32>
    %10 = math.erf %9 : vector<8x256xf32>
    %cst_7 = arith.constant 1.000000e+00 : f32
    %11 = vector.broadcast %cst_7 : f32 to vector<8x256xf32>
    %12 = arith.addf %11, %10 : vector<8x256xf32>
    %13 = arith.mulf %7, %12 : vector<8x256xf32>
    %c0_8 = arith.constant 0 : index
    %c0_9 = arith.constant 0 : index
    %14 = vector.load %arg5[%c0_8, %c0_9] : memref<256x256xf32, #tpu.memory_space<vmem>>, vector<256x256xf32>
    %cst_10 = arith.constant dense<0.000000e+00> : vector<8x256xf32>
    %15 = tpu.matmul %13, %14, %cst_10 {dimension_numbers = #tpu.dot_dimension_numbers<[1], [0], [0], [1], [0, 0, 1, 1], [], []>, precision = #tpu.contract_precision<fp32>} : vector<8x256xf32>, vector<256x256xf32>, vector<8x256xf32> -> vector<8x256xf32>
    %c0_11 = arith.constant 0 : index
    %c0_12 = arith.constant 0 : index
    %16 = vector.load %arg6[%c0_11, %c0_12] : memref<1x256xf32, #tpu.memory_space<vmem>>, vector<1x256xf32>
    %17 = vector.broadcast %16 : vector<1x256xf32> to vector<8x256xf32>
    %18 = arith.addf %15, %17 : vector<8x256xf32>
    %c0_13 = arith.constant 0 : index
    %c0_14 = arith.constant 0 : index
    %19 = vector.load %arg7[%c0_13, %c0_14] : memref<8x256xf32, #tpu.memory_space<vmem>>, vector<8x256xf32>
    tpu.vector_store %arg7[%c0_13, %c0_14], %18 {strides = array<i32>} : memref<8x256xf32, #tpu.memory_space<vmem>>, vector<8x256xf32>,
    return
  }
  func.func @transform_0(%arg0: i32, %arg1: i32) -> (i32, i32) {
    %c0_i32 = arith.constant 0 : i32
    %c0_i32_0 = arith.constant 0 : i32
    return %arg0, %c0_i32 : i32, i32
  }
  func.func @transform_1(%arg0: i32, %arg1: i32) -> (i32, i32) {
    %c0_i32 = arith.constant 0 : i32
    %c0_i32_0 = arith.constant 0 : i32
    %c0_i32_1 = arith.constant 0 : i32
    return %c0_i32, %c0_i32_0 : i32, i32
  }
  func.func @transform_2(%arg0: i32, %arg1: i32) -> (i32, i32) {
    %c0_i32 = arith.constant 0 : i32
    %c0_i32_0 = arith.constant 0 : i32
    %c0_i32_1 = arith.constant 0 : i32
    return %c0_i32, %c0_i32_0 : i32, i32
  }
  func.func @transform_3(%arg0: i32, %arg1: i32) -> (i32, i32) {
    %c0_i32 = arith.constant 0 : i32
    %c0_i32_0 = arith.constant 0 : i32
    return %c0_i32, %arg1 : i32, i32
  }
  func.func @transform_4(%arg0: i32, %arg1: i32) -> (i32, i32) {
    %c0_i32 = arith.constant 0 : i32
    %c0_i32_0 = arith.constant 0 : i32
    return %c0_i32, %arg1 : i32, i32
  }
  func.func @transform_5(%arg0: i32, %arg1: i32) -> (i32, i32) {
    %c0_i32 = arith.constant 0 : i32
    return %arg0, %arg1 : i32, i32
  }
}

module attributes {stable_mosaic.version = 11 : i64} {
  func.func @_mlp_kernel(%arg0: i32, %arg1: i32, %arg2: memref<8x16xf32, #tpu.memory_space<vmem>>, %arg3: memref<16x256xf32, #tpu.memory_space<vmem>>, %arg4: memref<1x256xf32, #tpu.memory_space<vmem>>, %arg5: memref<256x256xf32, #tpu.memory_space<vmem>>, %arg6: memref<1x256xf32, #tpu.memory_space<vmem>>, %arg7: memref<8x256xf32, #tpu.memory_space<vmem>>) attributes {dimension_semantics = [#tpu.dimension_semantics<parallel>, #tpu.dimension_semantics<parallel>], iteration_bounds = array<i64: 2, 1>, scalar_prefetch = 0 : i64, scratch_operands = 0 : i64, tpu.core_type = #tpu.core_type<tc>, window_params = [{transform_indices = @transform_0, window_bounds = array<i64: 8, 16>}, {pipeline_mode = #tpu.pipeline_mode<synchronous>, transform_indices = @transform_1, window_bounds = array<i64: 16, 256>}, {pipeline_mode = #tpu.pipeline_mode<synchronous>, transform_indices = @transform_2, window_bounds = array<i64: 1, 256>}, {transform_indices = @transform_3, window_bounds = array<i64: 256, 256>}, {transform_indices = @transform_4, window_bounds = array<i64: 1, 256>}, {transform_indices = @transform_5, window_bounds = array<i64: 8, 256>}]} {
    %c0 = arith.constant 0 : index
    %c0_0 = arith.constant 0 : index
    %0 = vector.load %arg2[%c0, %c0_0] : memref<8x16xf32, #tpu.memory_space<vmem>>, vector<8x16xf32>
    %c0_1 = arith.constant 0 : index
    %c0_2 = arith.constant 0 : index
    %1 = vector.load %arg3[%c0_1, %c0_2] : memref<16x256xf32, #tpu.memory_space<vmem>>, vector<16x256xf32>
    %cst = arith.constant dense<0.000000e+00> : vector<8x256xf32>
    %2 = tpu.matmul %0, %1, %cst {dimension_numbers = #tpu.dot_dimension_numbers<[1], [0], [0], [1], [0, 0, 1, 1], [], []>, precision = #tpu.contract_precision<fp32>} : vector<8x16xf32>, vector<16x256xf32>, vector<8x256xf32> -> vector<8x256xf32>
    %c0_3 = arith.constant 0 : index
    %c0_4 = arith.constant 0 : index
    %3 = vector.load %arg4[%c0_3, %c0_4] : memref<1x256xf32, #tpu.memory_space<vmem>>, vector<1x256xf32>
    %4 = vector.broadcast %3 : vector<1x256xf32> to vector<8x256xf32>
    %5 = arith.addf %2, %4 : vector<8x256xf32>
    %cst_5 = arith.constant 5.000000e-01 : f32
    %6 = vector.broadcast %cst_5 : f32 to vector<8x256xf32>
    %7 = arith.mulf %6, %5 : vector<8x256xf32>
    %cst_6 = arith.constant 0.707106769 : f32
    %8 = vector.broadcast %cst_6 : f32 to vector<8x256xf32>
    %9 = arith.mulf %5, %8 : vector<8x256xf32>
    %10 = math.erf %9 : vector<8x256xf32>
    %cst_7 = arith.constant 1.000000e+00 : f32
    %11 = vector.broadcast %cst_7 : f32 to vector<8x256xf32>
    %12 = arith.addf %11, %10 : vector<8x256xf32>
    %13 = arith.mulf %7, %12 : vector<8x256xf32>
    %c0_8 = arith.constant 0 : index
    %c0_9 = arith.constant 0 : index
    %14 = vector.load %arg5[%c0_8, %c0_9] : memref<256x256xf32, #tpu.memory_space<vmem>>, vector<256x256xf32>
    %cst_10 = arith.constant dense<0.000000e+00> : vector<8x256xf32>
    %15 = tpu.matmul %13, %14, %cst_10 {dimension_numbers = #tpu.dot_dimension_numbers<[1], [0], [0], [1], [0, 0, 1, 1], [], []>, precision = #tpu.contract_precision<fp32>} : vector<8x256xf32>, vector<256x256xf32>, vector<8x256xf32> -> vector<8x256xf32>
    %c0_11 = arith.constant 0 : index
    %c0_12 = arith.constant 0 : index
    %16 = vector.load %arg6[%c0_11, %c0_12] : memref<1x256xf32, #tpu.memory_space<vmem>>, vector<1x256xf32>
    %17 = vector.broadcast %16 : vector<1x256xf32> to vector<8x256xf32>
    %18 = arith.addf %15, %17 : vector<8x256xf32>
    %c0_13 = arith.constant 0 : index
    %c0_14 = arith.constant 0 : index
    %19 = vector.load %arg7[%c0_13, %c0_14] : memref<8x256xf32, #tpu.memory_space<vmem>>, vector<8x256xf32>
    tpu.vector_store %arg7[%c0_13, %c0_14], %18 {strides = array<i32>} : memref<8x256xf32, #tpu.memory_space<vmem>>, vector<8x256xf32>,
    return
  }
  func.func @transform_0(%arg0: i32, %arg1: i32) -> (i32, i32) {
    %c0_i32 = arith.constant 0 : i32
    %c0_i32_0 = arith.constant 0 : i32
    return %arg0, %c0_i32 : i32, i32
  }
  func.func @transform_1(%arg0: i32, %arg1: i32) -> (i32, i32) {
    %c0_i32 = arith.constant 0 : i32
    %c0_i32_0 = arith.constant 0 : i32
    %c0_i32_1 = arith.constant 0 : i32
    return %c0_i32, %c0_i32_0 : i32, i32
  }
  func.func @transform_2(%arg0: i32, %arg1: i32) -> (i32, i32) {
    %c0_i32 = arith.constant 0 : i32
    %c0_i32_0 = arith.constant 0 : i32
    %c0_i32_1 = arith.constant 0 : i32
    return %c0_i32, %c0_i32_0 : i32, i32
  }
  func.func @transform_3(%arg0: i32, %arg1: i32) -> (i32, i32) {
    %c0_i32 = arith.constant 0 : i32
    %c0_i32_0 = arith.constant 0 : i32
    return %c0_i32, %arg1 : i32, i32
  }
  func.func @transform_4(%arg0: i32, %arg1: i32) -> (i32, i32) {
    %c0_i32 = arith.constant 0 : i32
    %c0_i32_0 = arith.constant 0 : i32
    return %c0_i32, %arg1 : i32, i32
  }
  func.func @transform_5(%arg0: i32, %arg1: i32) -> (i32, i32) {
    %c0_i32 = arith.constant 0 : i32
    return %arg0, %arg1 : i32, i32
  }
}

</mosaic_0001>

<bundles_post_ra>
// kernel: tpu_custom_call.1
= control target key start
LH: loop header
LB: loop body
LE: loop exit
PB: predicated region body
PF: predicated region fallthrough
CT: control target
= control target key end

     0   :  { %s3931_s0 = inlined_call_operand.hbm [shape: f32[16,16], index: 0, kind: input, shape index: {}]   ;;  %s3932_s1 = inlined_call_operand.hbm [shape: f32[16,256], index: 1, kind: input, shape index: {}]   ;;  %s3933_s2 = inlined_call_operand.vmem [shape: f32[1,256], index: 2, kind: input, shape index: {}]   ;;  %s3934_s3 = inlined_call_operand.hbm [shape: f32[256,256], index: 3, kind: input, shape index: {}]   ;;  %s3935_s4 = inlined_call_operand.vmem [shape: f32[1,256], index: 4, kind: input, shape index: {}]   ;;  %s3936_s5 = inlined_call_operand.hbm [shape: f32[16,256], index: 5, kind: output, shape index: {}]  }
   0x1   :  { %4169 = sst [smem:[#allocation103_spill]] %s3932_s1 }
   0x2   :  { %10 = vsyncpa [#allocation3], 0 }
   0x3   :  { %12 = vsyncpa [#allocation3 + $0x1], 0 }
   0x4   :  { %13 = vsyncpa [#allocation6], 0 }
   0x5   :  { %14 = vsyncpa [#allocation4], 0 }
   0x6   :  { %16 = vsyncpa [#allocation4 + $0x1], 0  ;;  %s2640_s18 = smov 0   ;;  %s2642_s19 = smov 0  }
   0x7   :  { %s2644_s20 = smov 0   ;;  %s2646_s21 = smov 0  }
   0x8   :  { %s2648_s22 = smov 0   ;;  %s2650_s23 = smov 0  }
   0x9 LB: > { %s2327_s24 = sadd.s32 4294967295, %s2601_s23   ;;  %s2328_s25 = sadd.s32 4294967294, %s2601_s23   ;;  %s2601_s23 = sphi %s2650_s23, %s22_s23   ;;  %s2597_s22 = sphi %s2648_s22, %s4515_s22   ;;  %s2593_s21 = sphi %s2646_s21, %s4514_s21   ;;  %s2589_s20 = sphi %s2644_s20, %s4513_s20   ;;  %s2585_s19 = sphi %s2642_s19, %s4512_s19   ;;  %s2581_s18 = sphi %s2640_s18, %s4511_s18  }
   0xa   : > { %p54_p0 = scmp.ne.s32.totalorder %s2585_s19, %s2581_s18  ;;  %p2674_p1 = scmp.eq.s32.totalorder %s2327_s24, 0 }
   0xb   : > { %p2678_p2 = scmp.eq.s32.totalorder %s2327_s24, 1  ;;  %p180_p3 = scmp.eq.s32.totalorder %s2328_s25, 1 }
   0xc   : > { %s4170_s26 = scalar_select %p2674_p1, 1, 0 }
   0xd   : > { %p2684_p4 = por %p2674_p1, %p54_p0  ;;  %p2329_p5 = scmp.ge.s32.totalorder %s2601_s23, 1 }
   0xe   : > { %p2689_p6 = por %p180_p3, %p54_p0  ;;  %p187_p7 = scmp.lt.s32.totalorder %s2601_s23, 3 }
   0xf   : > { %s4172_s28 = scalar_select %p2684_p4, 1, 0 }
  0x10   : > { %s4173_s29 = scalar_select %p2689_p6, 1, 0 }
  0x11   : > { %p2694_p8 = pnand %p2329_p5, %p187_p7  ;;  %s2603_s6 = smov [#allocation5]  }
  0x12   : > { %s199_s7 = sshll.u32 %s2603_s6, 4  ;;  %s2604_s9 = smov [#allocation7]   ;;  %s200_s7 = int_to_ptr.vmem [resolvable:$true] %s199_s7 }
  0x13   : > { %p2359_p9 = pneg %p2694_p8  ;;  %s218_s10 = sshll.u32 %s2604_s9, 4  ;;  %s219_s10 = int_to_ptr.vmem [resolvable:$true] %s218_s10 }
  0x14   : > { %s2448_s11 = scalar_lea.vmem %s200_s7, 512  ;;  %p2456_p5 = scmp.lt.s32.totalorder %s200_s7, %s200_s7 }
  0x15   : > { %p2703_p11 = pnand %p2359_p9, %p2674_p1  ;;  %p2449_p13 = scmp.ne.s32.totalorder %s200_s7, %s2448_s11 }
  0x16   : > { %p2457_p7 = scmp.lt.s32.totalorder %s2448_s11, %s2448_s11 }
  0x17   : > { %p2439_p12 = pneg %p2703_p11 }
  0x18   : > { %p2458_p10 = por %p2457_p7, %p2456_p5 }
  0x19   : > { %p2451_p0 = pnand %p2449_p13, %p2439_p12 }
  0x1b   : > { %p2452_p3 = pneg %p2451_p0 }
  0x1d   : > { %p2459_p9 = pnand %p2458_p10, %p2452_p3 }
  0x1f   : > { %2462 = shalt.err (!%p2459_p9)
}
  0x20   : > { %s2605_s12 = smov 256   ;;  %s2606_s13 = smov 16  }
  0x21   : > { %s4176_s1 = sld [smem:[#allocation103_spill]]  ;;  %s2474_s16 = scalar_lea.vmem %s219_s10, 8192 }
  0x22   : > { %p2475_p6 = scmp.ne.s32.totalorder %s219_s10, %s2474_s16  ;;  %p2482_p1 = scmp.lt.s32.totalorder %s219_s10, %s219_s10 }
  0x23   : > { %p2483_p4 = scmp.lt.s32.totalorder %s2474_s16, %s2474_s16 }
  0x24   : > { %p2477_p13 = pnand %p2475_p6, %p2439_p12 }
  0x25   : > { %p2484_p5 = por %p2483_p4, %p2482_p1 }
  0x26   : > { %p2478_p0 = pneg %p2477_p13 }
  0x27   : > { %2362 = dma.hbm_to_vmem [thread:$0]  (!%p2703_p11), %s4176_s1, 512, %s200_s7, [#allocation6], %s2605_s12, %s2605_s12, %s2606_s13  }
  0x28   : > { %p2485_p10 = pnand %p2484_p5, %p2478_p0 }
  0x2a   : > { %2488 = shalt.err (!%p2485_p10)
}
  0x2b   : > { %2365 = dma.hbm_to_vmem [thread:$0]  (!%p2703_p11), %s3934_s3, 8192, %s219_s10, [#allocation6], %s2605_s12, %s2605_s12, %s2606_s13  }
  0x2c   : > { %s34_s25 = sadd.s32 1, %s2597_s22  ;;  %s41_s6 = sadd.s32 1, %s2589_s20 }
  0x2d   : > { %p36_p1 = scmp.ge.s32.totalorder %s34_s25, 2  ;;  %p48_p4 = scmp.ne.s32.totalorder %s2589_s20, %s2585_s19 }
  0x2e   : > { %p49_p6 = scmp.eq.s32.totalorder %s2601_s23, 0  ;;  %p2376_p12 = scmp.lt.s32.totalorder %s2601_s23, 2 }
  0x2f   : > { %s4517_s25 = smov (%p36_p1, %s34_s25), 0  ;;  %p2735_p7 = por %p2678_p2, %p48_p4 }
  0x30   : > { %p50_p3 = por %p49_p6, %p48_p4  ;;  %s38_s8 = ssub.s32 %s2597_s22, %s4517_s25 }
  0x31   : > { %s240_s9 = sand.u32 1, %s2589_s20   ;;  %p39_p9 = scmp.eq.s32.totalorder %s38_s8, 0 }
  0x32   : > { %s2334_s10 = sshll.u32 %s240_s9, 3  ;;  %s2335_s11 = sshll.u32 %s2597_s22, 7 }
  0x33   : > { %s2744_s12 = scalar_select %p39_p9, %s2589_s20, %s41_s6  }
  0x34   : > { %s249_s15 = scalar_lea.hbm %s3931_s0, %s2335_s11  ;;  %s244_s16 = scalar_lea.vmem [#allocation2], %s2334_s10 }
  0x35   : > { %s251_s17 = sshll.u32 %s244_s16, 4  ;;  %p2751_p11 = pnand %p2376_p12, %p50_p3  ;;  %s252_s17 = int_to_ptr.vmem [resolvable:$true] %s251_s17 }
  0x36   : > { %s241_s24 = scalar_lea.sflag [#allocation3], %s240_s9  ;;  %s2502_s8 = scalar_lea.vmem %s252_s17, 128 }
  0x37   : > { %p2491_p2 = pneg %p2751_p11  ;;  %p2503_p13 = scmp.ne.s32.totalorder %s252_s17, %s2502_s8 }
  0x38   : > { %s2607_s6 = smov [#allocation2]  }
  0x39   : > { %p2505_p0 = pnand %p2503_p13, %p2491_p2  ;;  %s2507_s1 = sshll.u32 %s2607_s6, 4  ;;  %s2508_s1 = int_to_ptr.vmem [resolvable:$false] %s2507_s1 }
  0x3a   : > { %s2509_s11 = scalar_lea.vmem %s2508_s1, 256  ;;  %p2510_p10 = scmp.lt.s32.totalorder %s252_s17, %s2508_s1 }
  0x3b   : > { %p2506_p5 = pneg %p2505_p0  ;;  %p2511_p1 = scmp.lt.s32.totalorder %s2509_s11, %s2502_s8 }
  0x3d   : > { %p2512_p4 = por %p2511_p1, %p2510_p10 }
  0x3f   : > { %p2513_p6 = pnand %p2512_p4, %p2506_p5 }
  0x41   : > { %2516 = shalt.err (!%p2513_p6)
}
  0x42   : > { %2369 = dma.hbm_to_vmem [thread:$0]  (!%p2751_p11), %s249_s15, 128, %s252_s17, %s241_s24  }
  0x43   : > { %260 = sbr.rel (%p2694_p8) target bundleno = 676 (0x2a4), region = 40 }
  0x48   : > { %s2762_s9 = sand.u32 1, %s2585_s19   ;;  %p4179_p12 = scmp.ne.s32.totalorder %s4172_s28, 0 }
  0x49   : > { %s2337_s10 = sshll.u32 %s2762_s9, 3  ;;  %s263_s13 = scalar_lea.sflag [#allocation3], %s2762_s9 }
  0x4a   : > { %s266_s14 = scalar_lea.vmem [#allocation2], %s2337_s10 }
  0x4b   : > { %2568 = dma.done.wait (%p4179_p12), %s263_s13, 128  }
  0x4c   : > { %2570 = vsyncadd (%p4179_p12), %s263_s13, 4294967168  ;;  %p4180_p3 = scmp.ne.s32.totalorder %s4170_s26, 0 }
  0x4e   : > { %2572 = dma.done.wait (%p4180_p3), [#allocation6], 8704  }
  0x4f   : > { %2574 = vsyncadd (%p4180_p3), [#allocation6], 4294958592  ;;  %v2608_v0 = vmov 0.0   ;;  %vm329_vm0 = vcmask 130048   ;;  %v316_v1 = vld [vmem:[#allocation5 + $0x18] sm:$0xff]  ;;  %v315_v2 = vld [vmem:[#allocation5 + $0x10] sm:$0xff] }
  0x50   : > { %401 = vmatprep.mubr.f32.mxu0 %v2608_v0  ;;  %497 = vmatprep.mubr.f32.mxu1 %v2608_v0  ;;  %v314_v3 = vld [vmem:[#allocation5 + $0x8] sm:$0xff]  ;;  %v2776_v4 = vand.u32 4294901760, %v316_v1  ;;  %v2778_v5 = vand.u32 4294901760, %v315_v2  ;;  %v313_v7 = vld [vmem:[#allocation5] sm:$0xff]  ;;  %v312_v8 = vld [vmem:[%s266_s14] sm:$0xff]  ;;  %s2340_s15 = sshll.u32 %s2762_s9, 4 }
  0x51   : > { %v2780_v6 = vand.u32 4294901760, %v314_v3  ;;  %v865_v9 = vld [vmem:[#allocation7 + $0xf8] sm:$0xff]  ;;  %v2782_v10 = vand.u32 4294901760, %v313_v7  ;;  %v331_v11 = vsel %vm329_vm0, %v312_v8, 0  ;;  %v864_v13 = vld [vmem:[#allocation7 + $0xf0] sm:$0xff]  ;;  %v863_v14 = vld [vmem:[#allocation7 + $0xe8] sm:$0xff] }
  0x52   : > { %v2784_v12 = vand.u32 4294901760, %v865_v9  ;;  %362 = vmatprep.subr.mxu0 %v2776_v4  ;;  %v2788_v15 = vsub.f32 %v316_v1, %v2776_v4  ;;  %v2790_v16 = vand.u32 4294901760, %v331_v11  ;;  %v2793_v17 = vsub.f32 %v315_v2, %v2778_v5  ;;  %v862_v37 = vld [vmem:[#allocation7 + $0xe0] sm:$0xff]  ;;  %v861_v38 = vld [vmem:[#allocation7 + $0xd8] sm:$0xff]  ;;  %v860_v39 = vld [vmem:[#allocation7 + $0xd0] sm:$0xff]  ;;  %s2346_s16 = sshll.u32 %s2593_s21, 8 }
  0x53   : > { %v2796_v18 = vsub.f32 %v314_v3, %v2780_v6  ;;  %364 = vmatpush1.msra.mxu0 %v2778_v5  ;;  %v2800_v19 = vsub.f32 %v313_v7, %v2782_v10  ;;  %v2805_v21 = vand.u32 4294901760, %v864_v13  ;;  %v2807_v22 = vand.u32 4294901760, %v863_v14  ;;  %v859_v44 = vld [vmem:[#allocation7 + $0xc8] sm:$0xff]  ;;  %v858_v45 = vld [vmem:[#allocation7 + $0xc0] sm:$0xff]  ;;  %v857_v48 = vld [vmem:[#allocation7 + $0xb8] sm:$0xff]  ;;  %s304_s17 = scalar_lea.vmem [#allocation8], %s2340_s15  ;;  %s2211_s6 = scalar_lea.hbm %s3936_s5, %s2346_s16 }
  0x54   : > { %4181 = vst [vmem:[#allocation12_spill] sm:$0xff] %v2784_v12  ;;  %v2803_v20 = vsub.f32 %v865_v9, %v2784_v12  ;;  %366 = vmatprep.subr.mxu0 %v2780_v6  ;;  %v443_v23 = vand.u32 4294901760, %v2788_v15  ;;  %v2812_v24 = vsub.f32 %v331_v11, %v2790_v16  ;;  %v449_v25 = vand.u32 4294901760, %v2793_v17  ;;  %v856_v53 = vld [vmem:[#allocation7 + $0xb0] sm:$0xff]  ;;  %v855_v54 = vld [vmem:[#allocation7 + $0xa8] sm:$0xff]  ;;  %s2213_s27 = sshll.u32 %s304_s17, 4  ;;  %s2214_s27 = int_to_ptr.vmem [resolvable:$true] %s2213_s27 }
  0x55   : > { %v455_v26 = vand.u32 4294901760, %v2796_v18  ;;  %368 = vmatpush1.msra.mxu0 %v2782_v10  ;;  %v461_v27 = vand.u32 4294901760, %v2800_v19  ;;  %v2819_v28 = vsub.f32 %v864_v13, %v2805_v21  ;;  %v2822_v29 = vsub.f32 %v863_v14, %v2807_v22  ;;  %s2197_s11 = scalar_lea.sflag [#allocation4], %s2762_s9  ;;  %s2517_s10 = scalar_lea.vmem %s2214_s27, 256 }
  0x56   : > { %4182 = vst [vmem:[#allocation13_spill] sm:$0xff] %v2803_v20  ;;  %v444_v30 = vsub.f32 %v2788_v15, %v443_v23  ;;  %v404_v31 = vand.u32 4294901760, %v2812_v24  ;;  %v450_v32 = vsub.f32 %v2793_v17, %v449_v25  ;;  %535 = vmatprep.subr.mxu0 %v2788_v15  ;;  %v3954_v35 = vand.u32 4294901760, %v2803_v20  ;;  %p2518_p8 = scmp.ne.s32.totalorder %s2214_s27, %s2517_s10  ;;  %s2609_s21 = smov [#allocation8]  }
  0x57   : > { %v456_v33 = vsub.f32 %v2796_v18, %v455_v26  ;;  %v462_v34 = vsub.f32 %v2800_v19, %v461_v27  ;;  %v3952_v36 = vand.u32 4294901760, %v2819_v28  ;;  %v3949_v47 = vand.u32 4294901760, %v2822_v29  ;;  %s2521_s13 = sshll.u32 %s2609_s21, 4  ;;  %s2522_s13 = int_to_ptr.vmem [resolvable:$false] %s2521_s13 }
  0x58   : > { %v445_v40 = vand.u32 4294901760, %v444_v30  ;;  %v405_v41 = vsub.f32 %v2812_v24, %v404_v31  ;;  %v451_v42 = vand.u32 4294901760, %v450_v32  ;;  %v2844_v50 = vand.u32 4294901760, %v862_v37  ;;  %p2519_p9 = pnand %p2518_p8, %p2735_p7  ;;  %s2523_s14 = scalar_lea.vmem %s2522_s13, 512 }
  0x59   : > { %v457_v43 = vand.u32 4294901760, %v456_v33  ;;  %v463_v46 = vand.u32 4294901760, %v462_v34  ;;  %v2846_v51 = vand.u32 4294901760, %v861_v38  ;;  %v2848_v52 = vand.u32 4294901760, %v860_v39  ;;  %p2524_p2 = scmp.lt.s32.totalorder %s2214_s27, %s2522_s13  ;;  %p2525_p13 = scmp.lt.s32.totalorder %s2523_s14, %s2517_s10 }
  0x5a   : > { %446 = vmatprep.subr.mxu1 %v445_v40  ;;  %v406_v49 = vand.u32 4294901760, %v405_v41  ;;  %v2853_v55 = vsub.f32 %v2803_v20, %v3954_v35  ;;  %v2858_v56 = vsub.f32 %v2819_v28, %v3952_v36  ;;  %v2860_v57 = vand.u32 4294901760, %v859_v44  ;;  %v852_v40 = vld [vmem:[#allocation7 + $0x90] sm:$0xff]  ;;  %p2520_p11 = pneg %p2519_p9 }
  0x5b   : > { %452 = vmatpush1.msra.mxu1 %v451_v42  ;;  %v2862_v58 = vand.u32 4294901760, %v858_v45  ;;  %v2865_v59 = vsub.f32 %v862_v37, %v2844_v50  ;;  %v2868_v60 = vsub.f32 %v861_v38, %v2846_v51  ;;  %v2871_v61 = vsub.f32 %v860_v39, %v2848_v52  ;;  %v854_v38 = vld [vmem:[#allocation7 + $0xa0] sm:$0xff]  ;;  %v853_v39 = vld [vmem:[#allocation7 + $0x98] sm:$0xff]  ;;  %p2526_p0 = por %p2525_p13, %p2524_p2 }
  0x5c   : > { %407 = vmatmul.mubr.f32.vlgmr.msra.gmra.mxu0 %v406_v49  ;;  %458 = vmatprep.subr.mxu1 %v457_v43  ;;  %v2873_v62 = vand.u32 4294901760, %v857_v48  ;;  %v2877_v63 = vsub.f32 %v859_v44, %v2860_v57  ;;  %v2882_v2 = vand.u32 4294901760, %v856_v53  ;;  %v2884_v3 = vand.u32 4294901760, %v855_v54  ;;  %v851_v43 = vld [vmem:[#allocation7 + $0x88] sm:$0xff]  ;;  %v850_v44 = vld [vmem:[#allocation7 + $0x80] sm:$0xff] }
  0x5d   : > { %538 = vmatpush1.msra.mxu0 %v2793_v17  ;;  %464 = vmatpush1.msra.mxu1 %v463_v46  ;;  %v2880_v1 = vsub.f32 %v858_v45, %v2862_v58  ;;  %v2891_v7 = vsub.f32 %v2822_v29, %v3949_v47  ;;  %v3947_v8 = vand.u32 4294901760, %v2865_v59  ;;  %v3946_v9 = vand.u32 4294901760, %v2868_v60  ;;  %v842_v47 = vld [vmem:[#allocation7 + $0x40] sm:$0xff]  ;;  %p2527_p5 = pnand %p2526_p0, %p2520_p11 }
  0x5e   : > { %541 = vmatprep.subr.mxu0 %v2796_v18  ;;  %499 = vmatmul.mubr.f32.vlgmr.msra.gmra.mxu1 %v2790_v16  ;;  %v2896_v11 = vsub.f32 %v857_v48, %v2873_v62  ;;  %v3945_v13 = vand.u32 4294901760, %v2871_v61  ;;  %v3942_v14 = vand.u32 4294901760, %v2877_v63  ;;  %v2904_v32 = vsub.f32 %v856_v53, %v2882_v2  ;;  %v849_v48 = vld [vmem:[#allocation7 + $0x78] sm:$0xff] }
  0x5f   : > { %544 = vmatpush1.msra.mxu0 %v2800_v19  ;;  %577 = vmatprep.mubr.f32.mxu0 %v2608_v0  ;;  %v3940_v30 = vand.u32 4294901760, %v2880_v1  ;;  %v2909_v33 = vsub.f32 %v855_v54, %v2884_v3  ;;  %v2917_v34 = vsub.f32 %v2865_v59, %v3947_v8  ;;  %v1059_v41 = vand.u32 4294901760, %v2853_v55 }
  0x60   : > { %615 = vmatprep.subr.mxu1 %v2776_v4  ;;  %580 = vmatmul.mubr.f32.vlgmr.msra.gmra.mxu0 %v2812_v24  ;;  %v3941_v37 = vand.u32 4294901760, %v2896_v11  ;;  %v1065_v15 = vand.u32 4294901760, %v2858_v56  ;;  %v2929_v42 = vsub.f32 %v2868_v60, %v3946_v9  ;;  %v2936_v17 = vsub.f32 %v2871_v61, %v3945_v13  ;;  %v848_v56 = vld [vmem:[#allocation7 + $0x70] sm:$0xff] }
  0x61   : > { %617 = vmatpush1.msra.mxu1 %v2778_v5  ;;  %695 = vmatprep.subr.mxu0 %v443_v23  ;;  %v1071_v23 = vand.u32 4294901760, %v2891_v7  ;;  %v2946_v45 = vsub.f32 %v2880_v1, %v3940_v30  ;;  %v3943_v46 = vand.u32 4294901760, %v2904_v32  ;;  %v3944_v49 = vand.u32 4294901760, %v2909_v33  ;;  %v847_v7 = vld [vmem:[#allocation7 + $0x68] sm:$0xff] }
  0x62   : > { %619 = vmatprep.subr.mxu1 %v2780_v6  ;;  %699 = vmatpush1.msra.mxu0 %v449_v25  ;;  %v2941_v25 = vsub.f32 %v2877_v63, %v3942_v14  ;;  %v2954_v53 = vand.u32 4294901760, %v854_v38  ;;  %v2956_v54 = vand.u32 4294901760, %v853_v39  ;;  %v2958_v55 = vand.u32 4294901760, %v852_v40 }
  0x63   : > { %621 = vmatpush1.msra.mxu1 %v2782_v10  ;;  %654 = vmatprep.mubr.f32.mxu1 %v2608_v0  ;;  %v1077_v18 = vand.u32 4294901760, %v2917_v34  ;;  %v2967_v24 = vsub.f32 %v2896_v11, %v3941_v37  ;;  %v2984_v30 = vand.u32 4294901760, %v849_v48  ;;  %v2996_v14 = vand.u32 4294901760, %v847_v7 }
  0x64   : > { %703 = vmatprep.subr.mxu0 %v455_v26  ;;  %658 = vmatmul.mubr.f32.vlgmr.msra.gmra.mxu1 %v404_v31  ;;  %v2969_v26 = vand.u32 4294901760, %v851_v43  ;;  %v2971_v31 = vand.u32 4294901760, %v850_v44  ;;  %v2976_v19 = vsub.f32 %v854_v38, %v2954_v53  ;;  %v2982_v34 = vsub.f32 %v852_v40, %v2958_v55 }
  0x65   : > { %707 = vmatpush1.msra.mxu0 %v461_v27  ;;  %740 = vmatprep.mubr.f32.mxu0 %v2608_v0  ;;  %v2979_v27 = vsub.f32 %v853_v39, %v2956_v54  ;;  %v2994_v38 = vand.u32 4294901760, %v848_v56  ;;  %v1089_v13 = vand.u32 4294901760, %v2936_v17  ;;  %v1095_v9 = vand.u32 4294901760, %v2941_v25  ;;  %v844_v17 = vld [vmem:[#allocation7 + $0x50] sm:$0xff] }
  0x66   : > { %777 = vmatprep.subr.mxu1 %v2776_v4  ;;  %742 = vmatmul.mubr.f32.vlgmr.msra.gmra.mxu0 %v2790_v16  ;;  %4184 = vst [vmem:[#allocation15_spill] sm:$0xff] %v2982_v34  ;;  %v2989_v37 = vsub.f32 %v851_v43, %v2969_v26  ;;  %v2992_v4 = vsub.f32 %v850_v44, %v2971_v31  ;;  %v3948_v39 = vand.u32 4294901760, %v2976_v19  ;;  %v1101_v8 = vand.u32 4294901760, %v2946_v45 }
  0x67   : > { %4183 = vst [vmem:[#allocation14_spill] sm:$0xff] %v2979_v27  ;;  %779 = vmatpush1.msra.mxu1 %v2778_v5  ;;  %816 = vmatprep.mubr.f32.mxu1 %v2608_v0  ;;  %v3003_v5 = vsub.f32 %v2904_v32, %v3943_v46  ;;  %v3008_v0 = vsub.f32 %v2909_v33, %v3944_v49  ;;  %v3950_v40 = vand.u32 4294901760, %v2979_v27  ;;  %v1083_v49 = vand.u32 4294901760, %v2929_v42  ;;  %v845_v42 = vld [vmem:[#allocation7 + $0x58] sm:$0xff] }
  0x68   : > { %4185 = vst [vmem:[#allocation16_spill] sm:$0xff] %v2989_v37  ;;  %4186 = vst [vmem:[#allocation17_spill] sm:$0xff] %v2992_v4  ;;  %781 = vmatprep.subr.mxu1 %v2780_v6  ;;  %911 = vmatprep.subr.mxu0 %v2784_v12  ;;  %v3951_v6 = vand.u32 4294901760, %v2982_v34  ;;  %v3953_v43 = vand.u32 4294901760, %v2989_v37  ;;  %v3955_v44 = vand.u32 4294901760, %v2992_v4  ;;  %v3018_v46 = vsub.f32 %v849_v48, %v2984_v30 }
  0x69   : > { %783 = vmatpush1.msra.mxu1 %v2782_v10  ;;  %913 = vmatpush1.msra.mxu0 %v2805_v21  ;;  %v3024_v10 = vsub.f32 %v848_v56, %v2994_v38  ;;  %v1124_v48 = vsub.f32 %v2976_v19, %v3948_v39  ;;  %v1107_v56 = vand.u32 4294901760, %v2967_v24  ;;  %v1119_v25 = vand.u32 4294901760, %v3008_v0  ;;  %v843_v39 = vld [vmem:[#allocation7 + $0x48] sm:$0xff]  ;;  %v841_v0 = vld [vmem:[#allocation7 + $0x38] sm:$0xff] }
  0x6a   : > { %818 = vmatmul.mubr.f32.vlgmr.msra.gmra.mxu1 %v2790_v16  ;;  %1060 = vmatprep.subr.mxu1 %v1059_v41  ;;  %v3033_v16 = vsub.f32 %v847_v7, %v2996_v14  ;;  %v846_v41 = vld [vmem:[#allocation7 + $0x60] sm:$0xff]  ;;  %v1130_v45 = vsub.f32 %v2979_v27, %v3950_v40  ;;  %v1142_v7 = vsub.f32 %v2989_v37, %v3953_v43  ;;  %v3061_v36 = vand.u32 4294901760, %v844_v17  ;;  %v840_v43 = vld [vmem:[#allocation7 + $0x30] sm:$0xff] }
  0x6b   : > { %1066 = vmatpush1.msra.mxu1 %v1065_v15  ;;  %915 = vmatprep.subr.mxu0 %v2807_v22  ;;  %v1113_v15 = vand.u32 4294901760, %v3003_v5  ;;  %v3052_v24 = vsub.f32 %v2992_v4, %v3955_v44  ;;  %v3057_v40 = vand.u32 4294901760, %v846_v41  ;;  %v1125_v35 = vand.u32 4294901760, %v1124_v48 }
  0x6c   : > { %1072 = vmatprep.subr.mxu1 %v1071_v23  ;;  %917 = vmatpush1.msra.mxu0 %v2844_v50  ;;  %v1136_v23 = vsub.f32 %v2982_v34, %v3951_v6  ;;  %v3059_v6 = vand.u32 4294901760, %v845_v42  ;;  %v3065_v5 = vand.u32 4294901760, %v843_v39  ;;  %v3079_v48 = vand.u32 4294901760, %v841_v0 }
  0x6d   : > { %1078 = vmatpush1.msra.mxu1 %v1077_v18  ;;  %919 = vmatprep.subr.mxu0 %v2846_v51  ;;  %v3071_v18 = vsub.f32 %v846_v41, %v3057_v40  ;;  %v1131_v44 = vand.u32 4294901760, %v1130_v45  ;;  %v3088_v41 = vand.u32 4294901760, %v840_v43  ;;  %v4196_v45 = vand.u32 4294901760, %v3033_v16 }
  0x6e   : > { %1084 = vmatprep.subr.mxu1 %v1083_v49  ;;  %921 = vmatpush1.msra.mxu0 %v2848_v52  ;;  %v3067_v49 = vand.u32 4294901760, %v842_v47  ;;  %v3074_v4 = vsub.f32 %v845_v42, %v3059_v6  ;;  %v3083_v37 = vsub.f32 %v843_v39, %v3065_v5  ;;  %v4192_v42 = vand.u32 4294901760, %v3018_v46 }
  0x6f   : > { %1090 = vmatpush1.msra.mxu1 %v1089_v13  ;;  %923 = vmatprep.subr.mxu0 %v2860_v57  ;;  %4187 = vst [vmem:[#allocation18_spill] sm:$0xff] %v3071_v18  ;;  %v3077_v13 = vsub.f32 %v844_v17, %v3061_v36  ;;  %v3097_v34 = vsub.f32 %v841_v0, %v3079_v48  ;;  %v1137_v39 = vand.u32 4294901760, %v1136_v23  ;;  %v1149_v23 = vand.u32 4294901760, %v3052_v24 }
  0x70   : > { %1096 = vmatprep.subr.mxu1 %v1095_v9  ;;  %925 = vmatpush1.msra.mxu0 %v2862_v58  ;;  %4188 = vst [vmem:[#allocation19_spill] sm:$0xff] %v3074_v4  ;;  %4190 = vst [vmem:[#allocation21_spill] sm:$0xff] %v3083_v37  ;;  %v3086_v9 = vsub.f32 %v842_v47, %v3067_v49  ;;  %v1154_v17 = vsub.f32 %v3018_v46, %v4192_v42  ;;  %v4194_v47 = vand.u32 4294901760, %v3024_v10 }
  0x71   : > { %4189 = vst [vmem:[#allocation20_spill] sm:$0xff] %v3077_v13  ;;  %1102 = vmatpush1.msra.mxu1 %v1101_v8  ;;  %927 = vmatprep.subr.mxu0 %v2873_v62  ;;  %4193 = vst [vmem:[#allocation23_spill] sm:$0xff] %v3097_v34  ;;  %v3105_v42 = vsub.f32 %v840_v43, %v3088_v41  ;;  %v1143_v8 = vand.u32 4294901760, %v1142_v7  ;;  %v1166_v0 = vsub.f32 %v3033_v16, %v4196_v45 }
  0x72   : > { %4191 = vst [vmem:[#allocation22_spill] sm:$0xff] %v3086_v9  ;;  %1108 = vmatprep.subr.mxu1 %v1107_v56  ;;  %929 = vmatpush1.msra.mxu0 %v2882_v2  ;;  %v1160_v27 = vsub.f32 %v3024_v10, %v4194_v47  ;;  %v4197_v47 = vand.u32 4294901760, %v3071_v18  ;;  %v4198_v7 = vand.u32 4294901760, %v3074_v4  ;;  %v4202_v43 = vand.u32 4294901760, %v3097_v34 }
  0x73   : > { %1114 = vmatpush1.msra.mxu1 %v1113_v15  ;;  %931 = vmatprep.subr.mxu0 %v2884_v3  ;;  %4195 = vst [vmem:[#allocation24_spill] sm:$0xff] %v3105_v42  ;;  %v4199_v15 = vand.u32 4294901760, %v3077_v13 }
  0x74   : > { %1120 = vmatprep.subr.mxu1 %v1119_v25  ;;  %933 = vmatpush1.msra.mxu0 %v2954_v53  ;;  %v1172_v56 = vsub.f32 %v3071_v18, %v4197_v47  ;;  %v1155_v25 = vand.u32 4294901760, %v1154_v17  ;;  %v1178_v45 = vsub.f32 %v3074_v4, %v4198_v7  ;;  %v1161_v24 = vand.u32 4294901760, %v1160_v27  ;;  %v895_v4 = vld [vmem:[#allocation7 + $0x1e8] sm:$0xff]  ;;  %v892_v18 = vld [vmem:[#allocation7 + $0x1d0] sm:$0xff] }
  0x75   : > { %1126 = vmatpush1.msra.mxu1 %v1125_v35  ;;  %935 = vmatprep.subr.mxu0 %v2956_v54  ;;  %v1184_v47 = vsub.f32 %v3077_v13, %v4199_v15  ;;  %v4200_v17 = vand.u32 4294901760, %v3083_v37  ;;  %v4201_v27 = vand.u32 4294901760, %v3086_v9 }
  0x76   : > { %1132 = vmatprep.subr.mxu1 %v1131_v44  ;;  %937 = vmatpush1.msra.mxu0 %v2958_v55  ;;  %v1167_v44 = vand.u32 4294901760, %v1166_v0  ;;  %v1173_v35 = vand.u32 4294901760, %v1172_v56  ;;  %v1179_v15 = vand.u32 4294901760, %v1178_v45 }
  0x77   : > { %1138 = vmatpush1.msra.mxu1 %v1137_v39  ;;  %939 = vmatprep.subr.mxu0 %v2969_v26  ;;  %v1190_v7 = vsub.f32 %v3083_v37, %v4200_v17  ;;  %v1196_v39 = vsub.f32 %v3086_v9, %v4201_v27  ;;  %v1185_v0 = vand.u32 4294901760, %v1184_v47  ;;  %v4203_v17 = vand.u32 4294901760, %v3105_v42  ;;  %v838_v47 = vld [vmem:[#allocation7 + $0x20] sm:$0xff] }
  0x78   : > { %1144 = vmatprep.subr.mxu1 %v1143_v8  ;;  %941 = vmatpush1.msra.mxu0 %v2971_v31  ;;  %v1202_v8 = vsub.f32 %v3097_v34, %v4202_v43 }
  0x79   : > { %1150 = vmatpush1.msra.mxu1 %v1149_v23  ;;  %943 = vmatprep.subr.mxu0 %v2984_v30  ;;  %v1208_v56 = vsub.f32 %v3105_v42, %v4203_v17  ;;  %v1191_v23 = vand.u32 4294901760, %v1190_v7  ;;  %v837_v7 = vld [vmem:[#allocation7 + $0x18] sm:$0xff]  ;;  %v835_v17 = vld [vmem:[#allocation7 + $0x8] sm:$0xff] }
  0x7a   : > { %1156 = vmatprep.subr.mxu1 %v1155_v25  ;;  %945 = vmatpush1.msra.mxu0 %v2994_v38  ;;  %v1197_v25 = vand.u32 4294901760, %v1196_v39  ;;  %v1203_v43 = vand.u32 4294901760, %v1202_v8  ;;  %v3158_v39 = vand.u32 4294901760, %v837_v7  ;;  %v897_v42 = vld [vmem:[#allocation7 + $0x1f8] sm:$0xff] }
  0x7b   : > { %1162 = vmatpush1.msra.mxu1 %v1161_v24  ;;  %947 = vmatprep.subr.mxu0 %v2996_v14  ;;  %v1209_v45 = vand.u32 4294901760, %v1208_v56  ;;  %v3188_v37 = vand.u32 4294901760, %v897_v42 }
  0x7c   : > { %1168 = vmatprep.subr.mxu1 %v1167_v44  ;;  %949 = vmatpush1.msra.mxu0 %v3057_v40  ;;  %v3153_v44 = vand.u32 4294901760, %v838_v47  ;;  %4207 = vst [vmem:[#allocation28_spill] sm:$0xff] %v3158_v39 }
  0x7d   : > { %1174 = vmatpush1.msra.mxu1 %v1173_v35  ;;  %951 = vmatprep.subr.mxu0 %v3059_v6  ;;  %v839_v35 = vld [vmem:[#allocation7 + $0x28] sm:$0xff]  ;;  %4215 = vst [vmem:[#allocation36_spill] sm:$0xff] %v3188_v37 }
  0x7e   : > { %1180 = vmatprep.subr.mxu1 %v1179_v15  ;;  %953 = vmatpush1.msra.mxu0 %v3061_v36  ;;  %v3151_v24 = vand.u32 4294901760, %v839_v35  ;;  %4205 = vst [vmem:[#allocation26_spill] sm:$0xff] %v3153_v44  ;;  %v836_v15 = vld [vmem:[#allocation7 + $0x10] sm:$0xff]  ;;  %v3162_v8 = vsub.f32 %v838_v47, %v3153_v44 }
  0x7f   : > { %1186 = vmatpush1.msra.mxu1 %v1185_v0  ;;  %955 = vmatprep.subr.mxu0 %v3065_v5  ;;  %v3164_v0 = vand.u32 4294901760, %v836_v15 }
  0x80   : > { %1192 = vmatprep.subr.mxu1 %v1191_v23  ;;  %957 = vmatpush1.msra.mxu0 %v3067_v49  ;;  %4204 = vst [vmem:[#allocation25_spill] sm:$0xff] %v3151_v24  ;;  %v3156_v27 = vsub.f32 %v839_v35, %v3151_v24  ;;  %4208 = vst [vmem:[#allocation29_spill] sm:$0xff] %v3162_v8  ;;  %v3169_v23 = vsub.f32 %v837_v7, %v3158_v39 }
  0x81   : > { %1198 = vmatpush1.msra.mxu1 %v1197_v25  ;;  %959 = vmatprep.subr.mxu0 %v3079_v48  ;;  %4209 = vst [vmem:[#allocation30_spill] sm:$0xff] %v3164_v0  ;;  %v3171_v25 = vand.u32 4294901760, %v835_v17  ;;  %v3176_v35 = vsub.f32 %v836_v15, %v3164_v0  ;;  %v4216_v15 = vand.u32 4294901760, %v3162_v8 }
  0x82   : > { %1204 = vmatprep.subr.mxu1 %v1203_v43  ;;  %961 = vmatpush1.msra.mxu0 %v3088_v41  ;;  %4206 = vst [vmem:[#allocation27_spill] sm:$0xff] %v3156_v27  ;;  %v3978_v56 = vand.u32 4294901760, %v3156_v27  ;;  %4210 = vst [vmem:[#allocation31_spill] sm:$0xff] %v3169_v23  ;;  %v834_v43 = vld [vmem:[#allocation7] sm:$0xff]  ;;  %v3991_v34 = vand.u32 4294901760, %v3169_v23 }
  0x83   : > { %1210 = vmatpush1.msra.mxu1 %v1209_v45  ;;  %963 = vmatprep.subr.mxu0 %v3151_v24  ;;  %4211 = vst [vmem:[#allocation32_spill] sm:$0xff] %v3171_v25  ;;  %4212 = vst [vmem:[#allocation33_spill] sm:$0xff] %v3176_v35  ;;  %v3178_v47 = vand.u32 4294901760, %v834_v43  ;;  %v3186_v9 = vsub.f32 %v835_v17, %v3171_v25  ;;  %v896_v45 = vld [vmem:[#allocation7 + $0x1f0] sm:$0xff]  ;;  %v1220_v13 = vsub.f32 %v3162_v8, %v4216_v15 }
  0x84   : > { %965 = vmatpush1.msra.mxu0 %v3153_v44  ;;  %v1214_v7 = vsub.f32 %v3156_v27, %v3978_v56  ;;  %v3198_v56 = vand.u32 4294901760, %v896_v45  ;;  %v1226_v27 = vsub.f32 %v3169_v23, %v3991_v34  ;;  %v3211_v44 = vsub.f32 %v897_v42, %v3188_v37 }
  0x85   : > { %967 = vmatprep.subr.mxu0 %v3158_v39  ;;  %4213 = vst [vmem:[#allocation34_spill] sm:$0xff] %v3178_v47  ;;  %4214 = vst [vmem:[#allocation35_spill] sm:$0xff] %v3186_v9  ;;  %v3196_v39 = vsub.f32 %v834_v43, %v3178_v47  ;;  %v1221_v15 = vand.u32 4294901760, %v1220_v13 }
  0x86   : > { %969 = vmatpush1.msra.mxu0 %v3164_v0  ;;  %v3996_v0 = vand.u32 4294901760, %v3176_v35  ;;  %4218 = vst [vmem:[#allocation38_spill] sm:$0xff] %v3198_v56  ;;  %v1215_v17 = vand.u32 4294901760, %v1214_v7  ;;  %4219 = vst [vmem:[#allocation39_spill] sm:$0xff] %v3211_v44  ;;  %v894_v7 = vld [vmem:[#allocation7 + $0x1e0] sm:$0xff]  ;;  %v1227_v34 = vand.u32 4294901760, %v1226_v27  ;;  %v3218_v13 = vsub.f32 %v896_v45, %v3198_v56 }
  0x87   : > { %971 = vmatprep.subr.mxu0 %v3171_v25  ;;  %4217 = vst [vmem:[#allocation37_spill] sm:$0xff] %v3196_v39  ;;  %v4003_v25 = vand.u32 4294901760, %v3186_v9  ;;  %v4006_v8 = vand.u32 4294901760, %v3196_v39 }
  0x88   : > { %973 = vmatpush1.msra.mxu0 %v3178_v47  ;;  %v1232_v43 = vsub.f32 %v3176_v35, %v3996_v0  ;;  %v893_v47 = vld [vmem:[#allocation7 + $0x1d8] sm:$0xff]  ;;  %1216 = vmatprep.subr.mxu1 %v1215_v17  ;;  %4220 = vst [vmem:[#allocation40_spill] sm:$0xff] %v3218_v13  ;;  %v4009_v35 = vand.u32 4294901760, %v3211_v44  ;;  %v891_v17 = vld [vmem:[#allocation7 + $0x1c8] sm:$0xff]  ;;  %v4014_v24 = vand.u32 4294901760, %v3218_v13 }
  0x89   : > { %975 = vmatprep.subr.mxu0 %v3188_v37  ;;  %v1238_v23 = vsub.f32 %v3186_v9, %v4003_v25  ;;  %1222 = vmatpush1.msra.mxu1 %v1221_v15  ;;  %v1244_v42 = vsub.f32 %v3196_v39, %v4006_v8  ;;  %v3224_v37 = vand.u32 4294901760, %v895_v4  ;;  %v3227_v25 = vand.u32 4294901760, %v894_v7  ;;  %v890_v9 = vld [vmem:[#allocation7 + $0x1c0] sm:$0xff] }
  0x8a   : > { %977 = vmatpush2.msra.mxu0 %v3198_v56  ;;  %v1233_v0 = vand.u32 4294901760, %v1232_v43  ;;  %1228 = vmatprep.subr.mxu1 %v1227_v34  ;;  %v3229_v45 = vand.u32 4294901760, %v893_v47  ;;  %v1250_v43 = vsub.f32 %v3211_v44, %v4009_v35  ;;  %v3237_v39 = vand.u32 4294901760, %v892_v18  ;;  %v889_v35 = vld [vmem:[#allocation7 + $0x1b8] sm:$0xff] }
  0x8b   : > { %4221 = vst [vmem:[#allocation41_spill] sm:$0xff] %v3224_v37  ;;  %v1239_v27 = vand.u32 4294901760, %v1238_v23  ;;  %4222 = vst [vmem:[#allocation42_spill] sm:$0xff] %v3227_v25  ;;  %v1245_v15 = vand.u32 4294901760, %v1244_v42  ;;  %v3235_v8 = vsub.f32 %v895_v4, %v3224_v37  ;;  %979 = vmatprep.subr.mxu0 %v3224_v37  ;;  %v1256_v34 = vsub.f32 %v3218_v13, %v4014_v24  ;;  %v888_v24 = vld [vmem:[#allocation7 + $0x1b0] sm:$0xff] }
  0x8c   : > { %4223 = vst [vmem:[#allocation43_spill] sm:$0xff] %v3229_v45  ;;  %1234 = vmatpush1.msra.mxu1 %v1233_v0  ;;  %4225 = vst [vmem:[#allocation45_spill] sm:$0xff] %v3237_v39  ;;  %v3244_v23 = vsub.f32 %v894_v7, %v3227_v25  ;;  %v3247_v0 = vsub.f32 %v893_v47, %v3229_v45  ;;  %v3249_v42 = vand.u32 4294901760, %v891_v17  ;;  %981 = vmatpush2.msra.mxu0 %v3227_v25  ;;  %v884_v25 = vld [vmem:[#allocation7 + $0x190] sm:$0xff] }
  0x8d   : > { %4224 = vst [vmem:[#allocation44_spill] sm:$0xff] %v3235_v8  ;;  %1240 = vmatprep.subr.mxu1 %v1239_v27  ;;  %v1251_v4 = vand.u32 4294901760, %v1250_v43  ;;  %v4019_v44 = vand.u32 4294901760, %v3235_v8  ;;  %v3254_v27 = vsub.f32 %v892_v18, %v3237_v39  ;;  %v3256_v37 = vand.u32 4294901760, %v890_v9  ;;  %983 = vmatprep.subr.mxu0 %v3229_v45  ;;  %v885_v45 = vld [vmem:[#allocation7 + $0x198] sm:$0xff] }
  0x8e   : > { %4226 = vst [vmem:[#allocation46_spill] sm:$0xff] %v3244_v23  ;;  %4227 = vst [vmem:[#allocation47_spill] sm:$0xff] %v3247_v0  ;;  %1246 = vmatpush1.msra.mxu1 %v1245_v15  ;;  %v1257_v7 = vand.u32 4294901760, %v1256_v34  ;;  %v4026_v47 = vand.u32 4294901760, %v3244_v23  ;;  %v4031_v13 = vand.u32 4294901760, %v3247_v0  ;;  %v3262_v56 = vsub.f32 %v891_v17, %v3249_v42  ;;  %985 = vmatpush2.msra.mxu0 %v3237_v39  ;;  %v887_v15 = vld [vmem:[#allocation7 + $0x1a8] sm:$0xff] }
  0x8f   : > { %4228 = vst [vmem:[#allocation48_spill] sm:$0xff] %v3249_v42  ;;  %4229 = vst [vmem:[#allocation49_spill] sm:$0xff] %v3254_v27  ;;  %1252 = vmatprep.subr.mxu1 %v1251_v4  ;;  %v1262_v18 = vsub.f32 %v3235_v8, %v4019_v44  ;;  %v3270_v43 = vsub.f32 %v890_v9, %v3256_v37  ;;  %v3272_v34 = vand.u32 4294901760, %v889_v35  ;;  %987 = vmatprep.subr.mxu0 %v3249_v42 }
  0x90   : > { %4230 = vst [vmem:[#allocation50_spill] sm:$0xff] %v3256_v37  ;;  %4231 = vst [vmem:[#allocation51_spill] sm:$0xff] %v3262_v56  ;;  %1258 = vmatpush2.msra.mxu1 %v1257_v7  ;;  %v1268_v17 = vsub.f32 %v3244_v23, %v4026_v47  ;;  %v1274_v4 = vsub.f32 %v3247_v0, %v4031_v13  ;;  %v3282_v8 = vand.u32 4294901760, %v888_v24  ;;  %989 = vmatpush2.msra.mxu0 %v3256_v37  ;;  %v886_v23 = vld [vmem:[#allocation7 + $0x1a0] sm:$0xff] }
  0x91   : > { %4232 = vst [vmem:[#allocation52_spill] sm:$0xff] %v3270_v43  ;;  %4233 = vst [vmem:[#allocation53_spill] sm:$0xff] %v3272_v34  ;;  %v1263_v9 = vand.u32 4294901760, %v1262_v18  ;;  %v4235_v39 = vand.u32 4294901760, %v3254_v27  ;;  %v4046_v42 = vand.u32 4294901760, %v3270_v43  ;;  %v3290_v47 = vsub.f32 %v889_v35, %v3272_v34  ;;  %991 = vmatprep.subr.mxu0 %v3272_v34 }
  0x92   : > { %4234 = vst [vmem:[#allocation54_spill] sm:$0xff] %v3282_v8  ;;  %v1269_v13 = vand.u32 4294901760, %v1268_v17  ;;  %v1275_v44 = vand.u32 4294901760, %v1274_v4  ;;  %v4237_v0 = vand.u32 4294901760, %v3262_v56  ;;  %v3297_v18 = vsub.f32 %v888_v24, %v3282_v8  ;;  %993 = vmatpush2.msra.mxu0 %v3282_v8  ;;  %v883_v4 = vld [vmem:[#allocation7 + $0x188] sm:$0xff]  ;;  %v882_v8 = vld [vmem:[#allocation7 + $0x180] sm:$0xff] }
  0x93   : > { %v1280_v7 = vsub.f32 %v3254_v27, %v4235_v39  ;;  %4236 = vst [vmem:[#allocation55_spill] sm:$0xff] %v3290_v47  ;;  %1264 = vmatprep.subr.mxu1 %v1263_v9  ;;  %v1292_v35 = vsub.f32 %v3270_v43, %v4046_v42  ;;  %v4049_v27 = vand.u32 4294901760, %v3290_v47  ;;  %v3304_v17 = vand.u32 4294901760, %v887_v15 }
  0x94   : > { %v1286_v37 = vsub.f32 %v3262_v56, %v4237_v0  ;;  %4238 = vst [vmem:[#allocation56_spill] sm:$0xff] %v3297_v18  ;;  %1270 = vmatpush2.msra.mxu1 %v1269_v13  ;;  %v4054_v0 = vand.u32 4294901760, %v3297_v18  ;;  %v3307_v24 = vand.u32 4294901760, %v886_v23  ;;  %v3309_v56 = vand.u32 4294901760, %v885_v45 }
  0x95   : > { %v1281_v39 = vand.u32 4294901760, %v1280_v7  ;;  %4239 = vst [vmem:[#allocation57_spill] sm:$0xff] %v3304_v17  ;;  %1276 = vmatprep.subr.mxu1 %v1275_v44  ;;  %v1293_v9 = vand.u32 4294901760, %v1292_v35  ;;  %v1298_v7 = vsub.f32 %v3290_v47, %v4049_v27  ;;  %v3315_v42 = vsub.f32 %v887_v15, %v3304_v17  ;;  %995 = vmatprep.subr.mxu0 %v3304_v17  ;;  %v881_v27 = vld [vmem:[#allocation7 + $0x178] sm:$0xff] }
  0x96   : > { %v1287_v34 = vand.u32 4294901760, %v1286_v37  ;;  %4240 = vst [vmem:[#allocation58_spill] sm:$0xff] %v3307_v24  ;;  %4241 = vst [vmem:[#allocation59_spill] sm:$0xff] %v3309_v56  ;;  %v3317_v43 = vand.u32 4294901760, %v884_v25  ;;  %v1304_v37 = vsub.f32 %v3297_v18, %v4054_v0  ;;  %v3324_v13 = vsub.f32 %v886_v23, %v3307_v24  ;;  %997 = vmatpush2.msra.mxu0 %v3307_v24  ;;  %v880_v0 = vld [vmem:[#allocation7 + $0x170] sm:$0xff] }
  0x97   : > { %4242 = vst [vmem:[#allocation60_spill] sm:$0xff] %v3315_v42  ;;  %1282 = vmatpush2.msra.mxu1 %v1281_v39  ;;  %v3327_v44 = vsub.f32 %v885_v45, %v3309_v56  ;;  %v3329_v35 = vand.u32 4294901760, %v883_v4  ;;  %v1299_v15 = vand.u32 4294901760, %v1298_v7  ;;  %v4059_v47 = vand.u32 4294901760, %v3315_v42  ;;  %999 = vmatprep.subr.mxu0 %v3309_v56  ;;  %v876_v56 = vld [vmem:[#allocation7 + $0x150] sm:$0xff] }
  0x98   : > { %4243 = vst [vmem:[#allocation61_spill] sm:$0xff] %v3317_v43  ;;  %4244 = vst [vmem:[#allocation62_spill] sm:$0xff] %v3324_v13  ;;  %1288 = vmatprep.subr.mxu1 %v1287_v34  ;;  %v3334_v39 = vsub.f32 %v884_v25, %v3317_v43  ;;  %v3336_v17 = vand.u32 4294901760, %v882_v8  ;;  %v1305_v45 = vand.u32 4294901760, %v1304_v37  ;;  %v4064_v23 = vand.u32 4294901760, %v3324_v13  ;;  %1001 = vmatpush2.msra.mxu0 %v3317_v43  ;;  %v879_v34 = vld [vmem:[#allocation7 + $0x168] sm:$0xff] }
  0x99   : > { %4245 = vst [vmem:[#allocation63_spill] sm:$0xff] %v3327_v44  ;;  %4246 = vst [vmem:[#allocation64_spill] sm:$0xff] %v3329_v35  ;;  %1294 = vmatpush2.msra.mxu1 %v1293_v9  ;;  %v4069_v18 = vand.u32 4294901760, %v3327_v44  ;;  %v3342_v24 = vsub.f32 %v883_v4, %v3329_v35  ;;  %v1310_v25 = vsub.f32 %v3315_v42, %v4059_v47  ;;  %v3352_v9 = vand.u32 4294901760, %v881_v27  ;;  %v877_v43 = vld [vmem:[#allocation7 + $0x158] sm:$0xff] }
  0x9a   : > { %4247 = vst [vmem:[#allocation65_spill] sm:$0xff] %v3334_v39  ;;  %4248 = vst [vmem:[#allocation66_spill] sm:$0xff] %v3336_v17  ;;  %1300 = vmatprep.subr.mxu1 %v1299_v15  ;;  %v3350_v7 = vsub.f32 %v882_v8, %v3336_v17  ;;  %1003 = vmatprep.subr.mxu0 %v3329_v35  ;;  %v1316_v4 = vsub.f32 %v3324_v13, %v4064_v23  ;;  %v3362_v47 = vand.u32 4294901760, %v880_v0  ;;  %v878_v13 = vld [vmem:[#allocation7 + $0x160] sm:$0xff] }
  0x9b   : > { %4249 = vst [vmem:[#allocation67_spill] sm:$0xff] %v3342_v24  ;;  %4251 = vst [vmem:[#allocation69_spill] sm:$0xff] %v3352_v9  ;;  %1306 = vmatpush2.msra.mxu1 %v1305_v45  ;;  %v1322_v37 = vsub.f32 %v3327_v44, %v4069_v18  ;;  %1005 = vmatpush2.msra.mxu0 %v3336_v17  ;;  %v1311_v8 = vand.u32 4294901760, %v1310_v25  ;;  %v4253_v42 = vand.u32 4294901760, %v3334_v39  ;;  %v4255_v44 = vand.u32 4294901760, %v3342_v24 }
  0x9c   : > { %4250 = vst [vmem:[#allocation68_spill] sm:$0xff] %v3350_v7  ;;  %4252 = vst [vmem:[#allocation70_spill] sm:$0xff] %v3362_v47  ;;  %v4084_v35 = vand.u32 4294901760, %v3350_v7  ;;  %v3370_v23 = vsub.f32 %v881_v27, %v3352_v9  ;;  %1007 = vmatprep.subr.mxu0 %v3352_v9  ;;  %v1317_v18 = vand.u32 4294901760, %v1316_v4  ;;  %v3377_v25 = vsub.f32 %v880_v0, %v3362_v47 }
  0x9d   : > { %v1328_v45 = vsub.f32 %v3334_v39, %v4253_v42  ;;  %v1323_v15 = vand.u32 4294901760, %v1322_v37  ;;  %v1334_v17 = vsub.f32 %v3342_v24, %v4255_v44  ;;  %1009 = vmatpush2.msra.mxu0 %v3362_v47  ;;  %1312 = vmatprep.subr.mxu1 %v1311_v8  ;;  %v3384_v4 = vand.u32 4294901760, %v879_v34  ;;  %v875_v37 = vld [vmem:[#allocation7 + $0x148] sm:$0xff]  ;;  %v874_v47 = vld [vmem:[#allocation7 + $0x140] sm:$0xff] }
  0x9e   : > { %4254 = vst [vmem:[#allocation71_spill] sm:$0xff] %v3370_v23  ;;  %4256 = vst [vmem:[#allocation72_spill] sm:$0xff] %v3377_v25  ;;  %v1340_v27 = vsub.f32 %v3350_v7, %v4084_v35  ;;  %v4087_v39 = vand.u32 4294901760, %v3370_v23  ;;  %1318 = vmatpush2.msra.mxu1 %v1317_v18  ;;  %v4092_v44 = vand.u32 4294901760, %v3377_v25  ;;  %v3387_v0 = vand.u32 4294901760, %v878_v13 }
  0x9f   : > { %v1329_v42 = vand.u32 4294901760, %v1328_v45  ;;  %4257 = vst [vmem:[#allocation73_spill] sm:$0xff] %v3384_v4  ;;  %v1335_v9 = vand.u32 4294901760, %v1334_v17  ;;  %v3389_v24 = vand.u32 4294901760, %v877_v43  ;;  %1324 = vmatprep.subr.mxu1 %v1323_v15  ;;  %v3395_v35 = vsub.f32 %v879_v34, %v3384_v4  ;;  %1011 = vmatprep.subr.mxu0 %v3384_v4 }
  0xa0   : > { %4258 = vst [vmem:[#allocation74_spill] sm:$0xff] %v3387_v0  ;;  %v1341_v8 = vand.u32 4294901760, %v1340_v27  ;;  %v1346_v45 = vsub.f32 %v3370_v23, %v4087_v39  ;;  %v3397_v7 = vand.u32 4294901760, %v876_v56  ;;  %v1352_v18 = vsub.f32 %v3377_v25, %v4092_v44  ;;  %v873_v39 = vld [vmem:[#allocation7 + $0x138] sm:$0xff]  ;;  %1013 = vmatpush2.msra.mxu0 %v3387_v0  ;;  %v872_v44 = vld [vmem:[#allocation7 + $0x130] sm:$0xff] }
  0xa1   : > { %4259 = vst [vmem:[#allocation75_spill] sm:$0xff] %v3389_v24  ;;  %4260 = vst [vmem:[#allocation76_spill] sm:$0xff] %v3395_v35  ;;  %1330 = vmatpush2.msra.mxu1 %v1329_v42  ;;  %v3404_v17 = vsub.f32 %v878_v13, %v3387_v0  ;;  %v3407_v15 = vsub.f32 %v877_v43, %v3389_v24  ;;  %v3409_v27 = vand.u32 4294901760, %v875_v37  ;;  %v4097_v23 = vand.u32 4294901760, %v3395_v35 }
  0xa2   : > { %4261 = vst [vmem:[#allocation77_spill] sm:$0xff] %v3397_v7  ;;  %1336 = vmatprep.subr.mxu1 %v1335_v9  ;;  %v1347_v34 = vand.u32 4294901760, %v1346_v45  ;;  %v3414_v42 = vsub.f32 %v876_v56, %v3397_v7  ;;  %v3416_v4 = vand.u32 4294901760, %v874_v47  ;;  %1015 = vmatprep.subr.mxu0 %v3389_v24  ;;  %v1353_v43 = vand.u32 4294901760, %v1352_v18  ;;  %v871_v9 = vld [vmem:[#allocation7 + $0x128] sm:$0xff]  ;;  %v868_v24 = vld [vmem:[#allocation7 + $0x110] sm:$0xff] }
  0xa3   : > { %4262 = vst [vmem:[#allocation78_spill] sm:$0xff] %v3404_v17  ;;  %4263 = vst [vmem:[#allocation79_spill] sm:$0xff] %v3407_v15  ;;  %1342 = vmatpush2.msra.mxu1 %v1341_v8  ;;  %v4102_v13 = vand.u32 4294901760, %v3404_v17  ;;  %v4107_v25 = vand.u32 4294901760, %v3407_v15  ;;  %v3422_v0 = vsub.f32 %v875_v37, %v3409_v27  ;;  %1017 = vmatpush2.msra.mxu0 %v3397_v7  ;;  %v3432_v8 = vand.u32 4294901760, %v873_v39  ;;  %v869_v7 = vld [vmem:[#allocation7 + $0x118] sm:$0xff] }
  0xa4   : > { %4264 = vst [vmem:[#allocation80_spill] sm:$0xff] %v3409_v27  ;;  %4265 = vst [vmem:[#allocation81_spill] sm:$0xff] %v3414_v42  ;;  %1348 = vmatprep.subr.mxu1 %v1347_v34  ;;  %v1358_v56 = vsub.f32 %v3395_v35, %v4097_v23  ;;  %v3430_v45 = vsub.f32 %v874_v47, %v3416_v4  ;;  %1019 = vmatprep.subr.mxu0 %v3409_v27  ;;  %v3442_v23 = vand.u32 4294901760, %v872_v44 }
  0xa5   : > { %4266 = vst [vmem:[#allocation82_spill] sm:$0xff] %v3416_v4  ;;  %4267 = vst [vmem:[#allocation83_spill] sm:$0xff] %v3422_v0  ;;  %1354 = vmatpush2.msra.mxu1 %v1353_v43  ;;  %v1364_v37 = vsub.f32 %v3404_v17, %v4102_v13  ;;  %v1370_v18 = vsub.f32 %v3407_v15, %v4107_v25  ;;  %1021 = vmatpush2.msra.mxu0 %v3416_v4  ;;  %v4271_v35 = vand.u32 4294901760, %v3414_v42  ;;  %v870_v17 = vld [vmem:[#allocation7 + $0x120] sm:$0xff] }
  0xa6   : > { %4268 = vst [vmem:[#allocation84_spill] sm:$0xff] %v3430_v45  ;;  %4269 = vst [vmem:[#allocation85_spill] sm:$0xff] %v3432_v8  ;;  %v1359_v47 = vand.u32 4294901760, %v1358_v56  ;;  %v4122_v27 = vand.u32 4294901760, %v3430_v45  ;;  %v3450_v13 = vsub.f32 %v873_v39, %v3432_v8  ;;  %1023 = vmatprep.subr.mxu0 %v3432_v8  ;;  %v4273_v15 = vand.u32 4294901760, %v3422_v0 }
  0xa7   : > { %4270 = vst [vmem:[#allocation86_spill] sm:$0xff] %v3442_v23  ;;  %v1376_v43 = vsub.f32 %v3414_v42, %v4271_v35  ;;  %v1365_v25 = vand.u32 4294901760, %v1364_v37  ;;  %v1371_v34 = vand.u32 4294901760, %v1370_v18  ;;  %v3457_v56 = vsub.f32 %v872_v44, %v3442_v23  ;;  %1025 = vmatpush2.msra.mxu0 %v3442_v23  ;;  %v867_v18 = vld [vmem:[#allocation7 + $0x108] sm:$0xff]  ;;  %v866_v23 = vld [vmem:[#allocation7 + $0x100] sm:$0xff] }
  0xa8   : > { %4272 = vst [vmem:[#allocation87_spill] sm:$0xff] %v3450_v13  ;;  %v1382_v4 = vsub.f32 %v3422_v0, %v4273_v15  ;;  %1360 = vmatprep.subr.mxu1 %v1359_v47  ;;  %v1388_v39 = vsub.f32 %v3430_v45, %v4122_v27  ;;  %v4125_v42 = vand.u32 4294901760, %v3450_v13  ;;  %v3464_v37 = vand.u32 4294901760, %v871_v9 }
  0xa9   : > { %4274 = vst [vmem:[#allocation88_spill] sm:$0xff] %v3457_v56  ;;  %v1377_v35 = vand.u32 4294901760, %v1376_v43  ;;  %1366 = vmatpush2.msra.mxu1 %v1365_v25  ;;  %v4128_v15 = vand.u32 4294901760, %v3457_v56  ;;  %v3467_v44 = vand.u32 4294901760, %v870_v17  ;;  %v3469_v0 = vand.u32 4294901760, %v869_v7 }
  0xaa   : > { %4275 = vst [vmem:[#allocation89_spill] sm:$0xff] %v3464_v37  ;;  %v1383_v8 = vand.u32 4294901760, %v1382_v4  ;;  %1372 = vmatprep.subr.mxu1 %v1371_v34  ;;  %v1389_v47 = vand.u32 4294901760, %v1388_v39  ;;  %v1394_v43 = vsub.f32 %v3450_v13, %v4125_v42  ;;  %v3475_v27 = vsub.f32 %v871_v9, %v3464_v37  ;;  %1027 = vmatprep.subr.mxu0 %v3464_v37 }
  0xab   : > { %4276 = vst [vmem:[#allocation90_spill] sm:$0xff] %v3467_v44  ;;  %4277 = vst [vmem:[#allocation91_spill] sm:$0xff] %v3469_v0  ;;  %v3477_v45 = vand.u32 4294901760, %v868_v24  ;;  %1378 = vmatpush2.msra.mxu1 %v1377_v35  ;;  %v1400_v25 = vsub.f32 %v3457_v56, %v4128_v15  ;;  %v3484_v4 = vsub.f32 %v870_v17, %v3467_v44  ;;  %v3489_v39 = vand.u32 4294901760, %v867_v18 }
  0xac   : > { %4278 = vst [vmem:[#allocation92_spill] sm:$0xff] %v3475_v27  ;;  %v3487_v34 = vsub.f32 %v869_v7, %v3469_v0  ;;  %1029 = vmatpush2.msra.mxu0 %v3467_v44  ;;  %1384 = vmatprep.subr.mxu1 %v1383_v8  ;;  %v1395_v9 = vand.u32 4294901760, %v1394_v43  ;;  %v4131_v42 = vand.u32 4294901760, %v3475_v27  ;;  %v3496_v13 = vand.u32 4294901760, %v866_v23 }
  0xad   : > { %4279 = vst [vmem:[#allocation93_spill] sm:$0xff] %v3477_v45  ;;  %4280 = vst [vmem:[#allocation94_spill] sm:$0xff] %v3484_v4  ;;  %v3494_v35 = vsub.f32 %v868_v24, %v3477_v45  ;;  %1031 = vmatprep.subr.mxu0 %v3469_v0  ;;  %1390 = vmatpush2.msra.mxu1 %v1389_v47  ;;  %v1401_v17 = vand.u32 4294901760, %v1400_v25  ;;  %v4134_v7 = vand.u32 4294901760, %v3484_v4 }
  0xae   : > { %4281 = vst [vmem:[#allocation95_spill] sm:$0xff] %v3487_v34  ;;  %4282 = vst [vmem:[#allocation96_spill] sm:$0xff] %v3489_v39  ;;  %v4135_v15 = vand.u32 4294901760, %v3487_v34  ;;  %v3502_v56 = vsub.f32 %v867_v18, %v3489_v39  ;;  %1033 = vmatpush2.msra.mxu0 %v3477_v45  ;;  %1396 = vmatprep.subr.mxu1 %v1395_v9  ;;  %v1406_v24 = vsub.f32 %v3475_v27, %v4131_v42 }
  0xaf   : > { %4283 = vst [vmem:[#allocation97_spill] sm:$0xff] %v3494_v35  ;;  %4284 = vst [vmem:[#allocation98_spill] sm:$0xff] %v3496_v13  ;;  %v4138_v8 = vand.u32 4294901760, %v3494_v35  ;;  %v3510_v43 = vsub.f32 %v866_v23, %v3496_v13  ;;  %1035 = vmatprep.subr.mxu0 %v3489_v39  ;;  %1402 = vmatpush2.msra.mxu1 %v1401_v17  ;;  %v1412_v18 = vsub.f32 %v3484_v4, %v4134_v7 }
  0xb0   : > { %4285 = vst [vmem:[#allocation99_spill] sm:$0xff] %v3502_v56  ;;  %v1418_v47 = vsub.f32 %v3487_v34, %v4135_v15  ;;  %v4139_v25 = vand.u32 4294901760, %v3502_v56  ;;  %1037 = vmatpush2.msra.mxu0 %v3496_v13  ;;  %v1407_v9 = vand.u32 4294901760, %v1406_v24 }
  0xb1   : > { %4286 = vst [vmem:[#allocation100_spill] sm:$0xff] %v3510_v43  ;;  %v1424_v23 = vsub.f32 %v3494_v35, %v4138_v8  ;;  %v4140_v42 = vand.u32 4294901760, %v3510_v43  ;;  %1450 = vmatprep.subr.mxu0 %v2803_v20  ;;  %v1413_v17 = vand.u32 4294901760, %v1412_v18  ;;  %v319_v18 = vlaneseq }
  0xb2   : > { %v1419_v27 = vand.u32 4294901760, %v1418_v47  ;;  %v1430_v7 = vsub.f32 %v3502_v56, %v4139_v25  ;;  %1408 = vmatprep.subr.mxu1 %v1407_v9  ;;  %v317_v9 = vld [vmem:[%s3933_s2] sm:$0x3] }
  0xb3   : > { %v1425_v15 = vand.u32 4294901760, %v1424_v23  ;;  %v1436_v24 = vsub.f32 %v3510_v43, %v4140_v42  ;;  %1414 = vmatpush2.msra.mxu1 %v1413_v17  ;;  %v3533_v47 = vshrl.u32 %v319_v18, 7 }
  0xb4   : > { %v1431_v34 = vand.u32 4294901760, %v1430_v7  ;;  %1420 = vmatprep.subr.mxu1 %v1419_v27 }
  0xb5   : > { %v1437_v8 = vand.u32 4294901760, %v1436_v24  ;;  %1426 = vmatpush2.msra.mxu1 %v1425_v15  ;;  %4287 = vst [vmem:[#allocation101_spill] sm:$0xff] %v3533_v47  ;;  %v4157_v25 = vsub.s32 0, %v3533_v47  ;;  %v4162_v23 = vsub.s32 1, %v3533_v47 }
  0xb6   : > { %1432 = vmatprep.subr.mxu1 %v1431_v34 }
  0xb7   : > { %1438 = vmatpush2.msra.mxu1 %v1437_v8  ;;  %v322_v27 = vrot.slane %v317_v9, %v4157_v25  ;;  %v326_v15 = vrot.slane %v317_v9, %v4162_v23 }
  0xb8   : > { %1652 = vmatprep.subr.mxu1 %v2784_v12 }
 0x11c   : > { %v408_v34 = vpop.f32.mrf.mxu0 }
 0x11d   : > { %v409_v7 = vadd.f32 %v408_v34, %v322_v27 }
 0x11e   : > { %v410_v8 = vpop.f32.mrf.mxu0  ;;  %v500_v17 = vpop.f32.mrf.mxu1 }
 0x11f   : > { %v411_v24 = vadd.f32 %v410_v8, %v326_v15  ;;  %v501_v18 = vadd.f32 %v500_v17, %v409_v7 }
 0x120   : > { %v581_v42 = vpop.f32.mrf.mxu0  ;;  %v502_v20 = vpop.f32.mrf.mxu1 }
 0x121   : > { %v582_v43 = vadd.f32 %v581_v42, %v501_v18  ;;  %v503_v56 = vadd.f32 %v502_v20, %v411_v24  ;;  %v4289_v18 = vld [vmem:[#allocation14_spill] sm:$0xff] }
 0x122   : > { %v583_v35 = vpop.f32.mrf.mxu0 }
 0x123   : > { %v584_v4 = vadd.f32 %v583_v35, %v503_v56 }
 0x124   : > { %v659_v12 = vpop.f32.mrf.mxu1 }
 0x125   : > { %v660_v13 = vadd.f32 %v659_v12, %v582_v43 }
 0x126   : > { %v743_v39 = vpop.f32.mrf.mxu0  ;;  %v661_v45 = vpop.f32.mrf.mxu1 }
 0x127   : > { %v744_v25 = vadd.f32 %v743_v39, %v660_v13  ;;  %v662_v0 = vadd.f32 %v661_v45, %v584_v4 }
 0x128   : > { %v745_v47 = vpop.f32.mrf.mxu0 }
 0x129   : > { %v746_v9 = vadd.f32 %v745_v47, %v662_v0 }
 0x12a   : > { %v819_v23 = vpop.f32.mrf.mxu1 }
 0x12b   : > { %v820_v27 = vadd.f32 %v819_v23, %v744_v25 }
 0x12c   : > { %v821_v34 = vpop.f32.mrf.mxu1 }
 0x12d   : > { %v826_v44 = vmul.f32 0.70710677, %v820_v27  ;;  %v822_v15 = vadd.f32 %v821_v34, %v746_v9  ;;  %v824_v20 = vmul.f32 0.5, %v820_v27  ;;  %v4290_v9 = vld [vmem:[#allocation15_spill] sm:$0xff]  ;;  %v4291_v27 = vld [vmem:[#allocation16_spill] sm:$0xff]  ;;  %v4292_v34 = vld [vmem:[#allocation17_spill] sm:$0xff] }
 0x12f   : > { %2433 = verf.f32 %v826_v44  ;;  %v827_v7 = vmul.f32 0.70710677, %v822_v15  ;;  %v825_v12 = vmul.f32 0.5, %v822_v15  ;;  %v4293_v15 = vld [vmem:[#allocation25_spill] sm:$0xff] }
 0x131   : > { %2435 = verf.f32 %v827_v7  ;;  %v4294_v7 = vld [vmem:[#allocation18_spill] sm:$0xff] }
 0x13c   : > { %v2434_v42 = vpop.eup %2433 }
 0x13d   : > { %v830_v8 = vadd.f32 1.0, %v2434_v42  ;;  %v4295_v42 = vld [vmem:[#allocation26_spill] sm:$0xff] }
 0x13e   : > { %v2436_v56 = vpop.eup %2435 }
 0x13f   : > { %v832_v35 = vmul.f32 %v830_v8, %v824_v20  ;;  %v831_v43 = vadd.f32 1.0, %v2436_v56  ;;  %v4296_v20 = vld [vmem:[#allocation19_spill] sm:$0xff]  ;;  %v4297_v8 = vld [vmem:[#allocation28_spill] sm:$0xff] }
 0x140   : > { %v4298_v56 = vld [vmem:[#allocation20_spill] sm:$0xff] }
 0x141   : > { %v3544_v17 = vand.u32 4294901760, %v832_v35  ;;  %v833_v13 = vmul.f32 %v831_v43, %v825_v12  ;;  %v4300_v12 = vld [vmem:[#allocation21_spill] sm:$0xff]  ;;  %v4301_v43 = vld [vmem:[#allocation32_spill] sm:$0xff] }
 0x143   : > { %4288 = vst [vmem:[#allocation102_spill] sm:$0xff] %v3544_v17  ;;  %v3547_v0 = vsub.f32 %v832_v35, %v3544_v17  ;;  %v3549_v45 = vand.u32 4294901760, %v833_v13  ;;  %v4299_v35 = vld [vmem:[#allocation30_spill] sm:$0xff] }
 0x145   : > { %v1039_v4 = vsub.f32 %v833_v13, %v3549_v45  ;;  %1440 = vmatprep.mubr.f32.mxu1 %v3549_v45  ;;  %v4165_v44 = vand.u32 4294901760, %v3547_v0  ;;  %v4302_v13 = vld [vmem:[#allocation22_spill] sm:$0xff] }
 0x146   : > { %1442 = vmatmul.mubr.f32.vlgmr.msra.gmra.mxu1 %v3544_v17  ;;  %v4310_v17 = vld [vmem:[#allocation29_spill] sm:$0xff] }
 0x147   : > { %1654 = vmatpush1.msra.mxu1 %v2805_v21  ;;  %v1040_v39 = vand.u32 4294901760, %v1039_v4  ;;  %v1047_v25 = vsub.f32 %v3547_v0, %v4165_v44  ;;  %v4309_v44 = vld [vmem:[#allocation41_spill] sm:$0xff] }
 0x148   : > { %1656 = vmatprep.subr.mxu1 %v2807_v22 }
 0x149   : > { %1658 = vmatpush1.msra.mxu1 %v2844_v50  ;;  %1782 = vmatprep.mubr.f32.mxu1 %v1040_v39  ;;  %v1041_v47 = vsub.f32 %v1039_v4, %v1040_v39  ;;  %v1048_v24 = vand.u32 4294901760, %v1047_v25  ;;  %v4304_v39 = vld [vmem:[#allocation23_spill] sm:$0xff]  ;;  %v4305_v25 = vld [vmem:[#allocation36_spill] sm:$0xff] }
 0x14a   : > { %1660 = vmatprep.subr.mxu1 %v2846_v51 }
 0x14b   : > { %1662 = vmatpush1.msra.mxu1 %v2848_v52  ;;  %v1042_v23 = vand.u32 4294901760, %v1041_v47  ;;  %v4306_v47 = vld [vmem:[#allocation24_spill] sm:$0xff] }
 0x14c   : > { %1664 = vmatprep.subr.mxu1 %v2860_v57 }
 0x14d   : > { %1666 = vmatpush1.msra.mxu1 %v2862_v58  ;;  %1043 = vmatprep.mubr.f32.mxu0 %v1042_v23  ;;  %v4307_v23 = vld [vmem:[#allocation38_spill] sm:$0xff] }
 0x14e   : > { %1668 = vmatprep.subr.mxu1 %v2873_v62  ;;  %1049 = vmatmul.mubr.f32.vlgmr.msra.gmra.mxu0 %v1048_v24  ;;  %v4308_v24 = vld [vmem:[#allocation27_spill] sm:$0xff] }
 0x14f   : > { %1453 = vmatpush1.msra.mxu0 %v2819_v28  ;;  %1670 = vmatpush1.msra.mxu1 %v2882_v2 }
 0x150   : > { %1456 = vmatprep.subr.mxu0 %v2822_v29  ;;  %1642 = vmatprep.mubr.f32.mxu0 %v1039_v4  ;;  %v4303_v4 = vld [vmem:[#allocation34_spill] sm:$0xff] }
 0x151   : > { %1672 = vmatprep.subr.mxu1 %v2884_v3  ;;  %1459 = vmatpush1.msra.mxu0 %v2865_v59 }
 0x152   : > { %1674 = vmatpush1.msra.mxu1 %v2954_v53  ;;  %1462 = vmatprep.subr.mxu0 %v2868_v60 }
 0x153   : > { %1676 = vmatprep.subr.mxu1 %v2956_v54  ;;  %1465 = vmatpush1.msra.mxu0 %v2871_v61 }
 0x154   : > { %1678 = vmatpush1.msra.mxu1 %v2958_v55  ;;  %1468 = vmatprep.subr.mxu0 %v2877_v63 }
 0x155   : > { %1680 = vmatprep.subr.mxu1 %v2969_v26  ;;  %1471 = vmatpush1.msra.mxu0 %v2880_v1 }
 0x156   : > { %1682 = vmatpush1.msra.mxu1 %v2971_v31  ;;  %1474 = vmatprep.subr.mxu0 %v2896_v11 }
 0x157   : > { %1684 = vmatprep.subr.mxu1 %v2984_v30  ;;  %1477 = vmatpush1.msra.mxu0 %v2904_v32 }
 0x158   : > { %1686 = vmatpush1.msra.mxu1 %v2994_v38  ;;  %1480 = vmatprep.subr.mxu0 %v2909_v33 }
 0x159   : > { %1688 = vmatprep.subr.mxu1 %v2996_v14  ;;  %1483 = vmatpush1.msra.mxu0 %v2976_v19 }
 0x15a   : > { %1690 = vmatpush1.msra.mxu1 %v3057_v40  ;;  %1486 = vmatprep.subr.mxu0 %v4289_v18 }
 0x15b   : > { %1692 = vmatprep.subr.mxu1 %v3059_v6  ;;  %1489 = vmatpush1.msra.mxu0 %v4290_v9 }
 0x15c   : > { %1694 = vmatpush1.msra.mxu1 %v3061_v36  ;;  %1492 = vmatprep.subr.mxu0 %v4291_v27 }
 0x15d   : > { %1696 = vmatprep.subr.mxu1 %v3065_v5  ;;  %1495 = vmatpush1.msra.mxu0 %v4292_v34 }
 0x15e   : > { %1698 = vmatpush1.msra.mxu1 %v3067_v49  ;;  %1498 = vmatprep.subr.mxu0 %v3018_v46 }
 0x15f   : > { %1700 = vmatprep.subr.mxu1 %v3079_v48  ;;  %1501 = vmatpush1.msra.mxu0 %v3024_v10 }
 0x160   : > { %1702 = vmatpush1.msra.mxu1 %v3088_v41  ;;  %1504 = vmatprep.subr.mxu0 %v3033_v16 }
 0x161   : > { %1704 = vmatprep.subr.mxu1 %v4293_v15  ;;  %1507 = vmatpush1.msra.mxu0 %v4294_v7 }
 0x162   : > { %1706 = vmatpush1.msra.mxu1 %v4295_v42  ;;  %1510 = vmatprep.subr.mxu0 %v4296_v20 }
 0x163   : > { %1708 = vmatprep.subr.mxu1 %v4297_v8  ;;  %1513 = vmatpush1.msra.mxu0 %v4298_v56 }
 0x164   : > { %1710 = vmatpush1.msra.mxu1 %v4299_v35  ;;  %1516 = vmatprep.subr.mxu0 %v4300_v12  ;;  %v4311_v12 = vld [vmem:[#allocation42_spill] sm:$0xff] }
 0x165   : > { %1712 = vmatprep.subr.mxu1 %v4301_v43  ;;  %1519 = vmatpush1.msra.mxu0 %v4302_v13  ;;  %v4312_v43 = vld [vmem:[#allocation31_spill] sm:$0xff] }
 0x166   : > { %1714 = vmatpush1.msra.mxu1 %v4303_v4  ;;  %1522 = vmatprep.subr.mxu0 %v4304_v39  ;;  %v4313_v13 = vld [vmem:[#allocation43_spill] sm:$0xff]  ;;  %v4314_v4 = vld [vmem:[#allocation33_spill] sm:$0xff] }
 0x167   : > { %1716 = vmatprep.subr.mxu1 %v4305_v25  ;;  %1525 = vmatpush1.msra.mxu0 %v4306_v47  ;;  %v4315_v39 = vld [vmem:[#allocation45_spill] sm:$0xff]  ;;  %v4316_v25 = vld [vmem:[#allocation35_spill] sm:$0xff]  ;;  %v4317_v47 = vld [vmem:[#allocation48_spill] sm:$0xff] }
 0x168   : > { %1718 = vmatpush2.msra.mxu1 %v4307_v23  ;;  %1528 = vmatprep.subr.mxu0 %v4308_v24  ;;  %v4318_v23 = vld [vmem:[#allocation37_spill] sm:$0xff]  ;;  %v4319_v24 = vld [vmem:[#allocation50_spill] sm:$0xff] }
 0x169   : > { %1720 = vmatprep.subr.mxu1 %v4309_v44  ;;  %1531 = vmatpush1.msra.mxu0 %v4310_v17  ;;  %v4320_v44 = vld [vmem:[#allocation39_spill] sm:$0xff]  ;;  %v4321_v17 = vld [vmem:[#allocation53_spill] sm:$0xff] }
 0x16a   : > { %1722 = vmatpush2.msra.mxu1 %v4311_v12  ;;  %1534 = vmatprep.subr.mxu0 %v4312_v43  ;;  %v4322_v12 = vld [vmem:[#allocation40_spill] sm:$0xff]  ;;  %v4323_v43 = vld [vmem:[#allocation54_spill] sm:$0xff] }
 0x16b   : > { %1724 = vmatprep.subr.mxu1 %v4313_v13  ;;  %1537 = vmatpush1.msra.mxu0 %v4314_v4  ;;  %v4324_v13 = vld [vmem:[#allocation44_spill] sm:$0xff]  ;;  %v4325_v4 = vld [vmem:[#allocation57_spill] sm:$0xff] }
 0x16c   : > { %1726 = vmatpush2.msra.mxu1 %v4315_v39  ;;  %1540 = vmatprep.subr.mxu0 %v4316_v25  ;;  %v4326_v39 = vld [vmem:[#allocation46_spill] sm:$0xff] }
 0x16d   : > { %1728 = vmatprep.subr.mxu1 %v4317_v47  ;;  %1543 = vmatpush1.msra.mxu0 %v4318_v23  ;;  %v4327_v25 = vld [vmem:[#allocation58_spill] sm:$0xff]  ;;  %v4328_v47 = vld [vmem:[#allocation47_spill] sm:$0xff] }
 0x16e   : > { %1730 = vmatpush2.msra.mxu1 %v4319_v24  ;;  %1546 = vmatprep.subr.mxu0 %v4320_v44  ;;  %v4329_v23 = vld [vmem:[#allocation59_spill] sm:$0xff]  ;;  %v4330_v24 = vld [vmem:[#allocation49_spill] sm:$0xff] }
 0x16f   : > { %1732 = vmatprep.subr.mxu1 %v4321_v17  ;;  %1549 = vmatpush2.msra.mxu0 %v4322_v12  ;;  %v4331_v44 = vld [vmem:[#allocation61_spill] sm:$0xff]  ;;  %v4332_v17 = vld [vmem:[#allocation51_spill] sm:$0xff]  ;;  %v4333_v12 = vld [vmem:[#allocation64_spill] sm:$0xff] }
 0x170   : > { %1734 = vmatpush2.msra.mxu1 %v4323_v43  ;;  %1552 = vmatprep.subr.mxu0 %v4324_v13  ;;  %v4334_v43 = vld [vmem:[#allocation52_spill] sm:$0xff]  ;;  %v4335_v13 = vld [vmem:[#allocation66_spill] sm:$0xff] }
 0x171   : > { %1736 = vmatprep.subr.mxu1 %v4325_v4  ;;  %1555 = vmatpush2.msra.mxu0 %v4326_v39  ;;  %v4336_v4 = vld [vmem:[#allocation55_spill] sm:$0xff]  ;;  %v4337_v39 = vld [vmem:[#allocation69_spill] sm:$0xff] }
 0x172   : > { %1738 = vmatpush2.msra.mxu1 %v4327_v25  ;;  %1558 = vmatprep.subr.mxu0 %v4328_v47  ;;  %v4338_v25 = vld [vmem:[#allocation56_spill] sm:$0xff]  ;;  %v4339_v47 = vld [vmem:[#allocation70_spill] sm:$0xff] }
 0x173   : > { %1740 = vmatprep.subr.mxu1 %v4329_v23  ;;  %1561 = vmatpush2.msra.mxu0 %v4330_v24  ;;  %v4340_v23 = vld [vmem:[#allocation60_spill] sm:$0xff]  ;;  %v4341_v24 = vld [vmem:[#allocation73_spill] sm:$0xff] }
 0x174   : > { %1742 = vmatpush2.msra.mxu1 %v4331_v44  ;;  %1564 = vmatprep.subr.mxu0 %v4332_v17  ;;  %v4342_v44 = vld [vmem:[#allocation62_spill] sm:$0xff] }
 0x175   : > { %1744 = vmatprep.subr.mxu1 %v4333_v12  ;;  %1567 = vmatpush2.msra.mxu0 %v4334_v43  ;;  %v4343_v17 = vld [vmem:[#allocation74_spill] sm:$0xff]  ;;  %v4344_v12 = vld [vmem:[#allocation63_spill] sm:$0xff] }
 0x176   : > { %1746 = vmatpush2.msra.mxu1 %v4335_v13  ;;  %1570 = vmatprep.subr.mxu0 %v4336_v4  ;;  %v4345_v43 = vld [vmem:[#allocation75_spill] sm:$0xff]  ;;  %v4346_v13 = vld [vmem:[#allocation65_spill] sm:$0xff] }
 0x177   : > { %1748 = vmatprep.subr.mxu1 %v4337_v39  ;;  %1573 = vmatpush2.msra.mxu0 %v4338_v25  ;;  %v4347_v4 = vld [vmem:[#allocation77_spill] sm:$0xff]  ;;  %v4348_v39 = vld [vmem:[#allocation67_spill] sm:$0xff]  ;;  %v4349_v25 = vld [vmem:[#allocation80_spill] sm:$0xff] }
 0x178   : > { %1750 = vmatpush2.msra.mxu1 %v4339_v47  ;;  %1576 = vmatprep.subr.mxu0 %v4340_v23  ;;  %v4350_v47 = vld [vmem:[#allocation68_spill] sm:$0xff]  ;;  %v4351_v23 = vld [vmem:[#allocation82_spill] sm:$0xff] }
 0x179   : > { %1752 = vmatprep.subr.mxu1 %v4341_v24  ;;  %1579 = vmatpush2.msra.mxu0 %v4342_v44  ;;  %v4352_v24 = vld [vmem:[#allocation71_spill] sm:$0xff]  ;;  %v4353_v44 = vld [vmem:[#allocation85_spill] sm:$0xff] }
 0x17a   : > { %1754 = vmatpush2.msra.mxu1 %v4343_v17  ;;  %1582 = vmatprep.subr.mxu0 %v4344_v12  ;;  %v4354_v17 = vld [vmem:[#allocation72_spill] sm:$0xff]  ;;  %v4355_v12 = vld [vmem:[#allocation86_spill] sm:$0xff] }
 0x17b   : > { %1756 = vmatprep.subr.mxu1 %v4345_v43  ;;  %1585 = vmatpush2.msra.mxu0 %v4346_v13  ;;  %v4356_v43 = vld [vmem:[#allocation76_spill] sm:$0xff] }
 0x17c   : > { %1758 = vmatpush2.msra.mxu1 %v4347_v4  ;;  %1588 = vmatprep.subr.mxu0 %v4348_v39  ;;  %v4357_v4 = vld [vmem:[#allocation78_spill] sm:$0xff] }
 0x17d   : > { %1760 = vmatprep.subr.mxu1 %v4349_v25  ;;  %1591 = vmatpush2.msra.mxu0 %v4350_v47  ;;  %v4358_v39 = vld [vmem:[#allocation90_spill] sm:$0xff]  ;;  %v4359_v25 = vld [vmem:[#allocation79_spill] sm:$0xff] }
 0x17e   : > { %1762 = vmatpush2.msra.mxu1 %v4351_v23  ;;  %1594 = vmatprep.subr.mxu0 %v4352_v24  ;;  %v4360_v47 = vld [vmem:[#allocation91_spill] sm:$0xff]  ;;  %v4361_v23 = vld [vmem:[#allocation81_spill] sm:$0xff] }
 0x17f   : > { %1764 = vmatprep.subr.mxu1 %v4353_v44  ;;  %1597 = vmatpush2.msra.mxu0 %v4354_v17  ;;  %v4362_v24 = vld [vmem:[#allocation93_spill] sm:$0xff]  ;;  %v4363_v44 = vld [vmem:[#allocation83_spill] sm:$0xff]  ;;  %v4364_v17 = vld [vmem:[#allocation96_spill] sm:$0xff] }
 0x180   : > { %1766 = vmatpush2.msra.mxu1 %v4355_v12  ;;  %1600 = vmatprep.subr.mxu0 %v4356_v43  ;;  %v4365_v12 = vld [vmem:[#allocation84_spill] sm:$0xff]  ;;  %v4366_v43 = vld [vmem:[#allocation98_spill] sm:$0xff] }
 0x181   : > { %1768 = vmatprep.subr.mxu1 %v3464_v37  ;;  %1603 = vmatpush2.msra.mxu0 %v4357_v4  ;;  %v4367_v37 = vld [vmem:[#allocation87_spill] sm:$0xff] }
 0x182   : > { %1770 = vmatpush2.msra.mxu1 %v4358_v39  ;;  %1606 = vmatprep.subr.mxu0 %v4359_v25  ;;  %v4368_v39 = vand.u32 4294901760, %v3547_v0  ;;  %v4369_v25 = vld [vmem:[#allocation12_spill] sm:$0xff] }
 0x183   : > { %1772 = vmatprep.subr.mxu1 %v4360_v47  ;;  %1609 = vmatpush2.msra.mxu0 %v4361_v23  ;;  %v4370_v47 = vld [vmem:[#allocation88_spill] sm:$0xff] }
 0x184   : > { %1774 = vmatpush2.msra.mxu1 %v4362_v24  ;;  %1612 = vmatprep.subr.mxu0 %v4363_v44  ;;  %v4371_v44 = vld [vmem:[#allocation92_spill] sm:$0xff] }
 0x185   : > { %1776 = vmatprep.subr.mxu1 %v4364_v17  ;;  %1615 = vmatpush2.msra.mxu0 %v4365_v12  ;;  %v4372_v12 = vld [vmem:[#allocation94_spill] sm:$0xff] }
 0x186   : > { %1778 = vmatpush2.msra.mxu1 %v4366_v43  ;;  %1618 = vmatprep.subr.mxu0 %v4367_v37  ;;  %v4373_v37 = vld [vmem:[#allocation95_spill] sm:$0xff] }
 0x187   : > { %1786 = vmatmul.mubr.f32.vlgmr.msra.gmra.mxu1 %v4368_v39  ;;  %2058 = vmatprep.subr.mxu1 %v4369_v25  ;;  %v4374_v39 = vld [vmem:[#allocation97_spill] sm:$0xff]  ;;  %v4375_v25 = vld [vmem:[#allocation99_spill] sm:$0xff] }
 0x188   : > { %1621 = vmatpush2.msra.mxu0 %v4370_v47  ;;  %2060 = vmatpush1.msra.mxu1 %v2805_v21  ;;  %v4376_v21 = vld [vmem:[#allocation100_spill] sm:$0xff] }
 0x189   : > { %2186 = vmatprep.mubr.f32.mxu1 %v3549_v45  ;;  %1624 = vmatprep.subr.mxu0 %v4371_v44 }
 0x18a   : > { %2062 = vmatprep.subr.mxu1 %v2807_v22  ;;  %1627 = vmatpush2.msra.mxu0 %v4372_v12  ;;  %v4377_v22 = vld [vmem:[#allocation13_spill] sm:$0xff] }
 0x18b   : > { %2064 = vmatpush1.msra.mxu1 %v2844_v50  ;;  %1630 = vmatprep.subr.mxu0 %v4373_v37  ;;  %v4378_v50 = vand.u32 4294901760, %v4377_v22 }
 0x18c   : > { %2066 = vmatprep.subr.mxu1 %v2846_v51  ;;  %1633 = vmatpush2.msra.mxu0 %v4374_v39  ;;  %v4379_v51 = vand.u32 4294901760, %v2819_v28  ;;  %v4383_v28 = vand.u32 4294901760, %v2871_v61  ;;  %v4387_v61 = vand.u32 4294901760, %v2904_v32  ;;  %v4397_v32 = vand.u32 4294901760, %v4294_v7 }
 0x18d   : > { %2068 = vmatpush1.msra.mxu1 %v2848_v52  ;;  %1636 = vmatprep.subr.mxu0 %v4375_v25  ;;  %v4380_v52 = vand.u32 4294901760, %v2822_v29  ;;  %v4384_v29 = vand.u32 4294901760, %v2877_v63  ;;  %v4389_v63 = vand.u32 4294901760, %v2976_v19  ;;  %v4405_v19 = vld [vmem:[#allocation34_spill] sm:$0xff] }
 0x18e   : > { %2070 = vmatprep.subr.mxu1 %v2860_v57  ;;  %1639 = vmatpush2.msra.mxu0 %v4376_v21  ;;  %v4381_v57 = vand.u32 4294901760, %v2865_v59  ;;  %v4385_v59 = vand.u32 4294901760, %v2880_v1  ;;  %v4390_v1 = vand.u32 4294901760, %v4289_v18  ;;  %v4417_v18 = vld [vmem:[#allocation42_spill] sm:$0xff] }
 0x18f   : > { %2072 = vmatpush1.msra.mxu1 %v2862_v58  ;;  %1645 = vmatmul.mubr.f32.vlgmr.msra.gmra.mxu0 %v3547_v0  ;;  %v4382_v58 = vand.u32 4294901760, %v2868_v60  ;;  %v4386_v60 = vand.u32 4294901760, %v2896_v11  ;;  %v4393_v11 = vand.u32 4294901760, %v4292_v34  ;;  %v4415_v0 = vld [vmem:[#allocation29_spill] sm:$0xff]  ;;  %v4420_v34 = vld [vmem:[#allocation43_spill] sm:$0xff] }
 0x190   : > { %1795 = vmatprep.subr.mxu0 %v4378_v50  ;;  %2074 = vmatprep.subr.mxu1 %v2873_v62  ;;  %v4388_v62 = vand.u32 4294901760, %v2909_v33  ;;  %v4398_v33 = vand.u32 4294901760, %v4296_v20  ;;  %v4424_v20 = vld [vmem:[#allocation35_spill] sm:$0xff]  ;;  %v4429_v50 = vld [vmem:[#allocation50_spill] sm:$0xff] }
 0x191   : > { %1799 = vmatpush1.msra.mxu0 %v4379_v51  ;;  %2049 = vmatprep.mubr.f32.mxu0 %v3549_v45  ;;  %v4416_v45 = vand.u32 4294901760, %v4415_v0  ;;  %v4430_v51 = vld [vmem:[#allocation39_spill] sm:$0xff] }
 0x192   : > { %2076 = vmatpush1.msra.mxu1 %v2882_v2  ;;  %1803 = vmatprep.subr.mxu0 %v4380_v52  ;;  %v4391_v2 = vand.u32 4294901760, %v4290_v9  ;;  %v4418_v9 = vld [vmem:[#allocation31_spill] sm:$0xff]  ;;  %v4431_v52 = vand.u32 4294901760, %v4430_v51  ;;  %v4482_v51 = vld [vmem:[#allocation86_spill] sm:$0xff] }
 0x193   : > { %2078 = vmatprep.subr.mxu1 %v2884_v3  ;;  %1807 = vmatpush1.msra.mxu0 %v4381_v57  ;;  %v4392_v3 = vand.u32 4294901760, %v4291_v27  ;;  %v4419_v27 = vand.u32 4294901760, %v4418_v9  ;;  %v4432_v57 = vld [vmem:[#allocation53_spill] sm:$0xff]  ;;  %v4466_v0 = vld [vmem:[#allocation63_spill] sm:$0xff]  ;;  %v4469_v9 = vand.u32 4294901760, %v4346_v13 }
 0x194   : > { %2080 = vmatpush1.msra.mxu1 %v2954_v53  ;;  %1811 = vmatprep.subr.mxu0 %v4382_v58  ;;  %v4400_v53 = vld [vmem:[#allocation21_spill] sm:$0xff]  ;;  %v4433_v58 = vld [vmem:[#allocation40_spill] sm:$0xff] }
 0x195   : > { %2082 = vmatprep.subr.mxu1 %v2956_v54  ;;  %1815 = vmatpush1.msra.mxu0 %v4383_v28  ;;  %v4401_v54 = vand.u32 4294901760, %v4400_v53  ;;  %v4434_v28 = vand.u32 4294901760, %v4433_v58  ;;  %v4451_v53 = vld [vmem:[#allocation52_spill] sm:$0xff]  ;;  %v4485_v58 = vld [vmem:[#allocation89_spill] sm:$0xff] }
 0x196   : > { %2084 = vmatpush1.msra.mxu1 %v2958_v55  ;;  %1819 = vmatprep.subr.mxu0 %v4384_v29  ;;  %v4402_v55 = vld [vmem:[#allocation32_spill] sm:$0xff]  ;;  %v4435_v29 = vld [vmem:[#allocation54_spill] sm:$0xff] }
 0x197   : > { %2086 = vmatprep.subr.mxu1 %v2969_v26  ;;  %1823 = vmatpush1.msra.mxu0 %v4385_v59  ;;  %v4403_v26 = vld [vmem:[#allocation22_spill] sm:$0xff]  ;;  %v4436_v59 = vld [vmem:[#allocation44_spill] sm:$0xff] }
 0x198   : > { %2088 = vmatpush1.msra.mxu1 %v2971_v31  ;;  %1827 = vmatprep.subr.mxu0 %v4386_v60  ;;  %v4404_v31 = vand.u32 4294901760, %v4403_v26  ;;  %v4437_v60 = vand.u32 4294901760, %v4436_v59  ;;  %v4454_v26 = vld [vmem:[#allocation55_spill] sm:$0xff] }
 0x199   : > { %2090 = vmatprep.subr.mxu1 %v2984_v30  ;;  %1831 = vmatpush1.msra.mxu0 %v4387_v61  ;;  %v4395_v30 = vand.u32 4294901760, %v3024_v10  ;;  %v4409_v10 = vld [vmem:[#allocation24_spill] sm:$0xff]  ;;  %v4438_v61 = vld [vmem:[#allocation57_spill] sm:$0xff]  ;;  %v4488_v59 = vld [vmem:[#allocation79_spill] sm:$0xff] }
 0x19a   : > { %2092 = vmatpush1.msra.mxu1 %v2994_v38  ;;  %1835 = vmatprep.subr.mxu0 %v4388_v62  ;;  %v4406_v38 = vld [vmem:[#allocation23_spill] sm:$0xff]  ;;  %v4439_v62 = vld [vmem:[#allocation46_spill] sm:$0xff] }
 0x19b   : > { %2094 = vmatprep.subr.mxu1 %v2996_v14  ;;  %1839 = vmatpush1.msra.mxu0 %v4389_v63  ;;  %v4394_v14 = vand.u32 4294901760, %v3018_v46  ;;  %v4399_v46 = vand.u32 4294901760, %v4298_v56  ;;  %v4426_v56 = vld [vmem:[#allocation48_spill] sm:$0xff]  ;;  %v4440_v63 = vand.u32 4294901760, %v4439_v62  ;;  %v4491_v62 = vand.u32 4294901760, %v4361_v23 }
 0x19c   : > { %2096 = vmatpush1.msra.mxu1 %v3057_v40  ;;  %1843 = vmatprep.subr.mxu0 %v4390_v1  ;;  %v4407_v40 = vand.u32 4294901760, %v4406_v38  ;;  %v4441_v1 = vld [vmem:[#allocation58_spill] sm:$0xff]  ;;  %v4457_v38 = vld [vmem:[#allocation56_spill] sm:$0xff]  ;;  %v4499_v23 = vand.u32 4294901760, %v4370_v47  ;;  %v4506_v47 = vld [vmem:[#allocation101_spill] sm:$0xff] }
 0x19d   : > { %2098 = vmatprep.subr.mxu1 %v3059_v6  ;;  %1847 = vmatpush1.msra.mxu0 %v4391_v2  ;;  %v4408_v6 = vld [vmem:[#allocation36_spill] sm:$0xff]  ;;  %v4442_v2 = vld [vmem:[#allocation47_spill] sm:$0xff] }
 0x19e   : > { %2100 = vmatpush1.msra.mxu1 %v3061_v36  ;;  %1851 = vmatprep.subr.mxu0 %v4392_v3  ;;  %v4396_v36 = vand.u32 4294901760, %v3033_v16  ;;  %v4410_v16 = vand.u32 4294901760, %v4409_v10  ;;  %v4443_v3 = vand.u32 4294901760, %v4442_v2  ;;  %v4460_v10 = vld [vmem:[#allocation60_spill] sm:$0xff] }
 0x19f   : > { %2102 = vmatprep.subr.mxu1 %v3065_v5  ;;  %1855 = vmatpush1.msra.mxu0 %v4393_v11  ;;  %v4411_v5 = vld [vmem:[#allocation38_spill] sm:$0xff]  ;;  %v4444_v11 = vld [vmem:[#allocation59_spill] sm:$0xff]  ;;  %v4494_v2 = vld [vmem:[#allocation84_spill] sm:$0xff] }
 0x1a0   : > { %2104 = vmatpush1.msra.mxu1 %v3067_v49  ;;  %1859 = vmatprep.subr.mxu0 %v4394_v14  ;;  %v4412_v49 = vld [vmem:[#allocation27_spill] sm:$0xff]  ;;  %v4445_v14 = vld [vmem:[#allocation49_spill] sm:$0xff] }
 0x1a1   : > { %2106 = vmatprep.subr.mxu1 %v3079_v48  ;;  %1863 = vmatpush1.msra.mxu0 %v4395_v30  ;;  %v4413_v48 = vand.u32 4294901760, %v4412_v49  ;;  %v4446_v30 = vand.u32 4294901760, %v4445_v14  ;;  %v4463_v49 = vld [vmem:[#allocation62_spill] sm:$0xff] }
 0x1a2   : > { %2108 = vmatpush1.msra.mxu1 %v3088_v41  ;;  %1867 = vmatprep.subr.mxu0 %v4396_v36  ;;  %v4414_v41 = vld [vmem:[#allocation41_spill] sm:$0xff]  ;;  %v4498_v14 = vld [vmem:[#allocation102_spill] sm:$0xff] }
 0x1a3   : > { %2110 = vmatprep.subr.mxu1 %v4293_v15  ;;  %1871 = vmatpush1.msra.mxu0 %v4397_v32  ;;  %v4421_v15 = vld [vmem:[#allocation33_spill] sm:$0xff]  ;;  %v4448_v32 = vld [vmem:[#allocation51_spill] sm:$0xff] }
 0x1a4   : > { %2112 = vmatpush1.msra.mxu1 %v4295_v42  ;;  %1875 = vmatprep.subr.mxu0 %v4398_v33  ;;  %v4422_v7 = vand.u32 4294901760, %v4421_v15  ;;  %v4423_v42 = vld [vmem:[#allocation45_spill] sm:$0xff]  ;;  %v4449_v33 = vand.u32 4294901760, %v4448_v32  ;;  %v4505_v32 = vand.u32 4294901760, %v4376_v21 }
 0x1a5   : > { %2114 = vmatprep.subr.mxu1 %v4297_v8  ;;  %1879 = vmatpush1.msra.mxu0 %v4399_v46  ;;  %v4425_v8 = vand.u32 4294901760, %v4424_v20  ;;  %v4447_v36 = vld [vmem:[#allocation61_spill] sm:$0xff]  ;;  %v4450_v46 = vld [vmem:[#allocation64_spill] sm:$0xff] }
 0x1a6   : > { %2116 = vmatpush1.msra.mxu1 %v4299_v35  ;;  %1883 = vmatprep.subr.mxu0 %v4401_v54  ;;  %v4427_v35 = vld [vmem:[#allocation37_spill] sm:$0xff]  ;;  %v4452_v54 = vand.u32 4294901760, %v4451_v53 }
 0x1a7   : > { %2118 = vmatprep.subr.mxu1 %v4402_v55  ;;  %1887 = vmatpush1.msra.mxu0 %v4404_v31  ;;  %v4428_v22 = vand.u32 4294901760, %v4427_v35  ;;  %v4453_v55 = vld [vmem:[#allocation66_spill] sm:$0xff]  ;;  %v4455_v31 = vand.u32 4294901760, %v4454_v26 }
 0x1a8   : > { %2120 = vmatpush1.msra.mxu1 %v4405_v19  ;;  %1891 = vmatprep.subr.mxu0 %v4407_v40  ;;  %v4456_v19 = vld [vmem:[#allocation69_spill] sm:$0xff]  ;;  %v4458_v40 = vand.u32 4294901760, %v4457_v38 }
 0x1a9   : > { %2122 = vmatprep.subr.mxu1 %v4408_v6  ;;  %1895 = vmatpush1.msra.mxu0 %v4410_v16  ;;  %v4459_v6 = vld [vmem:[#allocation70_spill] sm:$0xff]  ;;  %v4461_v16 = vand.u32 4294901760, %v4460_v10 }
 0x1aa   : > { %2124 = vmatpush2.msra.mxu1 %v4411_v5  ;;  %1899 = vmatprep.subr.mxu0 %v4413_v48  ;;  %v4462_v5 = vld [vmem:[#allocation73_spill] sm:$0xff]  ;;  %v4464_v48 = vand.u32 4294901760, %v4463_v49 }
 0x1ab   : > { %2126 = vmatprep.subr.mxu1 %v4414_v41  ;;  %1903 = vmatpush1.msra.mxu0 %v4416_v45  ;;  %v4465_v41 = vld [vmem:[#allocation74_spill] sm:$0xff]  ;;  %v4467_v45 = vand.u32 4294901760, %v4466_v0 }
 0x1ac   : > { %2128 = vmatpush2.msra.mxu1 %v4417_v18  ;;  %1907 = vmatprep.subr.mxu0 %v4419_v27  ;;  %v4468_v18 = vld [vmem:[#allocation75_spill] sm:$0xff]  ;;  %v4470_v27 = vld [vmem:[#allocation77_spill] sm:$0xff] }
 0x1ad   : > { %2130 = vmatprep.subr.mxu1 %v4420_v34  ;;  %1911 = vmatpush1.msra.mxu0 %v4422_v7  ;;  %v4471_v34 = vld [vmem:[#allocation67_spill] sm:$0xff]  ;;  %v4473_v7 = vld [vmem:[#allocation80_spill] sm:$0xff] }
 0x1ae   : > { %2132 = vmatpush2.msra.mxu1 %v4423_v42  ;;  %1915 = vmatprep.subr.mxu0 %v4425_v8  ;;  %v4472_v15 = vand.u32 4294901760, %v4471_v34  ;;  %v4474_v42 = vld [vmem:[#allocation68_spill] sm:$0xff]  ;;  %v4476_v8 = vld [vmem:[#allocation82_spill] sm:$0xff] }
 0x1af   : > { %2134 = vmatprep.subr.mxu1 %v4426_v56  ;;  %1919 = vmatpush1.msra.mxu0 %v4428_v22  ;;  %v4475_v20 = vand.u32 4294901760, %v4474_v42  ;;  %v4477_v56 = vld [vmem:[#allocation71_spill] sm:$0xff]  ;;  %v4479_v22 = vld [vmem:[#allocation85_spill] sm:$0xff] }
 0x1b0   : > { %2136 = vmatpush2.msra.mxu1 %v4429_v50  ;;  %1923 = vmatprep.subr.mxu0 %v4431_v52  ;;  %v4478_v35 = vand.u32 4294901760, %v4477_v56  ;;  %v4480_v50 = vld [vmem:[#allocation72_spill] sm:$0xff] }
 0x1b1   : > { %2138 = vmatprep.subr.mxu1 %v4432_v57  ;;  %1927 = vmatpush2.msra.mxu0 %v4434_v28  ;;  %v4481_v13 = vand.u32 4294901760, %v4480_v50  ;;  %v4483_v52 = vld [vmem:[#allocation76_spill] sm:$0xff]  ;;  %v4486_v28 = vand.u32 4294901760, %v4357_v4  ;;  %v4495_v4 = vand.u32 4294901760, %v4494_v2 }
 0x1b2   : > { %2140 = vmatpush2.msra.mxu1 %v4435_v29  ;;  %1931 = vmatprep.subr.mxu0 %v4437_v60  ;;  %v4484_v57 = vand.u32 4294901760, %v4483_v52  ;;  %v4487_v29 = vld [vmem:[#allocation90_spill] sm:$0xff]  ;;  %v4489_v60 = vand.u32 4294901760, %v4488_v59 }
 0x1b3   : > { %2142 = vmatprep.subr.mxu1 %v4438_v61  ;;  %1935 = vmatpush2.msra.mxu0 %v4440_v63  ;;  %v4490_v61 = vld [vmem:[#allocation91_spill] sm:$0xff] }
 0x1b4   : > { %2144 = vmatpush2.msra.mxu1 %v4441_v1  ;;  %1939 = vmatprep.subr.mxu0 %v4443_v3  ;;  %v4492_v63 = vld [vmem:[#allocation83_spill] sm:$0xff] }
 0x1b5   : > { %2146 = vmatprep.subr.mxu1 %v4444_v11  ;;  %1943 = vmatpush2.msra.mxu0 %v4446_v30  ;;  %v4493_v1 = vand.u32 4294901760, %v4492_v63  ;;  %v4496_v3 = vld [vmem:[#allocation87_spill] sm:$0xff]  ;;  %v4501_v30 = vand.u32 4294901760, %v4372_v12 }
 0x1b6   : > { %2148 = vmatpush2.msra.mxu1 %v4447_v36  ;;  %1947 = vmatprep.subr.mxu0 %v4449_v33  ;;  %v4497_v11 = vand.u32 4294901760, %v4496_v3  ;;  %v4503_v36 = vand.u32 4294901760, %v4374_v39  ;;  %v4508_v39 = vsub.s32 1, %v4506_v47 }
 0x1b7   : > { %2150 = vmatprep.subr.mxu1 %v4450_v46  ;;  %1951 = vmatpush2.msra.mxu0 %v4452_v54 }
 0x1b8   : > { %2152 = vmatpush2.msra.mxu1 %v4453_v55  ;;  %1955 = vmatprep.subr.mxu0 %v4455_v31 }
 0x1b9   : > { %2154 = vmatprep.subr.mxu1 %v4456_v19  ;;  %1959 = vmatpush2.msra.mxu0 %v4458_v40 }
 0x1ba   : > { %2156 = vmatpush2.msra.mxu1 %v4459_v6  ;;  %1963 = vmatprep.subr.mxu0 %v4461_v16 }
 0x1bb   : > { %2158 = vmatprep.subr.mxu1 %v4462_v5  ;;  %1967 = vmatpush2.msra.mxu0 %v4464_v48 }
 0x1bc   : > { %2160 = vmatpush2.msra.mxu1 %v4465_v41  ;;  %1971 = vmatprep.subr.mxu0 %v4467_v45 }
 0x1bd   : > { %2162 = vmatprep.subr.mxu1 %v4468_v18  ;;  %1975 = vmatpush2.msra.mxu0 %v4469_v9 }
 0x1be   : > { %2164 = vmatpush2.msra.mxu1 %v4470_v27  ;;  %1979 = vmatprep.subr.mxu0 %v4472_v15 }
 0x1bf   : > { %2166 = vmatprep.subr.mxu1 %v4473_v7  ;;  %1983 = vmatpush2.msra.mxu0 %v4475_v20 }
 0x1c0   : > { %2168 = vmatpush2.msra.mxu1 %v4476_v8  ;;  %1987 = vmatprep.subr.mxu0 %v4478_v35 }
 0x1c1   : > { %2170 = vmatprep.subr.mxu1 %v4479_v22  ;;  %1991 = vmatpush2.msra.mxu0 %v4481_v13 }
 0x1c2   : > { %2172 = vmatpush2.msra.mxu1 %v4482_v51  ;;  %1995 = vmatprep.subr.mxu0 %v4484_v57 }
 0x1c3   : > { %2174 = vmatprep.subr.mxu1 %v4485_v58  ;;  %1999 = vmatpush2.msra.mxu0 %v4486_v28 }
 0x1c4   : > { %2176 = vmatpush2.msra.mxu1 %v4487_v29  ;;  %2003 = vmatprep.subr.mxu0 %v4489_v60 }
 0x1c5   : > { %2178 = vmatprep.subr.mxu1 %v4490_v61  ;;  %2007 = vmatpush2.msra.mxu0 %v4491_v62 }
 0x1c6   : > { %2180 = vmatpush2.msra.mxu1 %v4362_v24  ;;  %2011 = vmatprep.subr.mxu0 %v4493_v1  ;;  %v4500_v24 = vand.u32 4294901760, %v4371_v44  ;;  %v898_v44 = vld [vmem:[%s3935_s4] sm:$0x3] }
 0x1c7   : > { %2182 = vmatprep.subr.mxu1 %v4364_v17  ;;  %2015 = vmatpush2.msra.mxu0 %v4495_v4  ;;  %v4502_v17 = vand.u32 4294901760, %v4373_v37  ;;  %v4507_v37 = vsub.s32 0, %v4506_v47  ;;  %v907_v46 = vrot.slane %v898_v44, %v4508_v39 }
 0x1c8   : > { %2184 = vmatpush2.msra.mxu1 %v4366_v43  ;;  %2019 = vmatprep.subr.mxu0 %v4497_v11  ;;  %v4504_v43 = vand.u32 4294901760, %v4375_v25 }
 0x1c9   : > { %2188 = vmatmul.mubr.f32.vlgmr.msra.gmra.mxu1 %v4498_v14  ;;  %2023 = vmatpush2.msra.mxu0 %v4499_v23  ;;  %v903_v33 = vrot.slane %v898_v44, %v4507_v37 }
 0x1ca   : > { %2027 = vmatprep.subr.mxu0 %v4500_v24 }
 0x1cb   : > { %2031 = vmatpush2.msra.mxu0 %v4501_v30 }
 0x1cc   : > { %2035 = vmatprep.subr.mxu0 %v4502_v17 }
 0x1cd   : > { %2039 = vmatpush2.msra.mxu0 %v4503_v36 }
 0x1ce   : > { %2043 = vmatprep.subr.mxu0 %v4504_v43 }
 0x1cf   : > { %2047 = vmatpush2.msra.mxu0 %v4505_v32 }
 0x1d0   : > { %2051 = vmatmul.mubr.f32.vlgmr.msra.gmra.mxu0 %v4498_v14 }
 0x206   : > { %v1443_v53 = vpop.f32.mrf.mxu1 }
 0x208   : > { %v1445_v26 = vpop.f32.mrf.mxu1 }
 0x20e   : > { %v1050_v12 = vpop.f32.mrf.mxu0 }
 0x20f   : > { %v1051_v54 = vadd.f32 %v1050_v12, %v903_v33 }
 0x210   : > { %v1052_v25 = vpop.f32.mrf.mxu0 }
 0x211   : > { %v1053_v21 = vadd.f32 %v1052_v25, %v907_v46  ;;  %v1444_v31 = vadd.f32 %v1443_v53, %v1051_v54 }
 0x213   : > { %v1446_v6 = vadd.f32 %v1445_v26, %v1053_v21 }
 0x247   : > { %v1787_v19 = vpop.f32.mrf.mxu1 }
 0x249   : > { %v1789_v16 = vpop.f32.mrf.mxu1 }
 0x24f   : > { %v1646_v55 = vpop.f32.mrf.mxu0 }
 0x250   : > { %v1647_v40 = vadd.f32 %v1646_v55, %v1444_v31 }
 0x251   : > { %v1648_v38 = vpop.f32.mrf.mxu0 }
 0x252   : > { %v1649_v10 = vadd.f32 %v1648_v38, %v1446_v6  ;;  %v1788_v5 = vadd.f32 %v1787_v19, %v1647_v40 }
 0x254   : > { %v1790_v0 = vadd.f32 %v1789_v16, %v1649_v10 }
 0x289   : > { %v2189_v49 = vpop.f32.mrf.mxu1 }
 0x28b   : > { %v2191_v27 = vpop.f32.mrf.mxu1 }
 0x290   : > { %v2052_v48 = vpop.f32.mrf.mxu0 }
 0x291   : > { %v2053_v41 = vadd.f32 %v2052_v48, %v1788_v5 }
 0x292   : > { %v2054_v45 = vpop.f32.mrf.mxu0 }
 0x293   : > { %v2190_v18 = vadd.f32 %v2189_v49, %v2053_v41  ;;  %v2055_v9 = vadd.f32 %v2054_v45, %v1790_v0 }
 0x295   : > { %2194 = vst [vmem:[%s304_s17] sm:$0xff] %v2190_v18  ;;  %v2192_v34 = vadd.f32 %v2191_v27, %v2055_v9 }
 0x297   : > { %2195 = vst [vmem:[%s304_s17 + $0x8] sm:$0xff] %v2192_v34 }
 0x298   : > { %2530 = shalt.err (!%p2527_p5)
}
 0x299   : > { %s2531_s1 = scalar_lea.hbm %s2211_s6, 256  ;;  %s2535_s28 = scalar_lea.hbm %s3936_s5, 512 }
 0x29a   : > { %p2532_p10 = scmp.ne.s32.totalorder %s2211_s6, %s2531_s1  ;;  %p2536_p6 = scmp.lt.s32.totalorder %s2211_s6, %s3936_s5 }
 0x29b   : > { %p2537_p12 = scmp.lt.s32.totalorder %s2535_s28, %s2531_s1 }
 0x29c   : > { %p2533_p1 = pnand %p2532_p10, %p2735_p7 }
 0x29d   : > { %p2538_p3 = por %p2537_p12, %p2536_p6 }
 0x29e   : > { %p2534_p4 = pneg %p2533_p1 }
 0x2a0   : > { %p2539_p8 = pnand %p2538_p3, %p2534_p4 }
 0x2a2   : > { %2542 = shalt.err (!%p2539_p8)
}
 0x2a3   : > { %2357 = dma.vmem_to_hbm [thread:$0]  (%p2735_p7), %s2214_s27, 256, %s2211_s6, %s2197_s11  }
 0x2a4 PF: > { %s2225_s16 = sand.u32 1, %s2581_s18   ;;  %p4509_p9 = scmp.ne.s32.totalorder %s4173_s29, 0 }
 0x2a5   : > { %p4510_p11 = scmp.ge.s32.totalorder %s2601_s23, 2  ;;  %s2226_s17 = scalar_lea.sflag [#allocation4], %s2225_s16 }
 0x2a7   : > { %p2371_p2 = pnand %p4510_p11, %p4509_p9 }
 0x2a9   : > { %p2372_p13 = pneg %p2371_p2 }
 0x2ab   : > { %2576 = dma.done.wait (%p2372_p13), %s2226_s17, 256  }
 0x2ac   : > { %2578 = vsyncadd (%p2372_p13), %s2226_s17, 4294967040  ;;  %s22_s23 = sadd.s32 1, %s2601_s23   ;;  %s4511_s18 = smov %s2585_s19 }
 0x2ad   : > { %p19_p0 = scmp.ge.s32.totalorder %s22_s23, 4   ;;  %s4512_s19 = smov %s2589_s20 }
 0x2ae   : > { %s4513_s20 = smov %s2744_s12  ;;  %s4514_s21 = smov %s2597_s22 }
 0x2af   : > { %s4515_s22 = smov %s4517_s25  ;;  %21 = sbr.rel (!%p19_p0) target bundleno = 9 (0x9), region = 97 }
 0x2b4   :  { %2231 = vsyncpa [#allocation3], 1 }
 0x2b5   :  { %2233 = vsyncpa [#allocation3 + $0x1], 1 }
 0x2b6   :  { %2234 = vsyncpa [#allocation6], 1 }
 0x2b7   :  { %2235 = vsyncpa [#allocation4], 1 }
 0x2b8   :  { %2237 = vsyncpa [#allocation4 + $0x1], 1 }

// kernel: tpu_custom_call.1
= control target key start
LH: loop header
LB: loop body
LE: loop exit
PB: predicated region body
PF: predicated region fallthrough
CT: control target
= control target key end

     0   :  { %s3931_s0 = inlined_call_operand.hbm [shape: f32[16,16], index: 0, kind: input, shape index: {}]   ;;  %s3932_s1 = inlined_call_operand.hbm [shape: f32[16,256], index: 1, kind: input, shape index: {}]   ;;  %s3933_s2 = inlined_call_operand.vmem [shape: f32[1,256], index: 2, kind: input, shape index: {}]   ;;  %s3934_s3 = inlined_call_operand.hbm [shape: f32[256,256], index: 3, kind: input, shape index: {}]   ;;  %s3935_s4 = inlined_call_operand.vmem [shape: f32[1,256], index: 4, kind: input, shape index: {}]   ;;  %s3936_s5 = inlined_call_operand.hbm [shape: f32[16,256], index: 5, kind: output, shape index: {}]  }
   0x1   :  { %4169 = sst [smem:[#allocation103_spill]] %s3932_s1 }
   0x2   :  { %10 = vsyncpa [#allocation3], 0 }
   0x3   :  { %12 = vsyncpa [#allocation3 + $0x1], 0 }
   0x4   :  { %13 = vsyncpa [#allocation6], 0 }
   0x5   :  { %14 = vsyncpa [#allocation4], 0 }
   0x6   :  { %16 = vsyncpa [#allocation4 + $0x1], 0  ;;  %s2640_s18 = smov 0   ;;  %s2642_s19 = smov 0  }
   0x7   :  { %s2644_s20 = smov 0   ;;  %s2646_s21 = smov 0  }
   0x8   :  { %s2648_s22 = smov 0   ;;  %s2650_s23 = smov 0  }
   0x9 LB: > { %s2327_s24 = sadd.s32 4294967295, %s2601_s23   ;;  %s2328_s25 = sadd.s32 4294967294, %s2601_s23   ;;  %s2601_s23 = sphi %s2650_s23, %s22_s23   ;;  %s2597_s22 = sphi %s2648_s22, %s4515_s22   ;;  %s2593_s21 = sphi %s2646_s21, %s4514_s21   ;;  %s2589_s20 = sphi %s2644_s20, %s4513_s20   ;;  %s2585_s19 = sphi %s2642_s19, %s4512_s19   ;;  %s2581_s18 = sphi %s2640_s18, %s4511_s18  }
   0xa   : > { %p54_p0 = scmp.ne.s32.totalorder %s2585_s19, %s2581_s18  ;;  %p2674_p1 = scmp.eq.s32.totalorder %s2327_s24, 0 }
   0xb   : > { %p2678_p2 = scmp.eq.s32.totalorder %s2327_s24, 1  ;;  %p180_p3 = scmp.eq.s32.totalorder %s2328_s25, 1 }
   0xc   : > { %s4170_s26 = scalar_select %p2674_p1, 1, 0 }
   0xd   : > { %p2684_p4 = por %p2674_p1, %p54_p0  ;;  %p2329_p5 = scmp.ge.s32.totalorder %s2601_s23, 1 }
   0xe   : > { %p2689_p6 = por %p180_p3, %p54_p0  ;;  %p187_p7 = scmp.lt.s32.totalorder %s2601_s23, 3 }
   0xf   : > { %s4172_s28 = scalar_select %p2684_p4, 1, 0 }
  0x10   : > { %s4173_s29 = scalar_select %p2689_p6, 1, 0 }
  0x11   : > { %p2694_p8 = pnand %p2329_p5, %p187_p7  ;;  %s2603_s6 = smov [#allocation5]  }
  0x12   : > { %s199_s7 = sshll.u32 %s2603_s6, 4  ;;  %s2604_s9 = smov [#allocation7]   ;;  %s200_s7 = int_to_ptr.vmem [resolvable:$true] %s199_s7 }
  0x13   : > { %p2359_p9 = pneg %p2694_p8  ;;  %s218_s10 = sshll.u32 %s2604_s9, 4  ;;  %s219_s10 = int_to_ptr.vmem [resolvable:$true] %s218_s10 }
  0x14   : > { %s2448_s11 = scalar_lea.vmem %s200_s7, 512  ;;  %p2456_p5 = scmp.lt.s32.totalorder %s200_s7, %s200_s7 }
  0x15   : > { %p2703_p11 = pnand %p2359_p9, %p2674_p1  ;;  %p2449_p13 = scmp.ne.s32.totalorder %s200_s7, %s2448_s11 }
  0x16   : > { %p2457_p7 = scmp.lt.s32.totalorder %s2448_s11, %s2448_s11 }
  0x17   : > { %p2439_p12 = pneg %p2703_p11 }
  0x18   : > { %p2458_p10 = por %p2457_p7, %p2456_p5 }
  0x19   : > { %p2451_p0 = pnand %p2449_p13, %p2439_p12 }
  0x1b   : > { %p2452_p3 = pneg %p2451_p0 }
  0x1d   : > { %p2459_p9 = pnand %p2458_p10, %p2452_p3 }
  0x1f   : > { %2462 = shalt.err (!%p2459_p9)
}
  0x20   : > { %s2605_s12 = smov 256   ;;  %s2606_s13 = smov 16  }
  0x21   : > { %s4176_s1 = sld [smem:[#allocation103_spill]]  ;;  %s2474_s16 = scalar_lea.vmem %s219_s10, 8192 }
  0x22   : > { %p2475_p6 = scmp.ne.s32.totalorder %s219_s10, %s2474_s16  ;;  %p2482_p1 = scmp.lt.s32.totalorder %s219_s10, %s219_s10 }
  0x23   : > { %p2483_p4 = scmp.lt.s32.totalorder %s2474_s16, %s2474_s16 }
  0x24   : > { %p2477_p13 = pnand %p2475_p6, %p2439_p12 }
  0x25   : > { %p2484_p5 = por %p2483_p4, %p2482_p1 }
  0x26   : > { %p2478_p0 = pneg %p2477_p13 }
  0x27   : > { %2362 = dma.hbm_to_vmem [thread:$0]  (!%p2703_p11), %s4176_s1, 512, %s200_s7, [#allocation6], %s2605_s12, %s2605_s12, %s2606_s13  }
  0x28   : > { %p2485_p10 = pnand %p2484_p5, %p2478_p0 }
  0x2a   : > { %2488 = shalt.err (!%p2485_p10)
}
  0x2b   : > { %2365 = dma.hbm_to_vmem [thread:$0]  (!%p2703_p11), %s3934_s3, 8192, %s219_s10, [#allocation6], %s2605_s12, %s2605_s12, %s2606_s13  }
  0x2c   : > { %s34_s25 = sadd.s32 1, %s2597_s22  ;;  %s41_s6 = sadd.s32 1, %s2589_s20 }
  0x2d   : > { %p36_p1 = scmp.ge.s32.totalorder %s34_s25, 2  ;;  %p48_p4 = scmp.ne.s32.totalorder %s2589_s20, %s2585_s19 }
  0x2e   : > { %p49_p6 = scmp.eq.s32.totalorder %s2601_s23, 0  ;;  %p2376_p12 = scmp.lt.s32.totalorder %s2601_s23, 2 }
  0x2f   : > { %s4517_s25 = smov (%p36_p1, %s34_s25), 0  ;;  %p2735_p7 = por %p2678_p2, %p48_p4 }
  0x30   : > { %p50_p3 = por %p49_p6, %p48_p4  ;;  %s38_s8 = ssub.s32 %s2597_s22, %s4517_s25 }
  0x31   : > { %s240_s9 = sand.u32 1, %s2589_s20   ;;  %p39_p9 = scmp.eq.s32.totalorder %s38_s8, 0 }
  0x32   : > { %s2334_s10 = sshll.u32 %s240_s9, 3  ;;  %s2335_s11 = sshll.u32 %s2597_s22, 7 }
  0x33   : > { %s2744_s12 = scalar_select %p39_p9, %s2589_s20, %s41_s6  }
  0x34   : > { %s249_s15 = scalar_lea.hbm %s3931_s0, %s2335_s11  ;;  %s244_s16 = scalar_lea.vmem [#allocation2], %s2334_s10 }
  0x35   : > { %s251_s17 = sshll.u32 %s244_s16, 4  ;;  %p2751_p11 = pnand %p2376_p12, %p50_p3  ;;  %s252_s17 = int_to_ptr.vmem [resolvable:$true] %s251_s17 }
  0x36   : > { %s241_s24 = scalar_lea.sflag [#allocation3], %s240_s9  ;;  %s2502_s8 = scalar_lea.vmem %s252_s17, 128 }
  0x37   : > { %p2491_p2 = pneg %p2751_p11  ;;  %p2503_p13 = scmp.ne.s32.totalorder %s252_s17, %s2502_s8 }
  0x38   : > { %s2607_s6 = smov [#allocation2]  }
  0x39   : > { %p2505_p0 = pnand %p2503_p13, %p2491_p2  ;;  %s2507_s1 = sshll.u32 %s2607_s6, 4  ;;  %s2508_s1 = int_to_ptr.vmem [resolvable:$false] %s2507_s1 }
  0x3a   : > { %s2509_s11 = scalar_lea.vmem %s2508_s1, 256  ;;  %p2510_p10 = scmp.lt.s32.totalorder %s252_s17, %s2508_s1 }
  0x3b   : > { %p2506_p5 = pneg %p2505_p0  ;;  %p2511_p1 = scmp.lt.s32.totalorder %s2509_s11, %s2502_s8 }
  0x3d   : > { %p2512_p4 = por %p2511_p1, %p2510_p10 }
  0x3f   : > { %p2513_p6 = pnand %p2512_p4, %p2506_p5 }
  0x41   : > { %2516 = shalt.err (!%p2513_p6)
}
  0x42   : > { %2369 = dma.hbm_to_vmem [thread:$0]  (!%p2751_p11), %s249_s15, 128, %s252_s17, %s241_s24  }
  0x43   : > { %260 = sbr.rel (%p2694_p8) target bundleno = 676 (0x2a4), region = 40 }
  0x48   : > { %s2762_s9 = sand.u32 1, %s2585_s19   ;;  %p4179_p12 = scmp.ne.s32.totalorder %s4172_s28, 0 }
  0x49   : > { %s2337_s10 = sshll.u32 %s2762_s9, 3  ;;  %s263_s13 = scalar_lea.sflag [#allocation3], %s2762_s9 }
  0x4a   : > { %s266_s14 = scalar_lea.vmem [#allocation2], %s2337_s10 }
  0x4b   : > { %2568 = dma.done.wait (%p4179_p12), %s263_s13, 128  }
  0x4c   : > { %2570 = vsyncadd (%p4179_p12), %s263_s13, 4294967168  ;;  %p4180_p3 = scmp.ne.s32.totalorder %s4170_s26, 0 }
  0x4e   : > { %2572 = dma.done.wait (%p4180_p3), [#allocation6], 8704  }
  0x4f   : > { %2574 = vsyncadd (%p4180_p3), [#allocation6], 4294958592  ;;  %v2608_v0 = vmov 0.0   ;;  %vm329_vm0 = vcmask 130048   ;;  %v316_v1 = vld [vmem:[#allocation5 + $0x18] sm:$0xff]  ;;  %v315_v2 = vld [vmem:[#allocation5 + $0x10] sm:$0xff] }
  0x50   : > { %401 = vmatprep.mubr.f32.mxu0 %v2608_v0  ;;  %497 = vmatprep.mubr.f32.mxu1 %v2608_v0  ;;  %v314_v3 = vld [vmem:[#allocation5 + $0x8] sm:$0xff]  ;;  %v2776_v4 = vand.u32 4294901760, %v316_v1  ;;  %v2778_v5 = vand.u32 4294901760, %v315_v2  ;;  %v313_v7 = vld [vmem:[#allocation5] sm:$0xff]  ;;  %v312_v8 = vld [vmem:[%s266_s14] sm:$0xff]  ;;  %s2340_s15 = sshll.u32 %s2762_s9, 4 }
  0x51   : > { %v2780_v6 = vand.u32 4294901760, %v314_v3  ;;  %v865_v9 = vld [vmem:[#allocation7 + $0xf8] sm:$0xff]  ;;  %v2782_v10 = vand.u32 4294901760, %v313_v7  ;;  %v331_v11 = vsel %vm329_vm0, %v312_v8, 0  ;;  %v864_v13 = vld [vmem:[#allocation7 + $0xf0] sm:$0xff]  ;;  %v863_v14 = vld [vmem:[#allocation7 + $0xe8] sm:$0xff] }
  0x52   : > { %v2784_v12 = vand.u32 4294901760, %v865_v9  ;;  %362 = vmatprep.subr.mxu0 %v2776_v4  ;;  %v2788_v15 = vsub.f32 %v316_v1, %v2776_v4  ;;  %v2790_v16 = vand.u32 4294901760, %v331_v11  ;;  %v2793_v17 = vsub.f32 %v315_v2, %v2778_v5  ;;  %v862_v37 = vld [vmem:[#allocation7 + $0xe0] sm:$0xff]  ;;  %v861_v38 = vld [vmem:[#allocation7 + $0xd8] sm:$0xff]  ;;  %v860_v39 = vld [vmem:[#allocation7 + $0xd0] sm:$0xff]  ;;  %s2346_s16 = sshll.u32 %s2593_s21, 8 }
  0x53   : > { %v2796_v18 = vsub.f32 %v314_v3, %v2780_v6  ;;  %364 = vmatpush1.msra.mxu0 %v2778_v5  ;;  %v2800_v19 = vsub.f32 %v313_v7, %v2782_v10  ;;  %v2805_v21 = vand.u32 4294901760, %v864_v13  ;;  %v2807_v22 = vand.u32 4294901760, %v863_v14  ;;  %v859_v44 = vld [vmem:[#allocation7 + $0xc8] sm:$0xff]  ;;  %v858_v45 = vld [vmem:[#allocation7 + $0xc0] sm:$0xff]  ;;  %v857_v48 = vld [vmem:[#allocation7 + $0xb8] sm:$0xff]  ;;  %s304_s17 = scalar_lea.vmem [#allocation8], %s2340_s15  ;;  %s2211_s6 = scalar_lea.hbm %s3936_s5, %s2346_s16 }
  0x54   : > { %4181 = vst [vmem:[#allocation12_spill] sm:$0xff] %v2784_v12  ;;  %v2803_v20 = vsub.f32 %v865_v9, %v2784_v12  ;;  %366 = vmatprep.subr.mxu0 %v2780_v6  ;;  %v443_v23 = vand.u32 4294901760, %v2788_v15  ;;  %v2812_v24 = vsub.f32 %v331_v11, %v2790_v16  ;;  %v449_v25 = vand.u32 4294901760, %v2793_v17  ;;  %v856_v53 = vld [vmem:[#allocation7 + $0xb0] sm:$0xff]  ;;  %v855_v54 = vld [vmem:[#allocation7 + $0xa8] sm:$0xff]  ;;  %s2213_s27 = sshll.u32 %s304_s17, 4  ;;  %s2214_s27 = int_to_ptr.vmem [resolvable:$true] %s2213_s27 }
  0x55   : > { %v455_v26 = vand.u32 4294901760, %v2796_v18  ;;  %368 = vmatpush1.msra.mxu0 %v2782_v10  ;;  %v461_v27 = vand.u32 4294901760, %v2800_v19  ;;  %v2819_v28 = vsub.f32 %v864_v13, %v2805_v21  ;;  %v2822_v29 = vsub.f32 %v863_v14, %v2807_v22  ;;  %s2197_s11 = scalar_lea.sflag [#allocation4], %s2762_s9  ;;  %s2517_s10 = scalar_lea.vmem %s2214_s27, 256 }
  0x56   : > { %4182 = vst [vmem:[#allocation13_spill] sm:$0xff] %v2803_v20  ;;  %v444_v30 = vsub.f32 %v2788_v15, %v443_v23  ;;  %v404_v31 = vand.u32 4294901760, %v2812_v24  ;;  %v450_v32 = vsub.f32 %v2793_v17, %v449_v25  ;;  %535 = vmatprep.subr.mxu0 %v2788_v15  ;;  %v3954_v35 = vand.u32 4294901760, %v2803_v20  ;;  %p2518_p8 = scmp.ne.s32.totalorder %s2214_s27, %s2517_s10  ;;  %s2609_s21 = smov [#allocation8]  }
  0x57   : > { %v456_v33 = vsub.f32 %v2796_v18, %v455_v26  ;;  %v462_v34 = vsub.f32 %v2800_v19, %v461_v27  ;;  %v3952_v36 = vand.u32 4294901760, %v2819_v28  ;;  %v3949_v47 = vand.u32 4294901760, %v2822_v29  ;;  %s2521_s13 = sshll.u32 %s2609_s21, 4  ;;  %s2522_s13 = int_to_ptr.vmem [resolvable:$false] %s2521_s13 }
  0x58   : > { %v445_v40 = vand.u32 4294901760, %v444_v30  ;;  %v405_v41 = vsub.f32 %v2812_v24, %v404_v31  ;;  %v451_v42 = vand.u32 4294901760, %v450_v32  ;;  %v2844_v50 = vand.u32 4294901760, %v862_v37  ;;  %p2519_p9 = pnand %p2518_p8, %p2735_p7  ;;  %s2523_s14 = scalar_lea.vmem %s2522_s13, 512 }
  0x59   : > { %v457_v43 = vand.u32 4294901760, %v456_v33  ;;  %v463_v46 = vand.u32 4294901760, %v462_v34  ;;  %v2846_v51 = vand.u32 4294901760, %v861_v38  ;;  %v2848_v52 = vand.u32 4294901760, %v860_v39  ;;  %p2524_p2 = scmp.lt.s32.totalorder %s2214_s27, %s2522_s13  ;;  %p2525_p13 = scmp.lt.s32.totalorder %s2523_s14, %s2517_s10 }
  0x5a   : > { %446 = vmatprep.subr.mxu1 %v445_v40  ;;  %v406_v49 = vand.u32 4294901760, %v405_v41  ;;  %v2853_v55 = vsub.f32 %v2803_v20, %v3954_v35  ;;  %v2858_v56 = vsub.f32 %v2819_v28, %v3952_v36  ;;  %v2860_v57 = vand.u32 4294901760, %v859_v44  ;;  %v852_v40 = vld [vmem:[#allocation7 + $0x90] sm:$0xff]  ;;  %p2520_p11 = pneg %p2519_p9 }
  0x5b   : > { %452 = vmatpush1.msra.mxu1 %v451_v42  ;;  %v2862_v58 = vand.u32 4294901760, %v858_v45  ;;  %v2865_v59 = vsub.f32 %v862_v37, %v2844_v50  ;;  %v2868_v60 = vsub.f32 %v861_v38, %v2846_v51  ;;  %v2871_v61 = vsub.f32 %v860_v39, %v2848_v52  ;;  %v854_v38 = vld [vmem:[#allocation7 + $0xa0] sm:$0xff]  ;;  %v853_v39 = vld [vmem:[#allocation7 + $0x98] sm:$0xff]  ;;  %p2526_p0 = por %p2525_p13, %p2524_p2 }
  0x5c   : > { %407 = vmatmul.mubr.f32.vlgmr.msra.gmra.mxu0 %v406_v49  ;;  %458 = vmatprep.subr.mxu1 %v457_v43  ;;  %v2873_v62 = vand.u32 4294901760, %v857_v48  ;;  %v2877_v63 = vsub.f32 %v859_v44, %v2860_v57  ;;  %v2882_v2 = vand.u32 4294901760, %v856_v53  ;;  %v2884_v3 = vand.u32 4294901760, %v855_v54  ;;  %v851_v43 = vld [vmem:[#allocation7 + $0x88] sm:$0xff]  ;;  %v850_v44 = vld [vmem:[#allocation7 + $0x80] sm:$0xff] }
  0x5d   : > { %538 = vmatpush1.msra.mxu0 %v2793_v17  ;;  %464 = vmatpush1.msra.mxu1 %v463_v46  ;;  %v2880_v1 = vsub.f32 %v858_v45, %v2862_v58  ;;  %v2891_v7 = vsub.f32 %v2822_v29, %v3949_v47  ;;  %v3947_v8 = vand.u32 4294901760, %v2865_v59  ;;  %v3946_v9 = vand.u32 4294901760, %v2868_v60  ;;  %v842_v47 = vld [vmem:[#allocation7 + $0x40] sm:$0xff]  ;;  %p2527_p5 = pnand %p2526_p0, %p2520_p11 }
  0x5e   : > { %541 = vmatprep.subr.mxu0 %v2796_v18  ;;  %499 = vmatmul.mubr.f32.vlgmr.msra.gmra.mxu1 %v2790_v16  ;;  %v2896_v11 = vsub.f32 %v857_v48, %v2873_v62  ;;  %v3945_v13 = vand.u32 4294901760, %v2871_v61  ;;  %v3942_v14 = vand.u32 4294901760, %v2877_v63  ;;  %v2904_v32 = vsub.f32 %v856_v53, %v2882_v2  ;;  %v849_v48 = vld [vmem:[#allocation7 + $0x78] sm:$0xff] }
  0x5f   : > { %544 = vmatpush1.msra.mxu0 %v2800_v19  ;;  %577 = vmatprep.mubr.f32.mxu0 %v2608_v0  ;;  %v3940_v30 = vand.u32 4294901760, %v2880_v1  ;;  %v2909_v33 = vsub.f32 %v855_v54, %v2884_v3  ;;  %v2917_v34 = vsub.f32 %v2865_v59, %v3947_v8  ;;  %v1059_v41 = vand.u32 4294901760, %v2853_v55 }
  0x60   : > { %615 = vmatprep.subr.mxu1 %v2776_v4  ;;  %580 = vmatmul.mubr.f32.vlgmr.msra.gmra.mxu0 %v2812_v24  ;;  %v3941_v37 = vand.u32 4294901760, %v2896_v11  ;;  %v1065_v15 = vand.u32 4294901760, %v2858_v56  ;;  %v2929_v42 = vsub.f32 %v2868_v60, %v3946_v9  ;;  %v2936_v17 = vsub.f32 %v2871_v61, %v3945_v13  ;;  %v848_v56 = vld [vmem:[#allocation7 + $0x70] sm:$0xff] }
  0x61   : > { %617 = vmatpush1.msra.mxu1 %v2778_v5  ;;  %695 = vmatprep.subr.mxu0 %v443_v23  ;;  %v1071_v23 = vand.u32 4294901760, %v2891_v7  ;;  %v2946_v45 = vsub.f32 %v2880_v1, %v3940_v30  ;;  %v3943_v46 = vand.u32 4294901760, %v2904_v32  ;;  %v3944_v49 = vand.u32 4294901760, %v2909_v33  ;;  %v847_v7 = vld [vmem:[#allocation7 + $0x68] sm:$0xff] }
  0x62   : > { %619 = vmatprep.subr.mxu1 %v2780_v6  ;;  %699 = vmatpush1.msra.mxu0 %v449_v25  ;;  %v2941_v25 = vsub.f32 %v2877_v63, %v3942_v14  ;;  %v2954_v53 = vand.u32 4294901760, %v854_v38  ;;  %v2956_v54 = vand.u32 4294901760, %v853_v39  ;;  %v2958_v55 = vand.u32 4294901760, %v852_v40 }
  0x63   : > { %621 = vmatpush1.msra.mxu1 %v2782_v10  ;;  %654 = vmatprep.mubr.f32.mxu1 %v2608_v0  ;;  %v1077_v18 = vand.u32 4294901760, %v2917_v34  ;;  %v2967_v24 = vsub.f32 %v2896_v11, %v3941_v37  ;;  %v2984_v30 = vand.u32 4294901760, %v849_v48  ;;  %v2996_v14 = vand.u32 4294901760, %v847_v7 }
  0x64   : > { %703 = vmatprep.subr.mxu0 %v455_v26  ;;  %658 = vmatmul.mubr.f32.vlgmr.msra.gmra.mxu1 %v404_v31  ;;  %v2969_v26 = vand.u32 4294901760, %v851_v43  ;;  %v2971_v31 = vand.u32 4294901760, %v850_v44  ;;  %v2976_v19 = vsub.f32 %v854_v38, %v2954_v53  ;;  %v2982_v34 = vsub.f32 %v852_v40, %v2958_v55 }
  0x65   : > { %707 = vmatpush1.msra.mxu0 %v461_v27  ;;  %740 = vmatprep.mubr.f32.mxu0 %v2608_v0  ;;  %v2979_v27 = vsub.f32 %v853_v39, %v2956_v54  ;;  %v2994_v38 = vand.u32 4294901760, %v848_v56  ;;  %v1089_v13 = vand.u32 4294901760, %v2936_v17  ;;  %v1095_v9 = vand.u32 4294901760, %v2941_v25  ;;  %v844_v17 = vld [vmem:[#allocation7 + $0x50] sm:$0xff] }
  0x66   : > { %777 = vmatprep.subr.mxu1 %v2776_v4  ;;  %742 = vmatmul.mubr.f32.vlgmr.msra.gmra.mxu0 %v2790_v16  ;;  %4184 = vst [vmem:[#allocation15_spill] sm:$0xff] %v2982_v34  ;;  %v2989_v37 = vsub.f32 %v851_v43, %v2969_v26  ;;  %v2992_v4 = vsub.f32 %v850_v44, %v2971_v31  ;;  %v3948_v39 = vand.u32 4294901760, %v2976_v19  ;;  %v1101_v8 = vand.u32 4294901760, %v2946_v45 }
  0x67   : > { %4183 = vst [vmem:[#allocation14_spill] sm:$0xff] %v2979_v27  ;;  %779 = vmatpush1.msra.mxu1 %v2778_v5  ;;  %816 = vmatprep.mubr.f32.mxu1 %v2608_v0  ;;  %v3003_v5 = vsub.f32 %v2904_v32, %v3943_v46  ;;  %v3008_v0 = vsub.f32 %v2909_v33, %v3944_v49  ;;  %v3950_v40 = vand.u32 4294901760, %v2979_v27  ;;  %v1083_v49 = vand.u32 4294901760, %v2929_v42  ;;  %v845_v42 = vld [vmem:[#allocation7 + $0x58] sm:$0xff] }
  0x68   : > { %4185 = vst [vmem:[#allocation16_spill] sm:$0xff] %v2989_v37  ;;  %4186 = vst [vmem:[#allocation17_spill] sm:$0xff] %v2992_v4  ;;  %781 = vmatprep.subr.mxu1 %v2780_v6  ;;  %911 = vmatprep.subr.mxu0 %v2784_v12  ;;  %v3951_v6 = vand.u32 4294901760, %v2982_v34  ;;  %v3953_v43 = vand.u32 4294901760, %v2989_v37  ;;  %v3955_v44 = vand.u32 4294901760, %v2992_v4  ;;  %v3018_v46 = vsub.f32 %v849_v48, %v2984_v30 }
  0x69   : > { %783 = vmatpush1.msra.mxu1 %v2782_v10  ;;  %913 = vmatpush1.msra.mxu0 %v2805_v21  ;;  %v3024_v10 = vsub.f32 %v848_v56, %v2994_v38  ;;  %v1124_v48 = vsub.f32 %v2976_v19, %v3948_v39  ;;  %v1107_v56 = vand.u32 4294901760, %v2967_v24  ;;  %v1119_v25 = vand.u32 4294901760, %v3008_v0  ;;  %v843_v39 = vld [vmem:[#allocation7 + $0x48] sm:$0xff]  ;;  %v841_v0 = vld [vmem:[#allocation7 + $0x38] sm:$0xff] }
  0x6a   : > { %818 = vmatmul.mubr.f32.vlgmr.msra.gmra.mxu1 %v2790_v16  ;;  %1060 = vmatprep.subr.mxu1 %v1059_v41  ;;  %v3033_v16 = vsub.f32 %v847_v7, %v2996_v14  ;;  %v846_v41 = vld [vmem:[#allocation7 + $0x60] sm:$0xff]  ;;  %v1130_v45 = vsub.f32 %v2979_v27, %v3950_v40  ;;  %v1142_v7 = vsub.f32 %v2989_v37, %v3953_v43  ;;  %v3061_v36 = vand.u32 4294901760, %v844_v17  ;;  %v840_v43 = vld [vmem:[#allocation7 + $0x30] sm:$0xff] }
  0x6b   : > { %1066 = vmatpush1.msra.mxu1 %v1065_v15  ;;  %915 = vmatprep.subr.mxu0 %v2807_v22  ;;  %v1113_v15 = vand.u32 4294901760, %v3003_v5  ;;  %v3052_v24 = vsub.f32 %v2992_v4, %v3955_v44  ;;  %v3057_v40 = vand.u32 4294901760, %v846_v41  ;;  %v1125_v35 = vand.u32 4294901760, %v1124_v48 }
  0x6c   : > { %1072 = vmatprep.subr.mxu1 %v1071_v23  ;;  %917 = vmatpush1.msra.mxu0 %v2844_v50  ;;  %v1136_v23 = vsub.f32 %v2982_v34, %v3951_v6  ;;  %v3059_v6 = vand.u32 4294901760, %v845_v42  ;;  %v3065_v5 = vand.u32 4294901760, %v843_v39  ;;  %v3079_v48 = vand.u32 4294901760, %v841_v0 }
  0x6d   : > { %1078 = vmatpush1.msra.mxu1 %v1077_v18  ;;  %919 = vmatprep.subr.mxu0 %v2846_v51  ;;  %v3071_v18 = vsub.f32 %v846_v41, %v3057_v40  ;;  %v1131_v44 = vand.u32 4294901760, %v1130_v45  ;;  %v3088_v41 = vand.u32 4294901760, %v840_v43  ;;  %v4196_v45 = vand.u32 4294901760, %v3033_v16 }
  0x6e   : > { %1084 = vmatprep.subr.mxu1 %v1083_v49  ;;  %921 = vmatpush1.msra.mxu0 %v2848_v52  ;;  %v3067_v49 = vand.u32 4294901760, %v842_v47  ;;  %v3074_v4 = vsub.f32 %v845_v42, %v3059_v6  ;;  %v3083_v37 = vsub.f32 %v843_v39, %v3065_v5  ;;  %v4192_v42 = vand.u32 4294901760, %v3018_v46 }
  0x6f   : > { %1090 = vmatpush1.msra.mxu1 %v1089_v13  ;;  %923 = vmatprep.subr.mxu0 %v2860_v57  ;;  %4187 = vst [vmem:[#allocation18_spill] sm:$0xff] %v3071_v18  ;;  %v3077_v13 = vsub.f32 %v844_v17, %v3061_v36  ;;  %v3097_v34 = vsub.f32 %v841_v0, %v3079_v48  ;;  %v1137_v39 = vand.u32 4294901760, %v1136_v23  ;;  %v1149_v23 = vand.u32 4294901760, %v3052_v24 }
  0x70   : > { %1096 = vmatprep.subr.mxu1 %v1095_v9  ;;  %925 = vmatpush1.msra.mxu0 %v2862_v58  ;;  %4188 = vst [vmem:[#allocation19_spill] sm:$0xff] %v3074_v4  ;;  %4190 = vst [vmem:[#allocation21_spill] sm:$0xff] %v3083_v37  ;;  %v3086_v9 = vsub.f32 %v842_v47, %v3067_v49  ;;  %v1154_v17 = vsub.f32 %v3018_v46, %v4192_v42  ;;  %v4194_v47 = vand.u32 4294901760, %v3024_v10 }
  0x71   : > { %4189 = vst [vmem:[#allocation20_spill] sm:$0xff] %v3077_v13  ;;  %1102 = vmatpush1.msra.mxu1 %v1101_v8  ;;  %927 = vmatprep.subr.mxu0 %v2873_v62  ;;  %4193 = vst [vmem:[#allocation23_spill] sm:$0xff] %v3097_v34  ;;  %v3105_v42 = vsub.f32 %v840_v43, %v3088_v41  ;;  %v1143_v8 = vand.u32 4294901760, %v1142_v7  ;;  %v1166_v0 = vsub.f32 %v3033_v16, %v4196_v45 }
  0x72   : > { %4191 = vst [vmem:[#allocation22_spill] sm:$0xff] %v3086_v9  ;;  %1108 = vmatprep.subr.mxu1 %v1107_v56  ;;  %929 = vmatpush1.msra.mxu0 %v2882_v2  ;;  %v1160_v27 = vsub.f32 %v3024_v10, %v4194_v47  ;;  %v4197_v47 = vand.u32 4294901760, %v3071_v18  ;;  %v4198_v7 = vand.u32 4294901760, %v3074_v4  ;;  %v4202_v43 = vand.u32 4294901760, %v3097_v34 }
  0x73   : > { %1114 = vmatpush1.msra.mxu1 %v1113_v15  ;;  %931 = vmatprep.subr.mxu0 %v2884_v3  ;;  %4195 = vst [vmem:[#allocation24_spill] sm:$0xff] %v3105_v42  ;;  %v4199_v15 = vand.u32 4294901760, %v3077_v13 }
  0x74   : > { %1120 = vmatprep.subr.mxu1 %v1119_v25  ;;  %933 = vmatpush1.msra.mxu0 %v2954_v53  ;;  %v1172_v56 = vsub.f32 %v3071_v18, %v4197_v47  ;;  %v1155_v25 = vand.u32 4294901760, %v1154_v17  ;;  %v1178_v45 = vsub.f32 %v3074_v4, %v4198_v7  ;;  %v1161_v24 = vand.u32 4294901760, %v1160_v27  ;;  %v895_v4 = vld [vmem:[#allocation7 + $0x1e8] sm:$0xff]  ;;  %v892_v18 = vld [vmem:[#allocation7 + $0x1d0] sm:$0xff] }
  0x75   : > { %1126 = vmatpush1.msra.mxu1 %v1125_v35  ;;  %935 = vmatprep.subr.mxu0 %v2956_v54  ;;  %v1184_v47 = vsub.f32 %v3077_v13, %v4199_v15  ;;  %v4200_v17 = vand.u32 4294901760, %v3083_v37  ;;  %v4201_v27 = vand.u32 4294901760, %v3086_v9 }
  0x76   : > { %1132 = vmatprep.subr.mxu1 %v1131_v44  ;;  %937 = vmatpush1.msra.mxu0 %v2958_v55  ;;  %v1167_v44 = vand.u32 4294901760, %v1166_v0  ;;  %v1173_v35 = vand.u32 4294901760, %v1172_v56  ;;  %v1179_v15 = vand.u32 4294901760, %v1178_v45 }
  0x77   : > { %1138 = vmatpush1.msra.mxu1 %v1137_v39  ;;  %939 = vmatprep.subr.mxu0 %v2969_v26  ;;  %v1190_v7 = vsub.f32 %v3083_v37, %v4200_v17  ;;  %v1196_v39 = vsub.f32 %v3086_v9, %v4201_v27  ;;  %v1185_v0 = vand.u32 4294901760, %v1184_v47  ;;  %v4203_v17 = vand.u32 4294901760, %v3105_v42  ;;  %v838_v47 = vld [vmem:[#allocation7 + $0x20] sm:$0xff] }
  0x78   : > { %1144 = vmatprep.subr.mxu1 %v1143_v8  ;;  %941 = vmatpush1.msra.mxu0 %v2971_v31  ;;  %v1202_v8 = vsub.f32 %v3097_v34, %v4202_v43 }
  0x79   : > { %1150 = vmatpush1.msra.mxu1 %v1149_v23  ;;  %943 = vmatprep.subr.mxu0 %v2984_v30  ;;  %v1208_v56 = vsub.f32 %v3105_v42, %v4203_v17  ;;  %v1191_v23 = vand.u32 4294901760, %v1190_v7  ;;  %v837_v7 = vld [vmem:[#allocation7 + $0x18] sm:$0xff]  ;;  %v835_v17 = vld [vmem:[#allocation7 + $0x8] sm:$0xff] }
  0x7a   : > { %1156 = vmatprep.subr.mxu1 %v1155_v25  ;;  %945 = vmatpush1.msra.mxu0 %v2994_v38  ;;  %v1197_v25 = vand.u32 4294901760, %v1196_v39  ;;  %v1203_v43 = vand.u32 4294901760, %v1202_v8  ;;  %v3158_v39 = vand.u32 4294901760, %v837_v7  ;;  %v897_v42 = vld [vmem:[#allocation7 + $0x1f8] sm:$0xff] }
  0x7b   : > { %1162 = vmatpush1.msra.mxu1 %v1161_v24  ;;  %947 = vmatprep.subr.mxu0 %v2996_v14  ;;  %v1209_v45 = vand.u32 4294901760, %v1208_v56  ;;  %v3188_v37 = vand.u32 4294901760, %v897_v42 }
  0x7c   : > { %1168 = vmatprep.subr.mxu1 %v1167_v44  ;;  %949 = vmatpush1.msra.mxu0 %v3057_v40  ;;  %v3153_v44 = vand.u32 4294901760, %v838_v47  ;;  %4207 = vst [vmem:[#allocation28_spill] sm:$0xff] %v3158_v39 }
  0x7d   : > { %1174 = vmatpush1.msra.mxu1 %v1173_v35  ;;  %951 = vmatprep.subr.mxu0 %v3059_v6  ;;  %v839_v35 = vld [vmem:[#allocation7 + $0x28] sm:$0xff]  ;;  %4215 = vst [vmem:[#allocation36_spill] sm:$0xff] %v3188_v37 }
  0x7e   : > { %1180 = vmatprep.subr.mxu1 %v1179_v15  ;;  %953 = vmatpush1.msra.mxu0 %v3061_v36  ;;  %v3151_v24 = vand.u32 4294901760, %v839_v35  ;;  %4205 = vst [vmem:[#allocation26_spill] sm:$0xff] %v3153_v44  ;;  %v836_v15 = vld [vmem:[#allocation7 + $0x10] sm:$0xff]  ;;  %v3162_v8 = vsub.f32 %v838_v47, %v3153_v44 }
  0x7f   : > { %1186 = vmatpush1.msra.mxu1 %v1185_v0  ;;  %955 = vmatprep.subr.mxu0 %v3065_v5  ;;  %v3164_v0 = vand.u32 4294901760, %v836_v15 }
  0x80   : > { %1192 = vmatprep.subr.mxu1 %v1191_v23  ;;  %957 = vmatpush1.msra.mxu0 %v3067_v49  ;;  %4204 = vst [vmem:[#allocation25_spill] sm:$0xff] %v3151_v24  ;;  %v3156_v27 = vsub.f32 %v839_v35, %v3151_v24  ;;  %4208 = vst [vmem:[#allocation29_spill] sm:$0xff] %v3162_v8  ;;  %v3169_v23 = vsub.f32 %v837_v7, %v3158_v39 }
  0x81   : > { %1198 = vmatpush1.msra.mxu1 %v1197_v25  ;;  %959 = vmatprep.subr.mxu0 %v3079_v48  ;;  %4209 = vst [vmem:[#allocation30_spill] sm:$0xff] %v3164_v0  ;;  %v3171_v25 = vand.u32 4294901760, %v835_v17  ;;  %v3176_v35 = vsub.f32 %v836_v15, %v3164_v0  ;;  %v4216_v15 = vand.u32 4294901760, %v3162_v8 }
  0x82   : > { %1204 = vmatprep.subr.mxu1 %v1203_v43  ;;  %961 = vmatpush1.msra.mxu0 %v3088_v41  ;;  %4206 = vst [vmem:[#allocation27_spill] sm:$0xff] %v3156_v27  ;;  %v3978_v56 = vand.u32 4294901760, %v3156_v27  ;;  %4210 = vst [vmem:[#allocation31_spill] sm:$0xff] %v3169_v23  ;;  %v834_v43 = vld [vmem:[#allocation7] sm:$0xff]  ;;  %v3991_v34 = vand.u32 4294901760, %v3169_v23 }
  0x83   : > { %1210 = vmatpush1.msra.mxu1 %v1209_v45  ;;  %963 = vmatprep.subr.mxu0 %v3151_v24  ;;  %4211 = vst [vmem:[#allocation32_spill] sm:$0xff] %v3171_v25  ;;  %4212 = vst [vmem:[#allocation33_spill] sm:$0xff] %v3176_v35  ;;  %v3178_v47 = vand.u32 4294901760, %v834_v43  ;;  %v3186_v9 = vsub.f32 %v835_v17, %v3171_v25  ;;  %v896_v45 = vld [vmem:[#allocation7 + $0x1f0] sm:$0xff]  ;;  %v1220_v13 = vsub.f32 %v3162_v8, %v4216_v15 }
  0x84   : > { %965 = vmatpush1.msra.mxu0 %v3153_v44  ;;  %v1214_v7 = vsub.f32 %v3156_v27, %v3978_v56  ;;  %v3198_v56 = vand.u32 4294901760, %v896_v45  ;;  %v1226_v27 = vsub.f32 %v3169_v23, %v3991_v34  ;;  %v3211_v44 = vsub.f32 %v897_v42, %v3188_v37 }
  0x85   : > { %967 = vmatprep.subr.mxu0 %v3158_v39  ;;  %4213 = vst [vmem:[#allocation34_spill] sm:$0xff] %v3178_v47  ;;  %4214 = vst [vmem:[#allocation35_spill] sm:$0xff] %v3186_v9  ;;  %v3196_v39 = vsub.f32 %v834_v43, %v3178_v47  ;;  %v1221_v15 = vand.u32 4294901760, %v1220_v13 }
  0x86   : > { %969 = vmatpush1.msra.mxu0 %v3164_v0  ;;  %v3996_v0 = vand.u32 4294901760, %v3176_v35  ;;  %4218 = vst [vmem:[#allocation38_spill] sm:$0xff] %v3198_v56  ;;  %v1215_v17 = vand.u32 4294901760, %v1214_v7  ;;  %4219 = vst [vmem:[#allocation39_spill] sm:$0xff] %v3211_v44  ;;  %v894_v7 = vld [vmem:[#allocation7 + $0x1e0] sm:$0xff]  ;;  %v1227_v34 = vand.u32 4294901760, %v1226_v27  ;;  %v3218_v13 = vsub.f32 %v896_v45, %v3198_v56 }
  0x87   : > { %971 = vmatprep.subr.mxu0 %v3171_v25  ;;  %4217 = vst [vmem:[#allocation37_spill] sm:$0xff] %v3196_v39  ;;  %v4003_v25 = vand.u32 4294901760, %v3186_v9  ;;  %v4006_v8 = vand.u32 4294901760, %v3196_v39 }
  0x88   : > { %973 = vmatpush1.msra.mxu0 %v3178_v47  ;;  %v1232_v43 = vsub.f32 %v3176_v35, %v3996_v0  ;;  %v893_v47 = vld [vmem:[#allocation7 + $0x1d8] sm:$0xff]  ;;  %1216 = vmatprep.subr.mxu1 %v1215_v17  ;;  %4220 = vst [vmem:[#allocation40_spill] sm:$0xff] %v3218_v13  ;;  %v4009_v35 = vand.u32 4294901760, %v3211_v44  ;;  %v891_v17 = vld [vmem:[#allocation7 + $0x1c8] sm:$0xff]  ;;  %v4014_v24 = vand.u32 4294901760, %v3218_v13 }
  0x89   : > { %975 = vmatprep.subr.mxu0 %v3188_v37  ;;  %v1238_v23 = vsub.f32 %v3186_v9, %v4003_v25  ;;  %1222 = vmatpush1.msra.mxu1 %v1221_v15  ;;  %v1244_v42 = vsub.f32 %v3196_v39, %v4006_v8  ;;  %v3224_v37 = vand.u32 4294901760, %v895_v4  ;;  %v3227_v25 = vand.u32 4294901760, %v894_v7  ;;  %v890_v9 = vld [vmem:[#allocation7 + $0x1c0] sm:$0xff] }
  0x8a   : > { %977 = vmatpush2.msra.mxu0 %v3198_v56  ;;  %v1233_v0 = vand.u32 4294901760, %v1232_v43  ;;  %1228 = vmatprep.subr.mxu1 %v1227_v34  ;;  %v3229_v45 = vand.u32 4294901760, %v893_v47  ;;  %v1250_v43 = vsub.f32 %v3211_v44, %v4009_v35  ;;  %v3237_v39 = vand.u32 4294901760, %v892_v18  ;;  %v889_v35 = vld [vmem:[#allocation7 + $0x1b8] sm:$0xff] }
  0x8b   : > { %4221 = vst [vmem:[#allocation41_spill] sm:$0xff] %v3224_v37  ;;  %v1239_v27 = vand.u32 4294901760, %v1238_v23  ;;  %4222 = vst [vmem:[#allocation42_spill] sm:$0xff] %v3227_v25  ;;  %v1245_v15 = vand.u32 4294901760, %v1244_v42  ;;  %v3235_v8 = vsub.f32 %v895_v4, %v3224_v37  ;;  %979 = vmatprep.subr.mxu0 %v3224_v37  ;;  %v1256_v34 = vsub.f32 %v3218_v13, %v4014_v24  ;;  %v888_v24 = vld [vmem:[#allocation7 + $0x1b0] sm:$0xff] }
  0x8c   : > { %4223 = vst [vmem:[#allocation43_spill] sm:$0xff] %v3229_v45  ;;  %1234 = vmatpush1.msra.mxu1 %v1233_v0  ;;  %4225 = vst [vmem:[#allocation45_spill] sm:$0xff] %v3237_v39  ;;  %v3244_v23 = vsub.f32 %v894_v7, %v3227_v25  ;;  %v3247_v0 = vsub.f32 %v893_v47, %v3229_v45  ;;  %v3249_v42 = vand.u32 4294901760, %v891_v17  ;;  %981 = vmatpush2.msra.mxu0 %v3227_v25  ;;  %v884_v25 = vld [vmem:[#allocation7 + $0x190] sm:$0xff] }
  0x8d   : > { %4224 = vst [vmem:[#allocation44_spill] sm:$0xff] %v3235_v8  ;;  %1240 = vmatprep.subr.mxu1 %v1239_v27  ;;  %v1251_v4 = vand.u32 4294901760, %v1250_v43  ;;  %v4019_v44 = vand.u32 4294901760, %v3235_v8  ;;  %v3254_v27 = vsub.f32 %v892_v18, %v3237_v39  ;;  %v3256_v37 = vand.u32 4294901760, %v890_v9  ;;  %983 = vmatprep.subr.mxu0 %v3229_v45  ;;  %v885_v45 = vld [vmem:[#allocation7 + $0x198] sm:$0xff] }
  0x8e   : > { %4226 = vst [vmem:[#allocation46_spill] sm:$0xff] %v3244_v23  ;;  %4227 = vst [vmem:[#allocation47_spill] sm:$0xff] %v3247_v0  ;;  %1246 = vmatpush1.msra.mxu1 %v1245_v15  ;;  %v1257_v7 = vand.u32 4294901760, %v1256_v34  ;;  %v4026_v47 = vand.u32 4294901760, %v3244_v23  ;;  %v4031_v13 = vand.u32 4294901760, %v3247_v0  ;;  %v3262_v56 = vsub.f32 %v891_v17, %v3249_v42  ;;  %985 = vmatpush2.msra.mxu0 %v3237_v39  ;;  %v887_v15 = vld [vmem:[#allocation7 + $0x1a8] sm:$0xff] }
  0x8f   : > { %4228 = vst [vmem:[#allocation48_spill] sm:$0xff] %v3249_v42  ;;  %4229 = vst [vmem:[#allocation49_spill] sm:$0xff] %v3254_v27  ;;  %1252 = vmatprep.subr.mxu1 %v1251_v4  ;;  %v1262_v18 = vsub.f32 %v3235_v8, %v4019_v44  ;;  %v3270_v43 = vsub.f32 %v890_v9, %v3256_v37  ;;  %v3272_v34 = vand.u32 4294901760, %v889_v35  ;;  %987 = vmatprep.subr.mxu0 %v3249_v42 }
  0x90   : > { %4230 = vst [vmem:[#allocation50_spill] sm:$0xff] %v3256_v37  ;;  %4231 = vst [vmem:[#allocation51_spill] sm:$0xff] %v3262_v56  ;;  %1258 = vmatpush2.msra.mxu1 %v1257_v7  ;;  %v1268_v17 = vsub.f32 %v3244_v23, %v4026_v47  ;;  %v1274_v4 = vsub.f32 %v3247_v0, %v4031_v13  ;;  %v3282_v8 = vand.u32 4294901760, %v888_v24  ;;  %989 = vmatpush2.msra.mxu0 %v3256_v37  ;;  %v886_v23 = vld [vmem:[#allocation7 + $0x1a0] sm:$0xff] }
  0x91   : > { %4232 = vst [vmem:[#allocation52_spill] sm:$0xff] %v3270_v43  ;;  %4233 = vst [vmem:[#allocation53_spill] sm:$0xff] %v3272_v34  ;;  %v1263_v9 = vand.u32 4294901760, %v1262_v18  ;;  %v4235_v39 = vand.u32 4294901760, %v3254_v27  ;;  %v4046_v42 = vand.u32 4294901760, %v3270_v43  ;;  %v3290_v47 = vsub.f32 %v889_v35, %v3272_v34  ;;  %991 = vmatprep.subr.mxu0 %v3272_v34 }
  0x92   : > { %4234 = vst [vmem:[#allocation54_spill] sm:$0xff] %v3282_v8  ;;  %v1269_v13 = vand.u32 4294901760, %v1268_v17  ;;  %v1275_v44 = vand.u32 4294901760, %v1274_v4  ;;  %v4237_v0 = vand.u32 4294901760, %v3262_v56  ;;  %v3297_v18 = vsub.f32 %v888_v24, %v3282_v8  ;;  %993 = vmatpush2.msra.mxu0 %v3282_v8  ;;  %v883_v4 = vld [vmem:[#allocation7 + $0x188] sm:$0xff]  ;;  %v882_v8 = vld [vmem:[#allocation7 + $0x180] sm:$0xff] }
  0x93   : > { %v1280_v7 = vsub.f32 %v3254_v27, %v4235_v39  ;;  %4236 = vst [vmem:[#allocation55_spill] sm:$0xff] %v3290_v47  ;;  %1264 = vmatprep.subr.mxu1 %v1263_v9  ;;  %v1292_v35 = vsub.f32 %v3270_v43, %v4046_v42  ;;  %v4049_v27 = vand.u32 4294901760, %v3290_v47  ;;  %v3304_v17 = vand.u32 4294901760, %v887_v15 }
  0x94   : > { %v1286_v37 = vsub.f32 %v3262_v56, %v4237_v0  ;;  %4238 = vst [vmem:[#allocation56_spill] sm:$0xff] %v3297_v18  ;;  %1270 = vmatpush2.msra.mxu1 %v1269_v13  ;;  %v4054_v0 = vand.u32 4294901760, %v3297_v18  ;;  %v3307_v24 = vand.u32 4294901760, %v886_v23  ;;  %v3309_v56 = vand.u32 4294901760, %v885_v45 }
  0x95   : > { %v1281_v39 = vand.u32 4294901760, %v1280_v7  ;;  %4239 = vst [vmem:[#allocation57_spill] sm:$0xff] %v3304_v17  ;;  %1276 = vmatprep.subr.mxu1 %v1275_v44  ;;  %v1293_v9 = vand.u32 4294901760, %v1292_v35  ;;  %v1298_v7 = vsub.f32 %v3290_v47, %v4049_v27  ;;  %v3315_v42 = vsub.f32 %v887_v15, %v3304_v17  ;;  %995 = vmatprep.subr.mxu0 %v3304_v17  ;;  %v881_v27 = vld [vmem:[#allocation7 + $0x178] sm:$0xff] }
  0x96   : > { %v1287_v34 = vand.u32 4294901760, %v1286_v37  ;;  %4240 = vst [vmem:[#allocation58_spill] sm:$0xff] %v3307_v24  ;;  %4241 = vst [vmem:[#allocation59_spill] sm:$0xff] %v3309_v56  ;;  %v3317_v43 = vand.u32 4294901760, %v884_v25  ;;  %v1304_v37 = vsub.f32 %v3297_v18, %v4054_v0  ;;  %v3324_v13 = vsub.f32 %v886_v23, %v3307_v24  ;;  %997 = vmatpush2.msra.mxu0 %v3307_v24  ;;  %v880_v0 = vld [vmem:[#allocation7 + $0x170] sm:$0xff] }
  0x97   : > { %4242 = vst [vmem:[#allocation60_spill] sm:$0xff] %v3315_v42  ;;  %1282 = vmatpush2.msra.mxu1 %v1281_v39  ;;  %v3327_v44 = vsub.f32 %v885_v45, %v3309_v56  ;;  %v3329_v35 = vand.u32 4294901760, %v883_v4  ;;  %v1299_v15 = vand.u32 4294901760, %v1298_v7  ;;  %v4059_v47 = vand.u32 4294901760, %v3315_v42  ;;  %999 = vmatprep.subr.mxu0 %v3309_v56  ;;  %v876_v56 = vld [vmem:[#allocation7 + $0x150] sm:$0xff] }
  0x98   : > { %4243 = vst [vmem:[#allocation61_spill] sm:$0xff] %v3317_v43  ;;  %4244 = vst [vmem:[#allocation62_spill] sm:$0xff] %v3324_v13  ;;  %1288 = vmatprep.subr.mxu1 %v1287_v34  ;;  %v3334_v39 = vsub.f32 %v884_v25, %v3317_v43  ;;  %v3336_v17 = vand.u32 4294901760, %v882_v8  ;;  %v1305_v45 = vand.u32 4294901760, %v1304_v37  ;;  %v4064_v23 = vand.u32 4294901760, %v3324_v13  ;;  %1001 = vmatpush2.msra.mxu0 %v3317_v43  ;;  %v879_v34 = vld [vmem:[#allocation7 + $0x168] sm:$0xff] }
  0x99   : > { %4245 = vst [vmem:[#allocation63_spill] sm:$0xff] %v3327_v44  ;;  %4246 = vst [vmem:[#allocation64_spill] sm:$0xff] %v3329_v35  ;;  %1294 = vmatpush2.msra.mxu1 %v1293_v9  ;;  %v4069_v18 = vand.u32 4294901760, %v3327_v44  ;;  %v3342_v24 = vsub.f32 %v883_v4, %v3329_v35  ;;  %v1310_v25 = vsub.f32 %v3315_v42, %v4059_v47  ;;  %v3352_v9 = vand.u32 4294901760, %v881_v27  ;;  %v877_v43 = vld [vmem:[#allocation7 + $0x158] sm:$0xff] }
  0x9a   : > { %4247 = vst [vmem:[#allocation65_spill] sm:$0xff] %v3334_v39  ;;  %4248 = vst [vmem:[#allocation66_spill] sm:$0xff] %v3336_v17  ;;  %1300 = vmatprep.subr.mxu1 %v1299_v15  ;;  %v3350_v7 = vsub.f32 %v882_v8, %v3336_v17  ;;  %1003 = vmatprep.subr.mxu0 %v3329_v35  ;;  %v1316_v4 = vsub.f32 %v3324_v13, %v4064_v23  ;;  %v3362_v47 = vand.u32 4294901760, %v880_v0  ;;  %v878_v13 = vld [vmem:[#allocation7 + $0x160] sm:$0xff] }
  0x9b   : > { %4249 = vst [vmem:[#allocation67_spill] sm:$0xff] %v3342_v24  ;;  %4251 = vst [vmem:[#allocation69_spill] sm:$0xff] %v3352_v9  ;;  %1306 = vmatpush2.msra.mxu1 %v1305_v45  ;;  %v1322_v37 = vsub.f32 %v3327_v44, %v4069_v18  ;;  %1005 = vmatpush2.msra.mxu0 %v3336_v17  ;;  %v1311_v8 = vand.u32 4294901760, %v1310_v25  ;;  %v4253_v42 = vand.u32 4294901760, %v3334_v39  ;;  %v4255_v44 = vand.u32 4294901760, %v3342_v24 }
  0x9c   : > { %4250 = vst [vmem:[#allocation68_spill] sm:$0xff] %v3350_v7  ;;  %4252 = vst [vmem:[#allocation70_spill] sm:$0xff] %v3362_v47  ;;  %v4084_v35 = vand.u32 4294901760, %v3350_v7  ;;  %v3370_v23 = vsub.f32 %v881_v27, %v3352_v9  ;;  %1007 = vmatprep.subr.mxu0 %v3352_v9  ;;  %v1317_v18 = vand.u32 4294901760, %v1316_v4  ;;  %v3377_v25 = vsub.f32 %v880_v0, %v3362_v47 }
  0x9d   : > { %v1328_v45 = vsub.f32 %v3334_v39, %v4253_v42  ;;  %v1323_v15 = vand.u32 4294901760, %v1322_v37  ;;  %v1334_v17 = vsub.f32 %v3342_v24, %v4255_v44  ;;  %1009 = vmatpush2.msra.mxu0 %v3362_v47  ;;  %1312 = vmatprep.subr.mxu1 %v1311_v8  ;;  %v3384_v4 = vand.u32 4294901760, %v879_v34  ;;  %v875_v37 = vld [vmem:[#allocation7 + $0x148] sm:$0xff]  ;;  %v874_v47 = vld [vmem:[#allocation7 + $0x140] sm:$0xff] }
  0x9e   : > { %4254 = vst [vmem:[#allocation71_spill] sm:$0xff] %v3370_v23  ;;  %4256 = vst [vmem:[#allocation72_spill] sm:$0xff] %v3377_v25  ;;  %v1340_v27 = vsub.f32 %v3350_v7, %v4084_v35  ;;  %v4087_v39 = vand.u32 4294901760, %v3370_v23  ;;  %1318 = vmatpush2.msra.mxu1 %v1317_v18  ;;  %v4092_v44 = vand.u32 4294901760, %v3377_v25  ;;  %v3387_v0 = vand.u32 4294901760, %v878_v13 }
  0x9f   : > { %v1329_v42 = vand.u32 4294901760, %v1328_v45  ;;  %4257 = vst [vmem:[#allocation73_spill] sm:$0xff] %v3384_v4  ;;  %v1335_v9 = vand.u32 4294901760, %v1334_v17  ;;  %v3389_v24 = vand.u32 4294901760, %v877_v43  ;;  %1324 = vmatprep.subr.mxu1 %v1323_v15  ;;  %v3395_v35 = vsub.f32 %v879_v34, %v3384_v4  ;;  %1011 = vmatprep.subr.mxu0 %v3384_v4 }
  0xa0   : > { %4258 = vst [vmem:[#allocation74_spill] sm:$0xff] %v3387_v0  ;;  %v1341_v8 = vand.u32 4294901760, %v1340_v27  ;;  %v1346_v45 = vsub.f32 %v3370_v23, %v4087_v39  ;;  %v3397_v7 = vand.u32 4294901760, %v876_v56  ;;  %v1352_v18 = vsub.f32 %v3377_v25, %v4092_v44  ;;  %v873_v39 = vld [vmem:[#allocation7 + $0x138] sm:$0xff]  ;;  %1013 = vmatpush2.msra.mxu0 %v3387_v0  ;;  %v872_v44 = vld [vmem:[#allocation7 + $0x130] sm:$0xff] }
  0xa1   : > { %4259 = vst [vmem:[#allocation75_spill] sm:$0xff] %v3389_v24  ;;  %4260 = vst [vmem:[#allocation76_spill] sm:$0xff] %v3395_v35  ;;  %1330 = vmatpush2.msra.mxu1 %v1329_v42  ;;  %v3404_v17 = vsub.f32 %v878_v13, %v3387_v0  ;;  %v3407_v15 = vsub.f32 %v877_v43, %v3389_v24  ;;  %v3409_v27 = vand.u32 4294901760, %v875_v37  ;;  %v4097_v23 = vand.u32 4294901760, %v3395_v35 }
  0xa2   : > { %4261 = vst [vmem:[#allocation77_spill] sm:$0xff] %v3397_v7  ;;  %1336 = vmatprep.subr.mxu1 %v1335_v9  ;;  %v1347_v34 = vand.u32 4294901760, %v1346_v45  ;;  %v3414_v42 = vsub.f32 %v876_v56, %v3397_v7  ;;  %v3416_v4 = vand.u32 4294901760, %v874_v47  ;;  %1015 = vmatprep.subr.mxu0 %v3389_v24  ;;  %v1353_v43 = vand.u32 4294901760, %v1352_v18  ;;  %v871_v9 = vld [vmem:[#allocation7 + $0x128] sm:$0xff]  ;;  %v868_v24 = vld [vmem:[#allocation7 + $0x110] sm:$0xff] }
  0xa3   : > { %4262 = vst [vmem:[#allocation78_spill] sm:$0xff] %v3404_v17  ;;  %4263 = vst [vmem:[#allocation79_spill] sm:$0xff] %v3407_v15  ;;  %1342 = vmatpush2.msra.mxu1 %v1341_v8  ;;  %v4102_v13 = vand.u32 4294901760, %v3404_v17  ;;  %v4107_v25 = vand.u32 4294901760, %v3407_v15  ;;  %v3422_v0 = vsub.f32 %v875_v37, %v3409_v27  ;;  %1017 = vmatpush2.msra.mxu0 %v3397_v7  ;;  %v3432_v8 = vand.u32 4294901760, %v873_v39  ;;  %v869_v7 = vld [vmem:[#allocation7 + $0x118] sm:$0xff] }
  0xa4   : > { %4264 = vst [vmem:[#allocation80_spill] sm:$0xff] %v3409_v27  ;;  %4265 = vst [vmem:[#allocation81_spill] sm:$0xff] %v3414_v42  ;;  %1348 = vmatprep.subr.mxu1 %v1347_v34  ;;  %v1358_v56 = vsub.f32 %v3395_v35, %v4097_v23  ;;  %v3430_v45 = vsub.f32 %v874_v47, %v3416_v4  ;;  %1019 = vmatprep.subr.mxu0 %v3409_v27  ;;  %v3442_v23 = vand.u32 4294901760, %v872_v44 }
  0xa5   : > { %4266 = vst [vmem:[#allocation82_spill] sm:$0xff] %v3416_v4  ;;  %4267 = vst [vmem:[#allocation83_spill] sm:$0xff] %v3422_v0  ;;  %1354 = vmatpush2.msra.mxu1 %v1353_v43  ;;  %v1364_v37 = vsub.f32 %v3404_v17, %v4102_v13  ;;  %v1370_v18 = vsub.f32 %v3407_v15, %v4107_v25  ;;  %1021 = vmatpush2.msra.mxu0 %v3416_v4  ;;  %v4271_v35 = vand.u32 4294901760, %v3414_v42  ;;  %v870_v17 = vld [vmem:[#allocation7 + $0x120] sm:$0xff] }
  0xa6   : > { %4268 = vst [vmem:[#allocation84_spill] sm:$0xff] %v3430_v45  ;;  %4269 = vst [vmem:[#allocation85_spill] sm:$0xff] %v3432_v8  ;;  %v1359_v47 = vand.u32 4294901760, %v1358_v56  ;;  %v4122_v27 = vand.u32 4294901760, %v3430_v45  ;;  %v3450_v13 = vsub.f32 %v873_v39, %v3432_v8  ;;  %1023 = vmatprep.subr.mxu0 %v3432_v8  ;;  %v4273_v15 = vand.u32 4294901760, %v3422_v0 }
  0xa7   : > { %4270 = vst [vmem:[#allocation86_spill] sm:$0xff] %v3442_v23  ;;  %v1376_v43 = vsub.f32 %v3414_v42, %v4271_v35  ;;  %v1365_v25 = vand.u32 4294901760, %v1364_v37  ;;  %v1371_v34 = vand.u32 4294901760, %v1370_v18  ;;  %v3457_v56 = vsub.f32 %v872_v44, %v3442_v23  ;;  %1025 = vmatpush2.msra.mxu0 %v3442_v23  ;;  %v867_v18 = vld [vmem:[#allocation7 + $0x108] sm:$0xff]  ;;  %v866_v23 = vld [vmem:[#allocation7 + $0x100] sm:$0xff] }
  0xa8   : > { %4272 = vst [vmem:[#allocation87_spill] sm:$0xff] %v3450_v13  ;;  %v1382_v4 = vsub.f32 %v3422_v0, %v4273_v15  ;;  %1360 = vmatprep.subr.mxu1 %v1359_v47  ;;  %v1388_v39 = vsub.f32 %v3430_v45, %v4122_v27  ;;  %v4125_v42 = vand.u32 4294901760, %v3450_v13  ;;  %v3464_v37 = vand.u32 4294901760, %v871_v9 }
  0xa9   : > { %4274 = vst [vmem:[#allocation88_spill] sm:$0xff] %v3457_v56  ;;  %v1377_v35 = vand.u32 4294901760, %v1376_v43  ;;  %1366 = vmatpush2.msra.mxu1 %v1365_v25  ;;  %v4128_v15 = vand.u32 4294901760, %v3457_v56  ;;  %v3467_v44 = vand.u32 4294901760, %v870_v17  ;;  %v3469_v0 = vand.u32 4294901760, %v869_v7 }
  0xaa   : > { %4275 = vst [vmem:[#allocation89_spill] sm:$0xff] %v3464_v37  ;;  %v1383_v8 = vand.u32 4294901760, %v1382_v4  ;;  %1372 = vmatprep.subr.mxu1 %v1371_v34  ;;  %v1389_v47 = vand.u32 4294901760, %v1388_v39  ;;  %v1394_v43 = vsub.f32 %v3450_v13, %v4125_v42  ;;  %v3475_v27 = vsub.f32 %v871_v9, %v3464_v37  ;;  %1027 = vmatprep.subr.mxu0 %v3464_v37 }
  0xab   : > { %4276 = vst [vmem:[#allocation90_spill] sm:$0xff] %v3467_v44  ;;  %4277 = vst [vmem:[#allocation91_spill] sm:$0xff] %v3469_v0  ;;  %v3477_v45 = vand.u32 4294901760, %v868_v24  ;;  %1378 = vmatpush2.msra.mxu1 %v1377_v35  ;;  %v1400_v25 = vsub.f32 %v3457_v56, %v4128_v15  ;;  %v3484_v4 = vsub.f32 %v870_v17, %v3467_v44  ;;  %v3489_v39 = vand.u32 4294901760, %v867_v18 }
  0xac   : > { %4278 = vst [vmem:[#allocation92_spill] sm:$0xff] %v3475_v27  ;;  %v3487_v34 = vsub.f32 %v869_v7, %v3469_v0  ;;  %1029 = vmatpush2.msra.mxu0 %v3467_v44  ;;  %1384 = vmatprep.subr.mxu1 %v1383_v8  ;;  %v1395_v9 = vand.u32 4294901760, %v1394_v43  ;;  %v4131_v42 = vand.u32 4294901760, %v3475_v27  ;;  %v3496_v13 = vand.u32 4294901760, %v866_v23 }
  0xad   : > { %4279 = vst [vmem:[#allocation93_spill] sm:$0xff] %v3477_v45  ;;  %4280 = vst [vmem:[#allocation94_spill] sm:$0xff] %v3484_v4  ;;  %v3494_v35 = vsub.f32 %v868_v24, %v3477_v45  ;;  %1031 = vmatprep.subr.mxu0 %v3469_v0  ;;  %1390 = vmatpush2.msra.mxu1 %v1389_v47  ;;  %v1401_v17 = vand.u32 4294901760, %v1400_v25  ;;  %v4134_v7 = vand.u32 4294901760, %v3484_v4 }
  0xae   : > { %4281 = vst [vmem:[#allocation95_spill] sm:$0xff] %v3487_v34  ;;  %4282 = vst [vmem:[#allocation96_spill] sm:$0xff] %v3489_v39  ;;  %v4135_v15 = vand.u32 4294901760, %v3487_v34  ;;  %v3502_v56 = vsub.f32 %v867_v18, %v3489_v39  ;;  %1033 = vmatpush2.msra.mxu0 %v3477_v45  ;;  %1396 = vmatprep.subr.mxu1 %v1395_v9  ;;  %v1406_v24 = vsub.f32 %v3475_v27, %v4131_v42 }
  0xaf   : > { %4283 = vst [vmem:[#allocation97_spill] sm:$0xff] %v3494_v35  ;;  %4284 = vst [vmem:[#allocation98_spill] sm:$0xff] %v3496_v13  ;;  %v4138_v8 = vand.u32 4294901760, %v3494_v35  ;;  %v3510_v43 = vsub.f32 %v866_v23, %v3496_v13  ;;  %1035 = vmatprep.subr.mxu0 %v3489_v39  ;;  %1402 = vmatpush2.msra.mxu1 %v1401_v17  ;;  %v1412_v18 = vsub.f32 %v3484_v4, %v4134_v7 }
  0xb0   : > { %4285 = vst [vmem:[#allocation99_spill] sm:$0xff] %v3502_v56  ;;  %v1418_v47 = vsub.f32 %v3487_v34, %v4135_v15  ;;  %v4139_v25 = vand.u32 4294901760, %v3502_v56  ;;  %1037 = vmatpush2.msra.mxu0 %v3496_v13  ;;  %v1407_v9 = vand.u32 4294901760, %v1406_v24 }
  0xb1   : > { %4286 = vst [vmem:[#allocation100_spill] sm:$0xff] %v3510_v43  ;;  %v1424_v23 = vsub.f32 %v3494_v35, %v4138_v8  ;;  %v4140_v42 = vand.u32 4294901760, %v3510_v43  ;;  %1450 = vmatprep.subr.mxu0 %v2803_v20  ;;  %v1413_v17 = vand.u32 4294901760, %v1412_v18  ;;  %v319_v18 = vlaneseq }
  0xb2   : > { %v1419_v27 = vand.u32 4294901760, %v1418_v47  ;;  %v1430_v7 = vsub.f32 %v3502_v56, %v4139_v25  ;;  %1408 = vmatprep.subr.mxu1 %v1407_v9  ;;  %v317_v9 = vld [vmem:[%s3933_s2] sm:$0x3] }
  0xb3   : > { %v1425_v15 = vand.u32 4294901760, %v1424_v23  ;;  %v1436_v24 = vsub.f32 %v3510_v43, %v4140_v42  ;;  %1414 = vmatpush2.msra.mxu1 %v1413_v17  ;;  %v3533_v47 = vshrl.u32 %v319_v18, 7 }
  0xb4   : > { %v1431_v34 = vand.u32 4294901760, %v1430_v7  ;;  %1420 = vmatprep.subr.mxu1 %v1419_v27 }
  0xb5   : > { %v1437_v8 = vand.u32 4294901760, %v1436_v24  ;;  %1426 = vmatpush2.msra.mxu1 %v1425_v15  ;;  %4287 = vst [vmem:[#allocation101_spill] sm:$0xff] %v3533_v47  ;;  %v4157_v25 = vsub.s32 0, %v3533_v47  ;;  %v4162_v23 = vsub.s32 1, %v3533_v47 }
  0xb6   : > { %1432 = vmatprep.subr.mxu1 %v1431_v34 }
  0xb7   : > { %1438 = vmatpush2.msra.mxu1 %v1437_v8  ;;  %v322_v27 = vrot.slane %v317_v9, %v4157_v25  ;;  %v326_v15 = vrot.slane %v317_v9, %v4162_v23 }
  0xb8   : > { %1652 = vmatprep.subr.mxu1 %v2784_v12 }
 0x11c   : > { %v408_v34 = vpop.f32.mrf.mxu0 }
 0x11d   : > { %v409_v7 = vadd.f32 %v408_v34, %v322_v27 }
 0x11e   : > { %v410_v8 = vpop.f32.mrf.mxu0  ;;  %v500_v17 = vpop.f32.mrf.mxu1 }
 0x11f   : > { %v411_v24 = vadd.f32 %v410_v8, %v326_v15  ;;  %v501_v18 = vadd.f32 %v500_v17, %v409_v7 }
 0x120   : > { %v581_v42 = vpop.f32.mrf.mxu0  ;;  %v502_v20 = vpop.f32.mrf.mxu1 }
 0x121   : > { %v582_v43 = vadd.f32 %v581_v42, %v501_v18  ;;  %v503_v56 = vadd.f32 %v502_v20, %v411_v24  ;;  %v4289_v18 = vld [vmem:[#allocation14_spill] sm:$0xff] }
 0x122   : > { %v583_v35 = vpop.f32.mrf.mxu0 }
 0x123   : > { %v584_v4 = vadd.f32 %v583_v35, %v503_v56 }
 0x124   : > { %v659_v12 = vpop.f32.mrf.mxu1 }
 0x125   : > { %v660_v13 = vadd.f32 %v659_v12, %v582_v43 }
 0x126   : > { %v743_v39 = vpop.f32.mrf.mxu0  ;;  %v661_v45 = vpop.f32.mrf.mxu1 }
 0x127   : > { %v744_v25 = vadd.f32 %v743_v39, %v660_v13  ;;  %v662_v0 = vadd.f32 %v661_v45, %v584_v4 }
 0x128   : > { %v745_v47 = vpop.f32.mrf.mxu0 }
 0x129   : > { %v746_v9 = vadd.f32 %v745_v47, %v662_v0 }
 0x12a   : > { %v819_v23 = vpop.f32.mrf.mxu1 }
 0x12b   : > { %v820_v27 = vadd.f32 %v819_v23, %v744_v25 }
 0x12c   : > { %v821_v34 = vpop.f32.mrf.mxu1 }
 0x12d   : > { %v826_v44 = vmul.f32 0.70710677, %v820_v27  ;;  %v822_v15 = vadd.f32 %v821_v34, %v746_v9  ;;  %v824_v20 = vmul.f32 0.5, %v820_v27  ;;  %v4290_v9 = vld [vmem:[#allocation15_spill] sm:$0xff]  ;;  %v4291_v27 = vld [vmem:[#allocation16_spill] sm:$0xff]  ;;  %v4292_v34 = vld [vmem:[#allocation17_spill] sm:$0xff] }
 0x12f   : > { %2433 = verf.f32 %v826_v44  ;;  %v827_v7 = vmul.f32 0.70710677, %v822_v15  ;;  %v825_v12 = vmul.f32 0.5, %v822_v15  ;;  %v4293_v15 = vld [vmem:[#allocation25_spill] sm:$0xff] }
 0x131   : > { %2435 = verf.f32 %v827_v7  ;;  %v4294_v7 = vld [vmem:[#allocation18_spill] sm:$0xff] }
 0x13c   : > { %v2434_v42 = vpop.eup %2433 }
 0x13d   : > { %v830_v8 = vadd.f32 1.0, %v2434_v42  ;;  %v4295_v42 = vld [vmem:[#allocation26_spill] sm:$0xff] }
 0x13e   : > { %v2436_v56 = vpop.eup %2435 }
 0x13f   : > { %v832_v35 = vmul.f32 %v830_v8, %v824_v20  ;;  %v831_v43 = vadd.f32 1.0, %v2436_v56  ;;  %v4296_v20 = vld [vmem:[#allocation19_spill] sm:$0xff]  ;;  %v4297_v8 = vld [vmem:[#allocation28_spill] sm:$0xff] }
 0x140   : > { %v4298_v56 = vld [vmem:[#allocation20_spill] sm:$0xff] }
 0x141   : > { %v3544_v17 = vand.u32 4294901760, %v832_v35  ;;  %v833_v13 = vmul.f32 %v831_v43, %v825_v12  ;;  %v4300_v12 = vld [vmem:[#allocation21_spill] sm:$0xff]  ;;  %v4301_v43 = vld [vmem:[#allocation32_spill] sm:$0xff] }
 0x143   : > { %4288 = vst [vmem:[#allocation102_spill] sm:$0xff] %v3544_v17  ;;  %v3547_v0 = vsub.f32 %v832_v35, %v3544_v17  ;;  %v3549_v45 = vand.u32 4294901760, %v833_v13  ;;  %v4299_v35 = vld [vmem:[#allocation30_spill] sm:$0xff] }
 0x145   : > { %v1039_v4 = vsub.f32 %v833_v13, %v3549_v45  ;;  %1440 = vmatprep.mubr.f32.mxu1 %v3549_v45  ;;  %v4165_v44 = vand.u32 4294901760, %v3547_v0  ;;  %v4302_v13 = vld [vmem:[#allocation22_spill] sm:$0xff] }
 0x146   : > { %1442 = vmatmul.mubr.f32.vlgmr.msra.gmra.mxu1 %v3544_v17  ;;  %v4310_v17 = vld [vmem:[#allocation29_spill] sm:$0xff] }
 0x147   : > { %1654 = vmatpush1.msra.mxu1 %v2805_v21  ;;  %v1040_v39 = vand.u32 4294901760, %v1039_v4  ;;  %v1047_v25 = vsub.f32 %v3547_v0, %v4165_v44  ;;  %v4309_v44 = vld [vmem:[#allocation41_spill] sm:$0xff] }
 0x148   : > { %1656 = vmatprep.subr.mxu1 %v2807_v22 }
 0x149   : > { %1658 = vmatpush1.msra.mxu1 %v2844_v50  ;;  %1782 = vmatprep.mubr.f32.mxu1 %v1040_v39  ;;  %v1041_v47 = vsub.f32 %v1039_v4, %v1040_v39  ;;  %v1048_v24 = vand.u32 4294901760, %v1047_v25  ;;  %v4304_v39 = vld [vmem:[#allocation23_spill] sm:$0xff]  ;;  %v4305_v25 = vld [vmem:[#allocation36_spill] sm:$0xff] }
 0x14a   : > { %1660 = vmatprep.subr.mxu1 %v2846_v51 }
 0x14b   : > { %1662 = vmatpush1.msra.mxu1 %v2848_v52  ;;  %v1042_v23 = vand.u32 4294901760, %v1041_v47  ;;  %v4306_v47 = vld [vmem:[#allocation24_spill] sm:$0xff] }
 0x14c   : > { %1664 = vmatprep.subr.mxu1 %v2860_v57 }
 0x14d   : > { %1666 = vmatpush1.msra.mxu1 %v2862_v58  ;;  %1043 = vmatprep.mubr.f32.mxu0 %v1042_v23  ;;  %v4307_v23 = vld [vmem:[#allocation38_spill] sm:$0xff] }
 0x14e   : > { %1668 = vmatprep.subr.mxu1 %v2873_v62  ;;  %1049 = vmatmul.mubr.f32.vlgmr.msra.gmra.mxu0 %v1048_v24  ;;  %v4308_v24 = vld [vmem:[#allocation27_spill] sm:$0xff] }
 0x14f   : > { %1453 = vmatpush1.msra.mxu0 %v2819_v28  ;;  %1670 = vmatpush1.msra.mxu1 %v2882_v2 }
 0x150   : > { %1456 = vmatprep.subr.mxu0 %v2822_v29  ;;  %1642 = vmatprep.mubr.f32.mxu0 %v1039_v4  ;;  %v4303_v4 = vld [vmem:[#allocation34_spill] sm:$0xff] }
 0x151   : > { %1672 = vmatprep.subr.mxu1 %v2884_v3  ;;  %1459 = vmatpush1.msra.mxu0 %v2865_v59 }
 0x152   : > { %1674 = vmatpush1.msra.mxu1 %v2954_v53  ;;  %1462 = vmatprep.subr.mxu0 %v2868_v60 }
 0x153   : > { %1676 = vmatprep.subr.mxu1 %v2956_v54  ;;  %1465 = vmatpush1.msra.mxu0 %v2871_v61 }
 0x154   : > { %1678 = vmatpush1.msra.mxu1 %v2958_v55  ;;  %1468 = vmatprep.subr.mxu0 %v2877_v63 }
 0x155   : > { %1680 = vmatprep.subr.mxu1 %v2969_v26  ;;  %1471 = vmatpush1.msra.mxu0 %v2880_v1 }
 0x156   : > { %1682 = vmatpush1.msra.mxu1 %v2971_v31  ;;  %1474 = vmatprep.subr.mxu0 %v2896_v11 }
 0x157   : > { %1684 = vmatprep.subr.mxu1 %v2984_v30  ;;  %1477 = vmatpush1.msra.mxu0 %v2904_v32 }
 0x158   : > { %1686 = vmatpush1.msra.mxu1 %v2994_v38  ;;  %1480 = vmatprep.subr.mxu0 %v2909_v33 }
 0x159   : > { %1688 = vmatprep.subr.mxu1 %v2996_v14  ;;  %1483 = vmatpush1.msra.mxu0 %v2976_v19 }
 0x15a   : > { %1690 = vmatpush1.msra.mxu1 %v3057_v40  ;;  %1486 = vmatprep.subr.mxu0 %v4289_v18 }
 0x15b   : > { %1692 = vmatprep.subr.mxu1 %v3059_v6  ;;  %1489 = vmatpush1.msra.mxu0 %v4290_v9 }
 0x15c   : > { %1694 = vmatpush1.msra.mxu1 %v3061_v36  ;;  %1492 = vmatprep.subr.mxu0 %v4291_v27 }
 0x15d   : > { %1696 = vmatprep.subr.mxu1 %v3065_v5  ;;  %1495 = vmatpush1.msra.mxu0 %v4292_v34 }
 0x15e   : > { %1698 = vmatpush1.msra.mxu1 %v3067_v49  ;;  %1498 = vmatprep.subr.mxu0 %v3018_v46 }
 0x15f   : > { %1700 = vmatprep.subr.mxu1 %v3079_v48  ;;  %1501 = vmatpush1.msra.mxu0 %v3024_v10 }
 0x160   : > { %1702 = vmatpush1.msra.mxu1 %v3088_v41  ;;  %1504 = vmatprep.subr.mxu0 %v3033_v16 }
 0x161   : > { %1704 = vmatprep.subr.mxu1 %v4293_v15  ;;  %1507 = vmatpush1.msra.mxu0 %v4294_v7 }
 0x162   : > { %1706 = vmatpush1.msra.mxu1 %v4295_v42  ;;  %1510 = vmatprep.subr.mxu0 %v4296_v20 }
 0x163   : > { %1708 = vmatprep.subr.mxu1 %v4297_v8  ;;  %1513 = vmatpush1.msra.mxu0 %v4298_v56 }
 0x164   : > { %1710 = vmatpush1.msra.mxu1 %v4299_v35  ;;  %1516 = vmatprep.subr.mxu0 %v4300_v12  ;;  %v4311_v12 = vld [vmem:[#allocation42_spill] sm:$0xff] }
 0x165   : > { %1712 = vmatprep.subr.mxu1 %v4301_v43  ;;  %1519 = vmatpush1.msra.mxu0 %v4302_v13  ;;  %v4312_v43 = vld [vmem:[#allocation31_spill] sm:$0xff] }
 0x166   : > { %1714 = vmatpush1.msra.mxu1 %v4303_v4  ;;  %1522 = vmatprep.subr.mxu0 %v4304_v39  ;;  %v4313_v13 = vld [vmem:[#allocation43_spill] sm:$0xff]  ;;  %v4314_v4 = vld [vmem:[#allocation33_spill] sm:$0xff] }
 0x167   : > { %1716 = vmatprep.subr.mxu1 %v4305_v25  ;;  %1525 = vmatpush1.msra.mxu0 %v4306_v47  ;;  %v4315_v39 = vld [vmem:[#allocation45_spill] sm:$0xff]  ;;  %v4316_v25 = vld [vmem:[#allocation35_spill] sm:$0xff]  ;;  %v4317_v47 = vld [vmem:[#allocation48_spill] sm:$0xff] }
 0x168   : > { %1718 = vmatpush2.msra.mxu1 %v4307_v23  ;;  %1528 = vmatprep.subr.mxu0 %v4308_v24  ;;  %v4318_v23 = vld [vmem:[#allocation37_spill] sm:$0xff]  ;;  %v4319_v24 = vld [vmem:[#allocation50_spill] sm:$0xff] }
 0x169   : > { %1720 = vmatprep.subr.mxu1 %v4309_v44  ;;  %1531 = vmatpush1.msra.mxu0 %v4310_v17  ;;  %v4320_v44 = vld [vmem:[#allocation39_spill] sm:$0xff]  ;;  %v4321_v17 = vld [vmem:[#allocation53_spill] sm:$0xff] }
 0x16a   : > { %1722 = vmatpush2.msra.mxu1 %v4311_v12  ;;  %1534 = vmatprep.subr.mxu0 %v4312_v43  ;;  %v4322_v12 = vld [vmem:[#allocation40_spill] sm:$0xff]  ;;  %v4323_v43 = vld [vmem:[#allocation54_spill] sm:$0xff] }
 0x16b   : > { %1724 = vmatprep.subr.mxu1 %v4313_v13  ;;  %1537 = vmatpush1.msra.mxu0 %v4314_v4  ;;  %v4324_v13 = vld [vmem:[#allocation44_spill] sm:$0xff]  ;;  %v4325_v4 = vld [vmem:[#allocation57_spill] sm:$0xff] }
 0x16c   : > { %1726 = vmatpush2.msra.mxu1 %v4315_v39  ;;  %1540 = vmatprep.subr.mxu0 %v4316_v25  ;;  %v4326_v39 = vld [vmem:[#allocation46_spill] sm:$0xff] }
 0x16d   : > { %1728 = vmatprep.subr.mxu1 %v4317_v47  ;;  %1543 = vmatpush1.msra.mxu0 %v4318_v23  ;;  %v4327_v25 = vld [vmem:[#allocation58_spill] sm:$0xff]  ;;  %v4328_v47 = vld [vmem:[#allocation47_spill] sm:$0xff] }
 0x16e   : > { %1730 = vmatpush2.msra.mxu1 %v4319_v24  ;;  %1546 = vmatprep.subr.mxu0 %v4320_v44  ;;  %v4329_v23 = vld [vmem:[#allocation59_spill] sm:$0xff]  ;;  %v4330_v24 = vld [vmem:[#allocation49_spill] sm:$0xff] }
 0x16f   : > { %1732 = vmatprep.subr.mxu1 %v4321_v17  ;;  %1549 = vmatpush2.msra.mxu0 %v4322_v12  ;;  %v4331_v44 = vld [vmem:[#allocation61_spill] sm:$0xff]  ;;  %v4332_v17 = vld [vmem:[#allocation51_spill] sm:$0xff]  ;;  %v4333_v12 = vld [vmem:[#allocation64_spill] sm:$0xff] }
 0x170   : > { %1734 = vmatpush2.msra.mxu1 %v4323_v43  ;;  %1552 = vmatprep.subr.mxu0 %v4324_v13  ;;  %v4334_v43 = vld [vmem:[#allocation52_spill] sm:$0xff]  ;;  %v4335_v13 = vld [vmem:[#allocation66_spill] sm:$0xff] }
 0x171   : > { %1736 = vmatprep.subr.mxu1 %v4325_v4  ;;  %1555 = vmatpush2.msra.mxu0 %v4326_v39  ;;  %v4336_v4 = vld [vmem:[#allocation55_spill] sm:$0xff]  ;;  %v4337_v39 = vld [vmem:[#allocation69_spill] sm:$0xff] }
 0x172   : > { %1738 = vmatpush2.msra.mxu1 %v4327_v25  ;;  %1558 = vmatprep.subr.mxu0 %v4328_v47  ;;  %v4338_v25 = vld [vmem:[#allocation56_spill] sm:$0xff]  ;;  %v4339_v47 = vld [vmem:[#allocation70_spill] sm:$0xff] }
 0x173   : > { %1740 = vmatprep.subr.mxu1 %v4329_v23  ;;  %1561 = vmatpush2.msra.mxu0 %v4330_v24  ;;  %v4340_v23 = vld [vmem:[#allocation60_spill] sm:$0xff]  ;;  %v4341_v24 = vld [vmem:[#allocation73_spill] sm:$0xff] }
 0x174   : > { %1742 = vmatpush2.msra.mxu1 %v4331_v44  ;;  %1564 = vmatprep.subr.mxu0 %v4332_v17  ;;  %v4342_v44 = vld [vmem:[#allocation62_spill] sm:$0xff] }
 0x175   : > { %1744 = vmatprep.subr.mxu1 %v4333_v12  ;;  %1567 = vmatpush2.msra.mxu0 %v4334_v43  ;;  %v4343_v17 = vld [vmem:[#allocation74_spill] sm:$0xff]  ;;  %v4344_v12 = vld [vmem:[#allocation63_spill] sm:$0xff] }
 0x176   : > { %1746 = vmatpush2.msra.mxu1 %v4335_v13  ;;  %1570 = vmatprep.subr.mxu0 %v4336_v4  ;;  %v4345_v43 = vld [vmem:[#allocation75_spill] sm:$0xff]  ;;  %v4346_v13 = vld [vmem:[#allocation65_spill] sm:$0xff] }
 0x177   : > { %1748 = vmatprep.subr.mxu1 %v4337_v39  ;;  %1573 = vmatpush2.msra.mxu0 %v4338_v25  ;;  %v4347_v4 = vld [vmem:[#allocation77_spill] sm:$0xff]  ;;  %v4348_v39 = vld [vmem:[#allocation67_spill] sm:$0xff]  ;;  %v4349_v25 = vld [vmem:[#allocation80_spill] sm:$0xff] }
 0x178   : > { %1750 = vmatpush2.msra.mxu1 %v4339_v47  ;;  %1576 = vmatprep.subr.mxu0 %v4340_v23  ;;  %v4350_v47 = vld [vmem:[#allocation68_spill] sm:$0xff]  ;;  %v4351_v23 = vld [vmem:[#allocation82_spill] sm:$0xff] }
 0x179   : > { %1752 = vmatprep.subr.mxu1 %v4341_v24  ;;  %1579 = vmatpush2.msra.mxu0 %v4342_v44  ;;  %v4352_v24 = vld [vmem:[#allocation71_spill] sm:$0xff]  ;;  %v4353_v44 = vld [vmem:[#allocation85_spill] sm:$0xff] }
 0x17a   : > { %1754 = vmatpush2.msra.mxu1 %v4343_v17  ;;  %1582 = vmatprep.subr.mxu0 %v4344_v12  ;;  %v4354_v17 = vld [vmem:[#allocation72_spill] sm:$0xff]  ;;  %v4355_v12 = vld [vmem:[#allocation86_spill] sm:$0xff] }
 0x17b   : > { %1756 = vmatprep.subr.mxu1 %v4345_v43  ;;  %1585 = vmatpush2.msra.mxu0 %v4346_v13  ;;  %v4356_v43 = vld [vmem:[#allocation76_spill] sm:$0xff] }
 0x17c   : > { %1758 = vmatpush2.msra.mxu1 %v4347_v4  ;;  %1588 = vmatprep.subr.mxu0 %v4348_v39  ;;  %v4357_v4 = vld [vmem:[#allocation78_spill] sm:$0xff] }
 0x17d   : > { %1760 = vmatprep.subr.mxu1 %v4349_v25  ;;  %1591 = vmatpush2.msra.mxu0 %v4350_v47  ;;  %v4358_v39 = vld [vmem:[#allocation90_spill] sm:$0xff]  ;;  %v4359_v25 = vld [vmem:[#allocation79_spill] sm:$0xff] }
 0x17e   : > { %1762 = vmatpush2.msra.mxu1 %v4351_v23  ;;  %1594 = vmatprep.subr.mxu0 %v4352_v24  ;;  %v4360_v47 = vld [vmem:[#allocation91_spill] sm:$0xff]  ;;  %v4361_v23 = vld [vmem:[#allocation81_spill] sm:$0xff] }
 0x17f   : > { %1764 = vmatprep.subr.mxu1 %v4353_v44  ;;  %1597 = vmatpush2.msra.mxu0 %v4354_v17  ;;  %v4362_v24 = vld [vmem:[#allocation93_spill] sm:$0xff]  ;;  %v4363_v44 = vld [vmem:[#allocation83_spill] sm:$0xff]  ;;  %v4364_v17 = vld [vmem:[#allocation96_spill] sm:$0xff] }
 0x180   : > { %1766 = vmatpush2.msra.mxu1 %v4355_v12  ;;  %1600 = vmatprep.subr.mxu0 %v4356_v43  ;;  %v4365_v12 = vld [vmem:[#allocation84_spill] sm:$0xff]  ;;  %v4366_v43 = vld [vmem:[#allocation98_spill] sm:$0xff] }
 0x181   : > { %1768 = vmatprep.subr.mxu1 %v3464_v37  ;;  %1603 = vmatpush2.msra.mxu0 %v4357_v4  ;;  %v4367_v37 = vld [vmem:[#allocation87_spill] sm:$0xff] }
 0x182   : > { %1770 = vmatpush2.msra.mxu1 %v4358_v39  ;;  %1606 = vmatprep.subr.mxu0 %v4359_v25  ;;  %v4368_v39 = vand.u32 4294901760, %v3547_v0  ;;  %v4369_v25 = vld [vmem:[#allocation12_spill] sm:$0xff] }
 0x183   : > { %1772 = vmatprep.subr.mxu1 %v4360_v47  ;;  %1609 = vmatpush2.msra.mxu0 %v4361_v23  ;;  %v4370_v47 = vld [vmem:[#allocation88_spill] sm:$0xff] }
 0x184   : > { %1774 = vmatpush2.msra.mxu1 %v4362_v24  ;;  %1612 = vmatprep.subr.mxu0 %v4363_v44  ;;  %v4371_v44 = vld [vmem:[#allocation92_spill] sm:$0xff] }
 0x185   : > { %1776 = vmatprep.subr.mxu1 %v4364_v17  ;;  %1615 = vmatpush2.msra.mxu0 %v4365_v12  ;;  %v4372_v12 = vld [vmem:[#allocation94_spill] sm:$0xff] }
 0x186   : > { %1778 = vmatpush2.msra.mxu1 %v4366_v43  ;;  %1618 = vmatprep.subr.mxu0 %v4367_v37  ;;  %v4373_v37 = vld [vmem:[#allocation95_spill] sm:$0xff] }
 0x187   : > { %1786 = vmatmul.mubr.f32.vlgmr.msra.gmra.mxu1 %v4368_v39  ;;  %2058 = vmatprep.subr.mxu1 %v4369_v25  ;;  %v4374_v39 = vld [vmem:[#allocation97_spill] sm:$0xff]  ;;  %v4375_v25 = vld [vmem:[#allocation99_spill] sm:$0xff] }
 0x188   : > { %1621 = vmatpush2.msra.mxu0 %v4370_v47  ;;  %2060 = vmatpush1.msra.mxu1 %v2805_v21  ;;  %v4376_v21 = vld [vmem:[#allocation100_spill] sm:$0xff] }
 0x189   : > { %2186 = vmatprep.mubr.f32.mxu1 %v3549_v45  ;;  %1624 = vmatprep.subr.mxu0 %v4371_v44 }
 0x18a   : > { %2062 = vmatprep.subr.mxu1 %v2807_v22  ;;  %1627 = vmatpush2.msra.mxu0 %v4372_v12  ;;  %v4377_v22 = vld [vmem:[#allocation13_spill] sm:$0xff] }
 0x18b   : > { %2064 = vmatpush1.msra.mxu1 %v2844_v50  ;;  %1630 = vmatprep.subr.mxu0 %v4373_v37  ;;  %v4378_v50 = vand.u32 4294901760, %v4377_v22 }
 0x18c   : > { %2066 = vmatprep.subr.mxu1 %v2846_v51  ;;  %1633 = vmatpush2.msra.mxu0 %v4374_v39  ;;  %v4379_v51 = vand.u32 4294901760, %v2819_v28  ;;  %v4383_v28 = vand.u32 4294901760, %v2871_v61  ;;  %v4387_v61 = vand.u32 4294901760, %v2904_v32  ;;  %v4397_v32 = vand.u32 4294901760, %v4294_v7 }
 0x18d   : > { %2068 = vmatpush1.msra.mxu1 %v2848_v52  ;;  %1636 = vmatprep.subr.mxu0 %v4375_v25  ;;  %v4380_v52 = vand.u32 4294901760, %v2822_v29  ;;  %v4384_v29 = vand.u32 4294901760, %v2877_v63  ;;  %v4389_v63 = vand.u32 4294901760, %v2976_v19  ;;  %v4405_v19 = vld [vmem:[#allocation34_spill] sm:$0xff] }
 0x18e   : > { %2070 = vmatprep.subr.mxu1 %v2860_v57  ;;  %1639 = vmatpush2.msra.mxu0 %v4376_v21  ;;  %v4381_v57 = vand.u32 4294901760, %v2865_v59  ;;  %v4385_v59 = vand.u32 4294901760, %v2880_v1  ;;  %v4390_v1 = vand.u32 4294901760, %v4289_v18  ;;  %v4417_v18 = vld [vmem:[#allocation42_spill] sm:$0xff] }
 0x18f   : > { %2072 = vmatpush1.msra.mxu1 %v2862_v58  ;;  %1645 = vmatmul.mubr.f32.vlgmr.msra.gmra.mxu0 %v3547_v0  ;;  %v4382_v58 = vand.u32 4294901760, %v2868_v60  ;;  %v4386_v60 = vand.u32 4294901760, %v2896_v11  ;;  %v4393_v11 = vand.u32 4294901760, %v4292_v34  ;;  %v4415_v0 = vld [vmem:[#allocation29_spill] sm:$0xff]  ;;  %v4420_v34 = vld [vmem:[#allocation43_spill] sm:$0xff] }
 0x190   : > { %1795 = vmatprep.subr.mxu0 %v4378_v50  ;;  %2074 = vmatprep.subr.mxu1 %v2873_v62  ;;  %v4388_v62 = vand.u32 4294901760, %v2909_v33  ;;  %v4398_v33 = vand.u32 4294901760, %v4296_v20  ;;  %v4424_v20 = vld [vmem:[#allocation35_spill] sm:$0xff]  ;;  %v4429_v50 = vld [vmem:[#allocation50_spill] sm:$0xff] }
 0x191   : > { %1799 = vmatpush1.msra.mxu0 %v4379_v51  ;;  %2049 = vmatprep.mubr.f32.mxu0 %v3549_v45  ;;  %v4416_v45 = vand.u32 4294901760, %v4415_v0  ;;  %v4430_v51 = vld [vmem:[#allocation39_spill] sm:$0xff] }
 0x192   : > { %2076 = vmatpush1.msra.mxu1 %v2882_v2  ;;  %1803 = vmatprep.subr.mxu0 %v4380_v52  ;;  %v4391_v2 = vand.u32 4294901760, %v4290_v9  ;;  %v4418_v9 = vld [vmem:[#allocation31_spill] sm:$0xff]  ;;  %v4431_v52 = vand.u32 4294901760, %v4430_v51  ;;  %v4482_v51 = vld [vmem:[#allocation86_spill] sm:$0xff] }
 0x193   : > { %2078 = vmatprep.subr.mxu1 %v2884_v3  ;;  %1807 = vmatpush1.msra.mxu0 %v4381_v57  ;;  %v4392_v3 = vand.u32 4294901760, %v4291_v27  ;;  %v4419_v27 = vand.u32 4294901760, %v4418_v9  ;;  %v4432_v57 = vld [vmem:[#allocation53_spill] sm:$0xff]  ;;  %v4466_v0 = vld [vmem:[#allocation63_spill] sm:$0xff]  ;;  %v4469_v9 = vand.u32 4294901760, %v4346_v13 }
 0x194   : > { %2080 = vmatpush1.msra.mxu1 %v2954_v53  ;;  %1811 = vmatprep.subr.mxu0 %v4382_v58  ;;  %v4400_v53 = vld [vmem:[#allocation21_spill] sm:$0xff]  ;;  %v4433_v58 = vld [vmem:[#allocation40_spill] sm:$0xff] }
 0x195   : > { %2082 = vmatprep.subr.mxu1 %v2956_v54  ;;  %1815 = vmatpush1.msra.mxu0 %v4383_v28  ;;  %v4401_v54 = vand.u32 4294901760, %v4400_v53  ;;  %v4434_v28 = vand.u32 4294901760, %v4433_v58  ;;  %v4451_v53 = vld [vmem:[#allocation52_spill] sm:$0xff]  ;;  %v4485_v58 = vld [vmem:[#allocation89_spill] sm:$0xff] }
 0x196   : > { %2084 = vmatpush1.msra.mxu1 %v2958_v55  ;;  %1819 = vmatprep.subr.mxu0 %v4384_v29  ;;  %v4402_v55 = vld [vmem:[#allocation32_spill] sm:$0xff]  ;;  %v4435_v29 = vld [vmem:[#allocation54_spill] sm:$0xff] }
 0x197   : > { %2086 = vmatprep.subr.mxu1 %v2969_v26  ;;  %1823 = vmatpush1.msra.mxu0 %v4385_v59  ;;  %v4403_v26 = vld [vmem:[#allocation22_spill] sm:$0xff]  ;;  %v4436_v59 = vld [vmem:[#allocation44_spill] sm:$0xff] }
 0x198   : > { %2088 = vmatpush1.msra.mxu1 %v2971_v31  ;;  %1827 = vmatprep.subr.mxu0 %v4386_v60  ;;  %v4404_v31 = vand.u32 4294901760, %v4403_v26  ;;  %v4437_v60 = vand.u32 4294901760, %v4436_v59  ;;  %v4454_v26 = vld [vmem:[#allocation55_spill] sm:$0xff] }
 0x199   : > { %2090 = vmatprep.subr.mxu1 %v2984_v30  ;;  %1831 = vmatpush1.msra.mxu0 %v4387_v61  ;;  %v4395_v30 = vand.u32 4294901760, %v3024_v10  ;;  %v4409_v10 = vld [vmem:[#allocation24_spill] sm:$0xff]  ;;  %v4438_v61 = vld [vmem:[#allocation57_spill] sm:$0xff]  ;;  %v4488_v59 = vld [vmem:[#allocation79_spill] sm:$0xff] }
 0x19a   : > { %2092 = vmatpush1.msra.mxu1 %v2994_v38  ;;  %1835 = vmatprep.subr.mxu0 %v4388_v62  ;;  %v4406_v38 = vld [vmem:[#allocation23_spill] sm:$0xff]  ;;  %v4439_v62 = vld [vmem:[#allocation46_spill] sm:$0xff] }
 0x19b   : > { %2094 = vmatprep.subr.mxu1 %v2996_v14  ;;  %1839 = vmatpush1.msra.mxu0 %v4389_v63  ;;  %v4394_v14 = vand.u32 4294901760, %v3018_v46  ;;  %v4399_v46 = vand.u32 4294901760, %v4298_v56  ;;  %v4426_v56 = vld [vmem:[#allocation48_spill] sm:$0xff]  ;;  %v4440_v63 = vand.u32 4294901760, %v4439_v62  ;;  %v4491_v62 = vand.u32 4294901760, %v4361_v23 }
 0x19c   : > { %2096 = vmatpush1.msra.mxu1 %v3057_v40  ;;  %1843 = vmatprep.subr.mxu0 %v4390_v1  ;;  %v4407_v40 = vand.u32 4294901760, %v4406_v38  ;;  %v4441_v1 = vld [vmem:[#allocation58_spill] sm:$0xff]  ;;  %v4457_v38 = vld [vmem:[#allocation56_spill] sm:$0xff]  ;;  %v4499_v23 = vand.u32 4294901760, %v4370_v47  ;;  %v4506_v47 = vld [vmem:[#allocation101_spill] sm:$0xff] }
 0x19d   : > { %2098 = vmatprep.subr.mxu1 %v3059_v6  ;;  %1847 = vmatpush1.msra.mxu0 %v4391_v2  ;;  %v4408_v6 = vld [vmem:[#allocation36_spill] sm:$0xff]  ;;  %v4442_v2 = vld [vmem:[#allocation47_spill] sm:$0xff] }
 0x19e   : > { %2100 = vmatpush1.msra.mxu1 %v3061_v36  ;;  %1851 = vmatprep.subr.mxu0 %v4392_v3  ;;  %v4396_v36 = vand.u32 4294901760, %v3033_v16  ;;  %v4410_v16 = vand.u32 4294901760, %v4409_v10  ;;  %v4443_v3 = vand.u32 4294901760, %v4442_v2  ;;  %v4460_v10 = vld [vmem:[#allocation60_spill] sm:$0xff] }
 0x19f   : > { %2102 = vmatprep.subr.mxu1 %v3065_v5  ;;  %1855 = vmatpush1.msra.mxu0 %v4393_v11  ;;  %v4411_v5 = vld [vmem:[#allocation38_spill] sm:$0xff]  ;;  %v4444_v11 = vld [vmem:[#allocation59_spill] sm:$0xff]  ;;  %v4494_v2 = vld [vmem:[#allocation84_spill] sm:$0xff] }
 0x1a0   : > { %2104 = vmatpush1.msra.mxu1 %v3067_v49  ;;  %1859 = vmatprep.subr.mxu0 %v4394_v14  ;;  %v4412_v49 = vld [vmem:[#allocation27_spill] sm:$0xff]  ;;  %v4445_v14 = vld [vmem:[#allocation49_spill] sm:$0xff] }
 0x1a1   : > { %2106 = vmatprep.subr.mxu1 %v3079_v48  ;;  %1863 = vmatpush1.msra.mxu0 %v4395_v30  ;;  %v4413_v48 = vand.u32 4294901760, %v4412_v49  ;;  %v4446_v30 = vand.u32 4294901760, %v4445_v14  ;;  %v4463_v49 = vld [vmem:[#allocation62_spill] sm:$0xff] }
 0x1a2   : > { %2108 = vmatpush1.msra.mxu1 %v3088_v41  ;;  %1867 = vmatprep.subr.mxu0 %v4396_v36  ;;  %v4414_v41 = vld [vmem:[#allocation41_spill] sm:$0xff]  ;;  %v4498_v14 = vld [vmem:[#allocation102_spill] sm:$0xff] }
 0x1a3   : > { %2110 = vmatprep.subr.mxu1 %v4293_v15  ;;  %1871 = vmatpush1.msra.mxu0 %v4397_v32  ;;  %v4421_v15 = vld [vmem:[#allocation33_spill] sm:$0xff]  ;;  %v4448_v32 = vld [vmem:[#allocation51_spill] sm:$0xff] }
 0x1a4   : > { %2112 = vmatpush1.msra.mxu1 %v4295_v42  ;;  %1875 = vmatprep.subr.mxu0 %v4398_v33  ;;  %v4422_v7 = vand.u32 4294901760, %v4421_v15  ;;  %v4423_v42 = vld [vmem:[#allocation45_spill] sm:$0xff]  ;;  %v4449_v33 = vand.u32 4294901760, %v4448_v32  ;;  %v4505_v32 = vand.u32 4294901760, %v4376_v21 }
 0x1a5   : > { %2114 = vmatprep.subr.mxu1 %v4297_v8  ;;  %1879 = vmatpush1.msra.mxu0 %v4399_v46  ;;  %v4425_v8 = vand.u32 4294901760, %v4424_v20  ;;  %v4447_v36 = vld [vmem:[#allocation61_spill] sm:$0xff]  ;;  %v4450_v46 = vld [vmem:[#allocation64_spill] sm:$0xff] }
 0x1a6   : > { %2116 = vmatpush1.msra.mxu1 %v4299_v35  ;;  %1883 = vmatprep.subr.mxu0 %v4401_v54  ;;  %v4427_v35 = vld [vmem:[#allocation37_spill] sm:$0xff]  ;;  %v4452_v54 = vand.u32 4294901760, %v4451_v53 }
 0x1a7   : > { %2118 = vmatprep.subr.mxu1 %v4402_v55  ;;  %1887 = vmatpush1.msra.mxu0 %v4404_v31  ;;  %v4428_v22 = vand.u32 4294901760, %v4427_v35  ;;  %v4453_v55 = vld [vmem:[#allocation66_spill] sm:$0xff]  ;;  %v4455_v31 = vand.u32 4294901760, %v4454_v26 }
 0x1a8   : > { %2120 = vmatpush1.msra.mxu1 %v4405_v19  ;;  %1891 = vmatprep.subr.mxu0 %v4407_v40  ;;  %v4456_v19 = vld [vmem:[#allocation69_spill] sm:$0xff]  ;;  %v4458_v40 = vand.u32 4294901760, %v4457_v38 }
 0x1a9   : > { %2122 = vmatprep.subr.mxu1 %v4408_v6  ;;  %1895 = vmatpush1.msra.mxu0 %v4410_v16  ;;  %v4459_v6 = vld [vmem:[#allocation70_spill] sm:$0xff]  ;;  %v4461_v16 = vand.u32 4294901760, %v4460_v10 }
 0x1aa   : > { %2124 = vmatpush2.msra.mxu1 %v4411_v5  ;;  %1899 = vmatprep.subr.mxu0 %v4413_v48  ;;  %v4462_v5 = vld [vmem:[#allocation73_spill] sm:$0xff]  ;;  %v4464_v48 = vand.u32 4294901760, %v4463_v49 }
 0x1ab   : > { %2126 = vmatprep.subr.mxu1 %v4414_v41  ;;  %1903 = vmatpush1.msra.mxu0 %v4416_v45  ;;  %v4465_v41 = vld [vmem:[#allocation74_spill] sm:$0xff]  ;;  %v4467_v45 = vand.u32 4294901760, %v4466_v0 }
 0x1ac   : > { %2128 = vmatpush2.msra.mxu1 %v4417_v18  ;;  %1907 = vmatprep.subr.mxu0 %v4419_v27  ;;  %v4468_v18 = vld [vmem:[#allocation75_spill] sm:$0xff]  ;;  %v4470_v27 = vld [vmem:[#allocation77_spill] sm:$0xff] }
 0x1ad   : > { %2130 = vmatprep.subr.mxu1 %v4420_v34  ;;  %1911 = vmatpush1.msra.mxu0 %v4422_v7  ;;  %v4471_v34 = vld [vmem:[#allocation67_spill] sm:$0xff]  ;;  %v4473_v7 = vld [vmem:[#allocation80_spill] sm:$0xff] }
 0x1ae   : > { %2132 = vmatpush2.msra.mxu1 %v4423_v42  ;;  %1915 = vmatprep.subr.mxu0 %v4425_v8  ;;  %v4472_v15 = vand.u32 4294901760, %v4471_v34  ;;  %v4474_v42 = vld [vmem:[#allocation68_spill] sm:$0xff]  ;;  %v4476_v8 = vld [vmem:[#allocation82_spill] sm:$0xff] }
 0x1af   : > { %2134 = vmatprep.subr.mxu1 %v4426_v56  ;;  %1919 = vmatpush1.msra.mxu0 %v4428_v22  ;;  %v4475_v20 = vand.u32 4294901760, %v4474_v42  ;;  %v4477_v56 = vld [vmem:[#allocation71_spill] sm:$0xff]  ;;  %v4479_v22 = vld [vmem:[#allocation85_spill] sm:$0xff] }
 0x1b0   : > { %2136 = vmatpush2.msra.mxu1 %v4429_v50  ;;  %1923 = vmatprep.subr.mxu0 %v4431_v52  ;;  %v4478_v35 = vand.u32 4294901760, %v4477_v56  ;;  %v4480_v50 = vld [vmem:[#allocation72_spill] sm:$0xff] }
 0x1b1   : > { %2138 = vmatprep.subr.mxu1 %v4432_v57  ;;  %1927 = vmatpush2.msra.mxu0 %v4434_v28  ;;  %v4481_v13 = vand.u32 4294901760, %v4480_v50  ;;  %v4483_v52 = vld [vmem:[#allocation76_spill] sm:$0xff]  ;;  %v4486_v28 = vand.u32 4294901760, %v4357_v4  ;;  %v4495_v4 = vand.u32 4294901760, %v4494_v2 }
 0x1b2   : > { %2140 = vmatpush2.msra.mxu1 %v4435_v29  ;;  %1931 = vmatprep.subr.mxu0 %v4437_v60  ;;  %v4484_v57 = vand.u32 4294901760, %v4483_v52  ;;  %v4487_v29 = vld [vmem:[#allocation90_spill] sm:$0xff]  ;;  %v4489_v60 = vand.u32 4294901760, %v4488_v59 }
 0x1b3   : > { %2142 = vmatprep.subr.mxu1 %v4438_v61  ;;  %1935 = vmatpush2.msra.mxu0 %v4440_v63  ;;  %v4490_v61 = vld [vmem:[#allocation91_spill] sm:$0xff] }
 0x1b4   : > { %2144 = vmatpush2.msra.mxu1 %v4441_v1  ;;  %1939 = vmatprep.subr.mxu0 %v4443_v3  ;;  %v4492_v63 = vld [vmem:[#allocation83_spill] sm:$0xff] }
 0x1b5   : > { %2146 = vmatprep.subr.mxu1 %v4444_v11  ;;  %1943 = vmatpush2.msra.mxu0 %v4446_v30  ;;  %v4493_v1 = vand.u32 4294901760, %v4492_v63  ;;  %v4496_v3 = vld [vmem:[#allocation87_spill] sm:$0xff]  ;;  %v4501_v30 = vand.u32 4294901760, %v4372_v12 }
 0x1b6   : > { %2148 = vmatpush2.msra.mxu1 %v4447_v36  ;;  %1947 = vmatprep.subr.mxu0 %v4449_v33  ;;  %v4497_v11 = vand.u32 4294901760, %v4496_v3  ;;  %v4503_v36 = vand.u32 4294901760, %v4374_v39  ;;  %v4508_v39 = vsub.s32 1, %v4506_v47 }
 0x1b7   : > { %2150 = vmatprep.subr.mxu1 %v4450_v46  ;;  %1951 = vmatpush2.msra.mxu0 %v4452_v54 }
 0x1b8   : > { %2152 = vmatpush2.msra.mxu1 %v4453_v55  ;;  %1955 = vmatprep.subr.mxu0 %v4455_v31 }
 0x1b9   : > { %2154 = vmatprep.subr.mxu1 %v4456_v19  ;;  %1959 = vmatpush2.msra.mxu0 %v4458_v40 }
 0x1ba   : > { %2156 = vmatpush2.msra.mxu1 %v4459_v6  ;;  %1963 = vmatprep.subr.mxu0 %v4461_v16 }
 0x1bb   : > { %2158 = vmatprep.subr.mxu1 %v4462_v5  ;;  %1967 = vmatpush2.msra.mxu0 %v4464_v48 }
 0x1bc   : > { %2160 = vmatpush2.msra.mxu1 %v4465_v41  ;;  %1971 = vmatprep.subr.mxu0 %v4467_v45 }
 0x1bd   : > { %2162 = vmatprep.subr.mxu1 %v4468_v18  ;;  %1975 = vmatpush2.msra.mxu0 %v4469_v9 }
 0x1be   : > { %2164 = vmatpush2.msra.mxu1 %v4470_v27  ;;  %1979 = vmatprep.subr.mxu0 %v4472_v15 }
 0x1bf   : > { %2166 = vmatprep.subr.mxu1 %v4473_v7  ;;  %1983 = vmatpush2.msra.mxu0 %v4475_v20 }
 0x1c0   : > { %2168 = vmatpush2.msra.mxu1 %v4476_v8  ;;  %1987 = vmatprep.subr.mxu0 %v4478_v35 }
 0x1c1   : > { %2170 = vmatprep.subr.mxu1 %v4479_v22  ;;  %1991 = vmatpush2.msra.mxu0 %v4481_v13 }
 0x1c2   : > { %2172 = vmatpush2.msra.mxu1 %v4482_v51  ;;  %1995 = vmatprep.subr.mxu0 %v4484_v57 }
 0x1c3   : > { %2174 = vmatprep.subr.mxu1 %v4485_v58  ;;  %1999 = vmatpush2.msra.mxu0 %v4486_v28 }
 0x1c4   : > { %2176 = vmatpush2.msra.mxu1 %v4487_v29  ;;  %2003 = vmatprep.subr.mxu0 %v4489_v60 }
 0x1c5   : > { %2178 = vmatprep.subr.mxu1 %v4490_v61  ;;  %2007 = vmatpush2.msra.mxu0 %v4491_v62 }
 0x1c6   : > { %2180 = vmatpush2.msra.mxu1 %v4362_v24  ;;  %2011 = vmatprep.subr.mxu0 %v4493_v1  ;;  %v4500_v24 = vand.u32 4294901760, %v4371_v44  ;;  %v898_v44 = vld [vmem:[%s3935_s4] sm:$0x3] }
 0x1c7   : > { %2182 = vmatprep.subr.mxu1 %v4364_v17  ;;  %2015 = vmatpush2.msra.mxu0 %v4495_v4  ;;  %v4502_v17 = vand.u32 4294901760, %v4373_v37  ;;  %v4507_v37 = vsub.s32 0, %v4506_v47  ;;  %v907_v46 = vrot.slane %v898_v44, %v4508_v39 }
 0x1c8   : > { %2184 = vmatpush2.msra.mxu1 %v4366_v43  ;;  %2019 = vmatprep.subr.mxu0 %v4497_v11  ;;  %v4504_v43 = vand.u32 4294901760, %v4375_v25 }
 0x1c9   : > { %2188 = vmatmul.mubr.f32.vlgmr.msra.gmra.mxu1 %v4498_v14  ;;  %2023 = vmatpush2.msra.mxu0 %v4499_v23  ;;  %v903_v33 = vrot.slane %v898_v44, %v4507_v37 }
 0x1ca   : > { %2027 = vmatprep.subr.mxu0 %v4500_v24 }
 0x1cb   : > { %2031 = vmatpush2.msra.mxu0 %v4501_v30 }
 0x1cc   : > { %2035 = vmatprep.subr.mxu0 %v4502_v17 }
 0x1cd   : > { %2039 = vmatpush2.msra.mxu0 %v4503_v36 }
 0x1ce   : > { %2043 = vmatprep.subr.mxu0 %v4504_v43 }
 0x1cf   : > { %2047 = vmatpush2.msra.mxu0 %v4505_v32 }
 0x1d0   : > { %2051 = vmatmul.mubr.f32.vlgmr.msra.gmra.mxu0 %v4498_v14 }
 0x206   : > { %v1443_v53 = vpop.f32.mrf.mxu1 }
 0x208   : > { %v1445_v26 = vpop.f32.mrf.mxu1 }
 0x20e   : > { %v1050_v12 = vpop.f32.mrf.mxu0 }
 0x20f   : > { %v1051_v54 = vadd.f32 %v1050_v12, %v903_v33 }
 0x210   : > { %v1052_v25 = vpop.f32.mrf.mxu0 }
 0x211   : > { %v1053_v21 = vadd.f32 %v1052_v25, %v907_v46  ;;  %v1444_v31 = vadd.f32 %v1443_v53, %v1051_v54 }
 0x213   : > { %v1446_v6 = vadd.f32 %v1445_v26, %v1053_v21 }
 0x247   : > { %v1787_v19 = vpop.f32.mrf.mxu1 }
 0x249   : > { %v1789_v16 = vpop.f32.mrf.mxu1 }
 0x24f   : > { %v1646_v55 = vpop.f32.mrf.mxu0 }
 0x250   : > { %v1647_v40 = vadd.f32 %v1646_v55, %v1444_v31 }
 0x251   : > { %v1648_v38 = vpop.f32.mrf.mxu0 }
 0x252   : > { %v1649_v10 = vadd.f32 %v1648_v38, %v1446_v6  ;;  %v1788_v5 = vadd.f32 %v1787_v19, %v1647_v40 }
 0x254   : > { %v1790_v0 = vadd.f32 %v1789_v16, %v1649_v10 }
 0x289   : > { %v2189_v49 = vpop.f32.mrf.mxu1 }
 0x28b   : > { %v2191_v27 = vpop.f32.mrf.mxu1 }
 0x290   : > { %v2052_v48 = vpop.f32.mrf.mxu0 }
 0x291   : > { %v2053_v41 = vadd.f32 %v2052_v48, %v1788_v5 }
 0x292   : > { %v2054_v45 = vpop.f32.mrf.mxu0 }
 0x293   : > { %v2190_v18 = vadd.f32 %v2189_v49, %v2053_v41  ;;  %v2055_v9 = vadd.f32 %v2054_v45, %v1790_v0 }
 0x295   : > { %2194 = vst [vmem:[%s304_s17] sm:$0xff] %v2190_v18  ;;  %v2192_v34 = vadd.f32 %v2191_v27, %v2055_v9 }
 0x297   : > { %2195 = vst [vmem:[%s304_s17 + $0x8] sm:$0xff] %v2192_v34 }
 0x298   : > { %2530 = shalt.err (!%p2527_p5)
}
 0x299   : > { %s2531_s1 = scalar_lea.hbm %s2211_s6, 256  ;;  %s2535_s28 = scalar_lea.hbm %s3936_s5, 512 }
 0x29a   : > { %p2532_p10 = scmp.ne.s32.totalorder %s2211_s6, %s2531_s1  ;;  %p2536_p6 = scmp.lt.s32.totalorder %s2211_s6, %s3936_s5 }
 0x29b   : > { %p2537_p12 = scmp.lt.s32.totalorder %s2535_s28, %s2531_s1 }
 0x29c   : > { %p2533_p1 = pnand %p2532_p10, %p2735_p7 }
 0x29d   : > { %p2538_p3 = por %p2537_p12, %p2536_p6 }
 0x29e   : > { %p2534_p4 = pneg %p2533_p1 }
 0x2a0   : > { %p2539_p8 = pnand %p2538_p3, %p2534_p4 }
 0x2a2   : > { %2542 = shalt.err (!%p2539_p8)
}
 0x2a3   : > { %2357 = dma.vmem_to_hbm [thread:$0]  (%p2735_p7), %s2214_s27, 256, %s2211_s6, %s2197_s11  }
 0x2a4 PF: > { %s2225_s16 = sand.u32 1, %s2581_s18   ;;  %p4509_p9 = scmp.ne.s32.totalorder %s4173_s29, 0 }
 0x2a5   : > { %p4510_p11 = scmp.ge.s32.totalorder %s2601_s23, 2  ;;  %s2226_s17 = scalar_lea.sflag [#allocation4], %s2225_s16 }
 0x2a7   : > { %p2371_p2 = pnand %p4510_p11, %p4509_p9 }
 0x2a9   : > { %p2372_p13 = pneg %p2371_p2 }
 0x2ab   : > { %2576 = dma.done.wait (%p2372_p13), %s2226_s17, 256  }
 0x2ac   : > { %2578 = vsyncadd (%p2372_p13), %s2226_s17, 4294967040  ;;  %s22_s23 = sadd.s32 1, %s2601_s23   ;;  %s4511_s18 = smov %s2585_s19 }
 0x2ad   : > { %p19_p0 = scmp.ge.s32.totalorder %s22_s23, 4   ;;  %s4512_s19 = smov %s2589_s20 }
 0x2ae   : > { %s4513_s20 = smov %s2744_s12  ;;  %s4514_s21 = smov %s2597_s22 }
 0x2af   : > { %s4515_s22 = smov %s4517_s25  ;;  %21 = sbr.rel (!%p19_p0) target bundleno = 9 (0x9), region = 97 }
 0x2b4   :  { %2231 = vsyncpa [#allocation3], 1 }
 0x2b5   :  { %2233 = vsyncpa [#allocation3 + $0x1], 1 }
 0x2b6   :  { %2234 = vsyncpa [#allocation6], 1 }
 0x2b7   :  { %2235 = vsyncpa [#allocation4], 1 }
 0x2b8   :  { %2237 = vsyncpa [#allocation4 + $0x1], 1 }

</bundles_post_ra>
